<compile_context>
chip_gen: v7x
topology: tpu7x:2x2x1
jax: 0.10.0
libtpu: 0.0.40
codegen_flags: <defaults>
</compile_context>

<pallas_src>
import numpy as np
import jax
import jax.numpy as jnp
from jax import lax
from jax.experimental import pallas as pl
from jax.experimental.pallas import tpu as pltpu

INPUT_DIM = 784
HIDDEN_DIMS = [128, 32, 16, 4]
Z_SIZE = HIDDEN_DIMS[-1] // 2                                   # 2
LAYER_OUT = HIDDEN_DIMS + list(reversed(HIDDEN_DIMS)) + [INPUT_DIM]
N_ENC = len(HIDDEN_DIMS)                                        # 4 encoder layers
N_LAYERS = len(LAYER_OUT)                                       # 9 total layers
STATS_W = 8                                                     # [mean|logvar|z|pad2]
BIAS_ROWS = 16                                                  # 9 biases, sublane-padded
BIAS_COLS = 1024                                                # 784 lane-padded to 8*128
WIDE = 128                                                      # bf16 threshold


def _gelu(x):
    # exact (erf-based) GELU, matching torch.nn.GELU() default.
    # TODO(synk): tanh-approx GELU would route through the EUP slot, but the
    # kernel is HBM-bound so the erf polynomial is just VALU filler.
    return 0.5 * x * (1.0 + lax.erf(x * (1.0 / np.sqrt(2.0))))


def vae_kernel(x_ref, eps_ref, *refs):
    w_refs = refs[:N_LAYERS]
    b_ref = refs[N_LAYERS]
    imgs_ref = refs[N_LAYERS + 1]
    stats_ref = refs[N_LAYERS + 2]

    def linear(h, li):
        w = w_refs[li][...]
        if w.dtype == jnp.bfloat16:          # wide layers: bf16 MXU, f32 acc
            h = h.astype(jnp.bfloat16)
        b = b_ref[pl.ds(li, 1), pl.ds(0, LAYER_OUT[li])]        # (1, out)
        return jnp.dot(h, w, preferred_element_type=jnp.float32) + b

    # ---- encoder (GELU after first 3 layers; trailing GELU stripped) ----
    h = x_ref[...]
    for li in range(N_ENC):                  # static Python for: stays unrolled
        h = linear(h, li)
        if li < N_ENC - 1:
            h = _gelu(h)

    mean = h[:, :Z_SIZE]
    logvar = h[:, Z_SIZE:2 * Z_SIZE]

    # ---- reparameterize (n_samples_per_z == 1) ----
    std = jnp.exp(0.5 * logvar)
    z = mean + eps_ref[...] * std

    # ---- decoder (GELU after first 4 layers, Sigmoid at the end) ----
    d = z
    for li in range(N_ENC, N_LAYERS):
        d = linear(d, li)
        if li < N_LAYERS - 1:
            d = _gelu(d)
    imgs_ref[...] = jax.nn.sigmoid(d).astype(imgs_ref.dtype)

    # ---- slim packed stats output: direct sub-slice stores ----
    tb = mean.shape[0]
    stats_ref[:, pl.ds(0, Z_SIZE)] = mean
    stats_ref[:, pl.ds(Z_SIZE, Z_SIZE)] = logvar
    stats_ref[:, pl.ds(2 * Z_SIZE, Z_SIZE)] = z
    stats_ref[:, pl.ds(3 * Z_SIZE, STATS_W - 3 * Z_SIZE)] = jnp.zeros(
        (tb, STATS_W - 3 * Z_SIZE), jnp.float32)


def init_params(key):
    """Deterministic PyTorch-style (uniform +-1/sqrt(fan_in)) init."""
    dims_enc = [INPUT_DIM] + HIDDEN_DIMS
    dims_dec = [Z_SIZE] + list(reversed(HIDDEN_DIMS)) + [INPUT_DIM]
    params = []
    for dims in (dims_enc, dims_dec):
        for i in range(len(dims) - 1):
            fan_in, fan_out = dims[i], dims[i + 1]
            key, kw, kb = jax.random.split(key, 3)
            bound = 1.0 / np.sqrt(fan_in)
            w = jax.random.uniform(kw, (fan_in, fan_out), jnp.float32, -bound, bound)
            b = jax.random.uniform(kb, (1, fan_out), jnp.float32, -bound, bound)
            params.append((w, b))
    return params


def _round_up(x, m):
    return (x + m - 1) // m * m


def _choose_tiling(B, cap=512):
    """Return (tile_b, padded_B).

    - pads the batch to a multiple of 16 (bf16 sublane tile) instead of ever
      falling back to a whole-batch tile;
    - guarantees >= 2 grid steps whenever B > 32, so both v7x TensorCores get
      work via the "parallel" batch axis;
    - caps tiles at `cap` rows (~6 MiB resident VMEM at 512) to stay well
      inside every generation's default scoped VMEM limit.
    """
    Bp = _round_up(B, 16)
    if Bp <= 32:
        return Bp, Bp                         # single tiny step
    limit = min(cap, Bp // 2)
    tile, t = 16, 16
    while t <= limit:
        if Bp % t == 0:
            tile = t
        t += 16
    return tile, Bp


def vae_forward(x, eps, params, *, tile_cap=512, use_bf16_matmul=True,
                bf16_imgs=False):
    B = x.shape[0]
    tile_b, Bp = _choose_tiling(B, tile_cap)
    if Bp != B:
        x = jnp.pad(x, ((0, Bp - B), (0, 0)))
        eps = jnp.pad(eps, ((0, Bp - B), (0, 0)))

    # Host-side dtype prep: wide weights (and x) in bf16 on the bf16 path.
    weights = []
    for (w, _) in params:
        if use_bf16_matmul and max(w.shape) >= WIDE:
            w = w.astype(jnp.bfloat16)
        weights.append(w)
    if use_bf16_matmul:
        x = x.astype(jnp.bfloat16)

    # Pack the 9 (1, N) biases into one lane/sublane-padded f32 array.
    bias_pack = jnp.zeros((BIAS_ROWS, BIAS_COLS), jnp.float32)
    for li, (_, b) in enumerate(params):
        bias_pack = bias_pack.at[li, :b.shape[-1]].set(b.reshape(-1))

    # Constant index_map: params stay resident in VMEM across grid steps.
    param_specs = ([pl.BlockSpec(w.shape, lambda i: (0, 0)) for w in weights]
                   + [pl.BlockSpec((BIAS_ROWS, BIAS_COLS), lambda i: (0, 0))])

    in_specs = ([pl.BlockSpec((tile_b, INPUT_DIM), lambda i: (i, 0)),
                 pl.BlockSpec((tile_b, Z_SIZE), lambda i: (i, 0))]
                + param_specs)
    out_specs = [pl.BlockSpec((tile_b, INPUT_DIM), lambda i: (i, 0)),
                 pl.BlockSpec((tile_b, STATS_W), lambda i: (i, 0))]
    imgs_dtype = jnp.bfloat16 if bf16_imgs else jnp.float32
    out_shape = [jax.ShapeDtypeStruct((Bp, INPUT_DIM), imgs_dtype),
                 jax.ShapeDtypeStruct((Bp, STATS_W), jnp.float32)]

    fn = pl.pallas_call(
        vae_kernel,
        out_shape=out_shape,
        grid_spec=pltpu.PrefetchScalarGridSpec(
            num_scalar_prefetch=0,
            grid=(Bp // tile_b,),
            in_specs=in_specs,
            out_specs=out_specs,
        ),
        compiler_params=pltpu.CompilerParams(
            dimension_semantics=("parallel",)),
    )
    imgs, stats = fn(x, eps, *weights, bias_pack)
    imgs = imgs[:B]
    stats = stats[:B]
    mean = stats[:, :Z_SIZE]
    logvar = stats[:, Z_SIZE:2 * Z_SIZE]
    z = stats[:, 2 * Z_SIZE:3 * Z_SIZE]
    return {"imgs": imgs, "z": z, "mean": mean, "logvar": logvar}


def vae_reference(x, eps, params, *, use_bf16_matmul=True):
    """Pure-JAX reference mirroring the PyTorch forward (n_samples_per_z=1)."""
    def lin(h, w, b):
        if use_bf16_matmul and max(w.shape) >= WIDE:
            h = h.astype(jnp.bfloat16)
            w = w.astype(jnp.bfloat16)
        return jnp.dot(h, w, preferred_element_type=jnp.float32) + b

    h = x
    for li in range(N_ENC):
        w, b = params[li]
        h = lin(h, w, b)
        if li < N_ENC - 1:
            h = _gelu(h)
    mean, logvar = h[:, :Z_SIZE], h[:, Z_SIZE:2 * Z_SIZE]
    z = mean + eps * jnp.exp(0.5 * logvar)
    d = z
    for li in range(N_ENC, N_LAYERS):
        w, b = params[li]
        d = lin(d, w, b)
        if li < N_LAYERS - 1:
            d = _gelu(d)
    imgs = jax.nn.sigmoid(d)
    return {"imgs": imgs, "z": z, "mean": mean, "logvar": logvar}


if __name__ == "__main__":
    key = jax.random.PRNGKey(0)
    kx, keps, kp = jax.random.split(key, 3)

    # B=256 (the module's config.batch_size): tile_b=128, grid=(2,), so both
    # v7x TensorCores get a grid step; still a small, fast test input.
    B = 256
    x = jax.random.uniform(kx, (B, INPUT_DIM), jnp.float32)
    eps = jax.random.normal(keps, (B, Z_SIZE), jnp.float32)
    params = init_params(kp)

    # Optimized default path: bf16 x + bf16 wide weights on the MXU, f32 acc.
    out = vae_forward(x, eps, params, use_bf16_matmul=True)
    jax.block_until_ready(out)
    ref = vae_reference(x, eps, params, use_bf16_matmul=True)
    for k in ("imgs", "z", "mean", "logvar"):
        np.testing.assert_allclose(np.asarray(out[k], dtype=np.float32),
                                   np.asarray(ref[k], dtype=np.float32),
                                   rtol=2e-2, atol=2e-2)

    # Strict f32 path: matches the PyTorch module numerics exactly.
    out32 = vae_forward(x, eps, params, use_bf16_matmul=False)
    jax.block_until_ready(out32)
    ref32 = vae_reference(x, eps, params, use_bf16_matmul=False)
    for k in ("imgs", "z", "mean", "logvar"):
        np.testing.assert_allclose(np.asarray(out32[k]), np.asarray(ref32[k]),
                                   rtol=1e-4, atol=1e-4)

    print("KERNEL_OK")
</pallas_src>

<mosaic_0001>
module attributes {stable_mosaic.version = 11 : i64} {
  func.func @vae_kernel(%arg0: i32, %arg1: memref<128x784xbf16, #tpu.memory_space<vmem>>, %arg2: memref<128x2xf32, #tpu.memory_space<vmem>>, %arg3: memref<784x128xbf16, #tpu.memory_space<vmem>>, %arg4: memref<128x32xbf16, #tpu.memory_space<vmem>>, %arg5: memref<32x16xf32, #tpu.memory_space<vmem>>, %arg6: memref<16x4xf32, #tpu.memory_space<vmem>>, %arg7: memref<2x4xf32, #tpu.memory_space<vmem>>, %arg8: memref<4x16xf32, #tpu.memory_space<vmem>>, %arg9: memref<16x32xf32, #tpu.memory_space<vmem>>, %arg10: memref<32x128xbf16, #tpu.memory_space<vmem>>, %arg11: memref<128x784xbf16, #tpu.memory_space<vmem>>, %arg12: memref<16x1024xf32, #tpu.memory_space<vmem>>, %arg13: memref<128x784xf32, #tpu.memory_space<vmem>>, %arg14: memref<128x8xf32, #tpu.memory_space<vmem>>) attributes {dimension_semantics = [#tpu.dimension_semantics<parallel>], iteration_bounds = array<i64: 2>, scalar_prefetch = 0 : i64, scratch_operands = 0 : i64, tpu.core_type = #tpu.core_type<tc>, window_params = [{transform_indices = @transform_0, window_bounds = array<i64: 128, 784>}, {transform_indices = @transform_1, window_bounds = array<i64: 128, 2>}, {pipeline_mode = #tpu.pipeline_mode<synchronous>, transform_indices = @transform_2, window_bounds = array<i64: 784, 128>}, {pipeline_mode = #tpu.pipeline_mode<synchronous>, transform_indices = @transform_3, window_bounds = array<i64: 128, 32>}, {pipeline_mode = #tpu.pipeline_mode<synchronous>, transform_indices = @transform_4, window_bounds = array<i64: 32, 16>}, {pipeline_mode = #tpu.pipeline_mode<synchronous>, transform_indices = @transform_5, window_bounds = array<i64: 16, 4>}, {pipeline_mode = #tpu.pipeline_mode<synchronous>, transform_indices = @transform_6, window_bounds = array<i64: 2, 4>}, {pipeline_mode = #tpu.pipeline_mode<synchronous>, transform_indices = @transform_7, window_bounds = array<i64: 4, 16>}, {pipeline_mode = #tpu.pipeline_mode<synchronous>, transform_indices = @transform_8, window_bounds = array<i64: 16, 32>}, {pipeline_mode = #tpu.pipeline_mode<synchronous>, transform_indices = @transform_9, window_bounds = array<i64: 32, 128>}, {pipeline_mode = #tpu.pipeline_mode<synchronous>, transform_indices = @transform_10, window_bounds = array<i64: 128, 784>}, {pipeline_mode = #tpu.pipeline_mode<synchronous>, transform_indices = @transform_11, window_bounds = array<i64: 16, 1024>}, {transform_indices = @transform_12, window_bounds = array<i64: 128, 784>}, {transform_indices = @transform_13, window_bounds = array<i64: 128, 8>}]} {
    %c0 = arith.constant 0 : index
    %c0_0 = arith.constant 0 : index
    %0 = vector.load %arg1[%c0, %c0_0] : memref<128x784xbf16, #tpu.memory_space<vmem>>, vector<128x784xbf16>
    %c0_1 = arith.constant 0 : index
    %c0_2 = arith.constant 0 : index
    %1 = vector.load %arg3[%c0_1, %c0_2] : memref<784x128xbf16, #tpu.memory_space<vmem>>, vector<784x128xbf16>
    %c0_3 = arith.constant 0 : index
    %c0_4 = arith.constant 0 : index
    %2 = vector.load %arg12[%c0_3, %c0_4] : memref<16x1024xf32, #tpu.memory_space<vmem>>, vector<1x128xf32>
    %cst = arith.constant dense<0.000000e+00> : vector<128x128xf32>
    %3 = tpu.matmul %0, %1, %cst {dimension_numbers = #tpu.dot_dimension_numbers<[1], [0], [0], [1], [0, 0, 1, 1], [], []>} : vector<128x784xbf16>, vector<784x128xbf16>, vector<128x128xf32> -> vector<128x128xf32>
    %4 = vector.broadcast %2 : vector<1x128xf32> to vector<128x128xf32>
    %5 = arith.addf %3, %4 : vector<128x128xf32>
    %cst_5 = arith.constant 5.000000e-01 : f32
    %6 = vector.broadcast %cst_5 : f32 to vector<128x128xf32>
    %7 = arith.mulf %6, %5 : vector<128x128xf32>
    %cst_6 = arith.constant 0.707106769 : f32
    %8 = vector.broadcast %cst_6 : f32 to vector<128x128xf32>
    %9 = arith.mulf %5, %8 : vector<128x128xf32>
    %10 = math.erf %9 : vector<128x128xf32>
    %cst_7 = arith.constant 1.000000e+00 : f32
    %11 = vector.broadcast %cst_7 : f32 to vector<128x128xf32>
    %12 = arith.addf %11, %10 : vector<128x128xf32>
    %13 = arith.mulf %7, %12 : vector<128x128xf32>
    %c0_8 = arith.constant 0 : index
    %c0_9 = arith.constant 0 : index
    %14 = vector.load %arg4[%c0_8, %c0_9] : memref<128x32xbf16, #tpu.memory_space<vmem>>, vector<128x32xbf16>
    %15 = arith.truncf %13 : vector<128x128xf32> to vector<128x128xbf16>
    %c1 = arith.constant 1 : index
    %c0_10 = arith.constant 0 : index
    %16 = vector.load %arg12[%c1, %c0_10] : memref<16x1024xf32, #tpu.memory_space<vmem>>, vector<1x32xf32>
    %cst_11 = arith.constant dense<0.000000e+00> : vector<128x32xf32>
    %17 = tpu.matmul %15, %14, %cst_11 {dimension_numbers = #tpu.dot_dimension_numbers<[1], [0], [0], [1], [0, 0, 1, 1], [], []>} : vector<128x128xbf16>, vector<128x32xbf16>, vector<128x32xf32> -> vector<128x32xf32>
    %18 = vector.broadcast %16 : vector<1x32xf32> to vector<128x32xf32>
    %19 = arith.addf %17, %18 : vector<128x32xf32>
    %cst_12 = arith.constant 5.000000e-01 : f32
    %20 = vector.broadcast %cst_12 : f32 to vector<128x32xf32>
    %21 = arith.mulf %20, %19 : vector<128x32xf32>
    %cst_13 = arith.constant 0.707106769 : f32
    %22 = vector.broadcast %cst_13 : f32 to vector<128x32xf32>
    %23 = arith.mulf %19, %22 : vector<128x32xf32>
    %24 = math.erf %23 : vector<128x32xf32>
    %cst_14 = arith.constant 1.000000e+00 : f32
    %25 = vector.broadcast %cst_14 : f32 to vector<128x32xf32>
    %26 = arith.addf %25, %24 : vector<128x32xf32>
    %27 = arith.mulf %21, %26 : vector<128x32xf32>
    %c0_15 = arith.constant 0 : index
    %c0_16 = arith.constant 0 : index
    %28 = vector.load %arg5[%c0_15, %c0_16] : memref<32x16xf32, #tpu.memory_space<vmem>>, vector<32x16xf32>
    %c2 = arith.constant 2 : index
    %c0_17 = arith.constant 0 : index
    %29 = vector.load %arg12[%c2, %c0_17] : memref<16x1024xf32, #tpu.memory_space<vmem>>, vector<1x16xf32>
    %cst_18 = arith.constant dense<0.000000e+00> : vector<128x16xf32>
    %30 = tpu.matmul %27, %28, %cst_18 {dimension_numbers = #tpu.dot_dimension_numbers<[1], [0], [0], [1], [0, 0, 1, 1], [], []>} : vector<128x32xf32>, vector<32x16xf32>, vector<128x16xf32> -> vector<128x16xf32>
    %31 = vector.broadcast %29 : vector<1x16xf32> to vector<128x16xf32>
    %32 = arith.addf %30, %31 : vector<128x16xf32>
    %cst_19 = arith.constant 5.000000e-01 : f32
    %33 = vector.broadcast %cst_19 : f32 to vector<128x16xf32>
    %34 = arith.mulf %33, %32 : vector<128x16xf32>
    %cst_20 = arith.constant 0.707106769 : f32
    %35 = vector.broadcast %cst_20 : f32 to vector<128x16xf32>
    %36 = arith.mulf %32, %35 : vector<128x16xf32>
    %37 = math.erf %36 : vector<128x16xf32>
    %cst_21 = arith.constant 1.000000e+00 : f32
    %38 = vector.broadcast %cst_21 : f32 to vector<128x16xf32>
    %39 = arith.addf %38, %37 : vector<128x16xf32>
    %40 = arith.mulf %34, %39 : vector<128x16xf32>
    %c0_22 = arith.constant 0 : index
    %c0_23 = arith.constant 0 : index
    %41 = vector.load %arg6[%c0_22, %c0_23] : memref<16x4xf32, #tpu.memory_space<vmem>>, vector<16x4xf32>
    %c3 = arith.constant 3 : index
    %c0_24 = arith.constant 0 : index
    %42 = vector.load %arg12[%c3, %c0_24] : memref<16x1024xf32, #tpu.memory_space<vmem>>, vector<1x4xf32>
    %cst_25 = arith.constant dense<0.000000e+00> : vector<128x4xf32>
    %43 = tpu.matmul %40, %41, %cst_25 {dimension_numbers = #tpu.dot_dimension_numbers<[1], [0], [0], [1], [0, 0, 1, 1], [], []>} : vector<128x16xf32>, vector<16x4xf32>, vector<128x4xf32> -> vector<128x4xf32>
    %44 = vector.broadcast %42 : vector<1x4xf32> to vector<128x4xf32>
    %45 = arith.addf %43, %44 : vector<128x4xf32>
    %46 = vector.extract_strided_slice %45 {offsets = [0, 0], sizes = [128, 2], strides = [1, 1]} : vector<128x4xf32> to vector<128x2xf32>
    %47 = vector.extract_strided_slice %45 {offsets = [0, 2], sizes = [128, 2], strides = [1, 1]} : vector<128x4xf32> to vector<128x2xf32>
    %cst_26 = arith.constant 5.000000e-01 : f32
    %48 = vector.broadcast %cst_26 : f32 to vector<128x2xf32>
    %49 = arith.mulf %48, %47 : vector<128x2xf32>
    %50 = math.exp %49 : vector<128x2xf32>
    %c0_27 = arith.constant 0 : index
    %c0_28 = arith.constant 0 : index
    %51 = vector.load %arg2[%c0_27, %c0_28] : memref<128x2xf32, #tpu.memory_space<vmem>>, vector<128x2xf32>
    %52 = arith.mulf %51, %50 : vector<128x2xf32>
    %53 = arith.addf %46, %52 : vector<128x2xf32>
    %c0_29 = arith.constant 0 : index
    %c0_30 = arith.constant 0 : index
    %54 = vector.load %arg7[%c0_29, %c0_30] : memref<2x4xf32, #tpu.memory_space<vmem>>, vector<2x4xf32>
    %c4 = arith.constant 4 : index
    %c0_31 = arith.constant 0 : index
    %55 = vector.load %arg12[%c4, %c0_31] : memref<16x1024xf32, #tpu.memory_space<vmem>>, vector<1x4xf32>
    %cst_32 = arith.constant dense<0.000000e+00> : vector<128x4xf32>
    %56 = tpu.matmul %53, %54, %cst_32 {dimension_numbers = #tpu.dot_dimension_numbers<[1], [0], [0], [1], [0, 0, 1, 1], [], []>} : vector<128x2xf32>, vector<2x4xf32>, vector<128x4xf32> -> vector<128x4xf32>
    %57 = vector.broadcast %55 : vector<1x4xf32> to vector<128x4xf32>
    %58 = arith.addf %56, %57 : vector<128x4xf32>
    %cst_33 = arith.constant 5.000000e-01 : f32
    %59 = vector.broadcast %cst_33 : f32 to vector<128x4xf32>
    %60 = arith.mulf %59, %58 : vector<128x4xf32>
    %cst_34 = arith.constant 0.707106769 : f32
    %61 = vector.broadcast %cst_34 : f32 to vector<128x4xf32>
    %62 = arith.mulf %58, %61 : vector<128x4xf32>
    %63 = math.erf %62 : vector<128x4xf32>
    %cst_35 = arith.constant 1.000000e+00 : f32
    %64 = vector.broadcast %cst_35 : f32 to vector<128x4xf32>
    %65 = arith.addf %64, %63 : vector<128x4xf32>
    %66 = arith.mulf %60, %65 : vector<128x4xf32>
    %c0_36 = arith.constant 0 : index
    %c0_37 = arith.constant 0 : index
    %67 = vector.load %arg8[%c0_36, %c0_37] : memref<4x16xf32, #tpu.memory_space<vmem>>, vector<4x16xf32>
    %c5 = arith.constant 5 : index
    %c0_38 = arith.constant 0 : index
    %68 = vector.load %arg12[%c5, %c0_38] : memref<16x1024xf32, #tpu.memory_space<vmem>>, vector<1x16xf32>
    %cst_39 = arith.constant dense<0.000000e+00> : vector<128x16xf32>
    %69 = tpu.matmul %66, %67, %cst_39 {dimension_numbers = #tpu.dot_dimension_numbers<[1], [0], [0], [1], [0, 0, 1, 1], [], []>} : vector<128x4xf32>, vector<4x16xf32>, vector<128x16xf32> -> vector<128x16xf32>
    %70 = vector.broadcast %68 : vector<1x16xf32> to vector<128x16xf32>
    %71 = arith.addf %69, %70 : vector<128x16xf32>
    %cst_40 = arith.constant 5.000000e-01 : f32
    %72 = vector.broadcast %cst_40 : f32 to vector<128x16xf32>
    %73 = arith.mulf %72, %71 : vector<128x16xf32>
    %cst_41 = arith.constant 0.707106769 : f32
    %74 = vector.broadcast %cst_41 : f32 to vector<128x16xf32>
    %75 = arith.mulf %71, %74 : vector<128x16xf32>
    %76 = math.erf %75 : vector<128x16xf32>
    %cst_42 = arith.constant 1.000000e+00 : f32
    %77 = vector.broadcast %cst_42 : f32 to vector<128x16xf32>
    %78 = arith.addf %77, %76 : vector<128x16xf32>
    %79 = arith.mulf %73, %78 : vector<128x16xf32>
    %c0_43 = arith.constant 0 : index
    %c0_44 = arith.constant 0 : index
    %80 = vector.load %arg9[%c0_43, %c0_44] : memref<16x32xf32, #tpu.memory_space<vmem>>, vector<16x32xf32>
    %c6 = arith.constant 6 : index
    %c0_45 = arith.constant 0 : index
    %81 = vector.load %arg12[%c6, %c0_45] : memref<16x1024xf32, #tpu.memory_space<vmem>>, vector<1x32xf32>
    %cst_46 = arith.constant dense<0.000000e+00> : vector<128x32xf32>
    %82 = tpu.matmul %79, %80, %cst_46 {dimension_numbers = #tpu.dot_dimension_numbers<[1], [0], [0], [1], [0, 0, 1, 1], [], []>} : vector<128x16xf32>, vector<16x32xf32>, vector<128x32xf32> -> vector<128x32xf32>
    %83 = vector.broadcast %81 : vector<1x32xf32> to vector<128x32xf32>
    %84 = arith.addf %82, %83 : vector<128x32xf32>
    %cst_47 = arith.constant 5.000000e-01 : f32
    %85 = vector.broadcast %cst_47 : f32 to vector<128x32xf32>
    %86 = arith.mulf %85, %84 : vector<128x32xf32>
    %cst_48 = arith.constant 0.707106769 : f32
    %87 = vector.broadcast %cst_48 : f32 to vector<128x32xf32>
    %88 = arith.mulf %84, %87 : vector<128x32xf32>
    %89 = math.erf %88 : vector<128x32xf32>
    %cst_49 = arith.constant 1.000000e+00 : f32
    %90 = vector.broadcast %cst_49 : f32 to vector<128x32xf32>
    %91 = arith.addf %90, %89 : vector<128x32xf32>
    %92 = arith.mulf %86, %91 : vector<128x32xf32>
    %c0_50 = arith.constant 0 : index
    %c0_51 = arith.constant 0 : index
    %93 = vector.load %arg10[%c0_50, %c0_51] : memref<32x128xbf16, #tpu.memory_space<vmem>>, vector<32x128xbf16>
    %94 = arith.truncf %92 : vector<128x32xf32> to vector<128x32xbf16>
    %c7 = arith.constant 7 : index
    %c0_52 = arith.constant 0 : index
    %95 = vector.load %arg12[%c7, %c0_52] : memref<16x1024xf32, #tpu.memory_space<vmem>>, vector<1x128xf32>
    %cst_53 = arith.constant dense<0.000000e+00> : vector<128x128xf32>
    %96 = tpu.matmul %94, %93, %cst_53 {dimension_numbers = #tpu.dot_dimension_numbers<[1], [0], [0], [1], [0, 0, 1, 1], [], []>} : vector<128x32xbf16>, vector<32x128xbf16>, vector<128x128xf32> -> vector<128x128xf32>
    %97 = vector.broadcast %95 : vector<1x128xf32> to vector<128x128xf32>
    %98 = arith.addf %96, %97 : vector<128x128xf32>
    %cst_54 = arith.constant 5.000000e-01 : f32
    %99 = vector.broadcast %cst_54 : f32 to vector<128x128xf32>
    %100 = arith.mulf %99, %98 : vector<128x128xf32>
    %cst_55 = arith.constant 0.707106769 : f32
    %101 = vector.broadcast %cst_55 : f32 to vector<128x128xf32>
    %102 = arith.mulf %98, %101 : vector<128x128xf32>
    %103 = math.erf %102 : vector<128x128xf32>
    %cst_56 = arith.constant 1.000000e+00 : f32
    %104 = vector.broadcast %cst_56 : f32 to vector<128x128xf32>
    %105 = arith.addf %104, %103 : vector<128x128xf32>
    %106 = arith.mulf %100, %105 : vector<128x128xf32>
    %c0_57 = arith.constant 0 : index
    %c0_58 = arith.constant 0 : index
    %107 = vector.load %arg11[%c0_57, %c0_58] : memref<128x784xbf16, #tpu.memory_space<vmem>>, vector<128x784xbf16>
    %108 = arith.truncf %106 : vector<128x128xf32> to vector<128x128xbf16>
    %c8 = arith.constant 8 : index
    %c0_59 = arith.constant 0 : index
    %109 = vector.load %arg12[%c8, %c0_59] : memref<16x1024xf32, #tpu.memory_space<vmem>>, vector<1x784xf32>
    %cst_60 = arith.constant dense<0.000000e+00> : vector<128x784xf32>
    %110 = tpu.matmul %108, %107, %cst_60 {dimension_numbers = #tpu.dot_dimension_numbers<[1], [0], [0], [1], [0, 0, 1, 1], [], []>} : vector<128x128xbf16>, vector<128x784xbf16>, vector<128x784xf32> -> vector<128x784xf32>
    %111 = vector.broadcast %109 : vector<1x784xf32> to vector<128x784xf32>
    %112 = arith.addf %110, %111 : vector<128x784xf32>
    %113 = arith.negf %112 : vector<128x784xf32>
    %114 = math.exp %113 : vector<128x784xf32>
    %cst_61 = arith.constant 1.000000e+00 : f32
    %115 = vector.broadcast %cst_61 : f32 to vector<128x784xf32>
    %116 = arith.addf %115, %114 : vector<128x784xf32>
    %117 = arith.divf %115, %116 : vector<128x784xf32>
    %c0_62 = arith.constant 0 : index
    %c0_63 = arith.constant 0 : index
    %118 = vector.load %arg13[%c0_62, %c0_63] : memref<128x784xf32, #tpu.memory_space<vmem>>, vector<128x784xf32>
    tpu.vector_store %arg13[%c0_62, %c0_63], %117 {strides = array<i32>} : memref<128x784xf32, #tpu.memory_space<vmem>>, vector<128x784xf32>,
    %c0_64 = arith.constant 0 : index
    %c0_65 = arith.constant 0 : index
    %119 = vector.load %arg14[%c0_64, %c0_65] : memref<128x8xf32, #tpu.memory_space<vmem>>, vector<128x2xf32>
    tpu.vector_store %arg14[%c0_64, %c0_65], %46 {strides = array<i32>} : memref<128x8xf32, #tpu.memory_space<vmem>>, vector<128x2xf32>,
    %c0_66 = arith.constant 0 : index
    %c2_67 = arith.constant 2 : index
    %120 = vector.load %arg14[%c0_66, %c2_67] : memref<128x8xf32, #tpu.memory_space<vmem>>, vector<128x2xf32>
    tpu.vector_store %arg14[%c0_66, %c2_67], %47 {strides = array<i32>} : memref<128x8xf32, #tpu.memory_space<vmem>>, vector<128x2xf32>,
    %c0_68 = arith.constant 0 : index
    %c4_69 = arith.constant 4 : index
    %121 = vector.load %arg14[%c0_68, %c4_69] : memref<128x8xf32, #tpu.memory_space<vmem>>, vector<128x2xf32>
    tpu.vector_store %arg14[%c0_68, %c4_69], %53 {strides = array<i32>} : memref<128x8xf32, #tpu.memory_space<vmem>>, vector<128x2xf32>,
    %cst_70 = arith.constant 0.000000e+00 : f32
    %122 = vector.broadcast %cst_70 : f32 to vector<128x2xf32>
    %c0_71 = arith.constant 0 : index
    %c6_72 = arith.constant 6 : index
    %123 = vector.load %arg14[%c0_71, %c6_72] : memref<128x8xf32, #tpu.memory_space<vmem>>, vector<128x2xf32>
    tpu.vector_store %arg14[%c0_71, %c6_72], %122 {strides = array<i32>} : memref<128x8xf32, #tpu.memory_space<vmem>>, vector<128x2xf32>,
    return
  }
  func.func @transform_0(%arg0: i32) -> (i32, i32) {
    %c0_i32 = arith.constant 0 : i32
    %c0_i32_0 = arith.constant 0 : i32
    return %arg0, %c0_i32 : i32, i32
  }
  func.func @transform_1(%arg0: i32) -> (i32, i32) {
    %c0_i32 = arith.constant 0 : i32
    %c0_i32_0 = arith.constant 0 : i32
    return %arg0, %c0_i32 : i32, i32
  }
  func.func @transform_2(%arg0: i32) -> (i32, i32) {
    %c0_i32 = arith.constant 0 : i32
    %c0_i32_0 = arith.constant 0 : i32
    %c0_i32_1 = arith.constant 0 : i32
    return %c0_i32, %c0_i32_0 : i32, i32
  }
  func.func @transform_3(%arg0: i32) -> (i32, i32) {
    %c0_i32 = arith.constant 0 : i32
    %c0_i32_0 = arith.constant 0 : i32
    %c0_i32_1 = arith.constant 0 : i32
    return %c0_i32, %c0_i32_0 : i32, i32
  }
  func.func @transform_4(%arg0: i32) -> (i32, i32) {
    %c0_i32 = arith.constant 0 : i32
    %c0_i32_0 = arith.constant 0 : i32
    %c0_i32_1 = arith.constant 0 : i32
    return %c0_i32, %c0_i32_0 : i32, i32
  }
  func.func @transform_5(%arg0: i32) -> (i32, i32) {
    %c0_i32 = arith.constant 0 : i32
    %c0_i32_0 = arith.constant 0 : i32
    %c0_i32_1 = arith.constant 0 : i32
    return %c0_i32, %c0_i32_0 : i32, i32
  }
  func.func @transform_6(%arg0: i32) -> (i32, i32) {
    %c0_i32 = arith.constant 0 : i32
    %c0_i32_0 = arith.constant 0 : i32
    %c0_i32_1 = arith.constant 0 : i32
    return %c0_i32, %c0_i32_0 : i32, i32
  }
  func.func @transform_7(%arg0: i32) -> (i32, i32) {
    %c0_i32 = arith.constant 0 : i32
    %c0_i32_0 = arith.constant 0 : i32
    %c0_i32_1 = arith.constant 0 : i32
    return %c0_i32, %c0_i32_0 : i32, i32
  }
  func.func @transform_8(%arg0: i32) -> (i32, i32) {
    %c0_i32 = arith.constant 0 : i32
    %c0_i32_0 = arith.constant 0 : i32
    %c0_i32_1 = arith.constant 0 : i32
    return %c0_i32, %c0_i32_0 : i32, i32
  }
  func.func @transform_9(%arg0: i32) -> (i32, i32) {
    %c0_i32 = arith.constant 0 : i32
    %c0_i32_0 = arith.constant 0 : i32
    %c0_i32_1 = arith.constant 0 : i32
    return %c0_i32, %c0_i32_0 : i32, i32
  }
  func.func @transform_10(%arg0: i32) -> (i32, i32) {
    %c0_i32 = arith.constant 0 : i32
    %c0_i32_0 = arith.constant 0 : i32
    %c0_i32_1 = arith.constant 0 : i32
    return %c0_i32, %c0_i32_0 : i32, i32
  }
  func.func @transform_11(%arg0: i32) -> (i32, i32) {
    %c0_i32 = arith.constant 0 : i32
    %c0_i32_0 = arith.constant 0 : i32
    %c0_i32_1 = arith.constant 0 : i32
    return %c0_i32, %c0_i32_0 : i32, i32
  }
  func.func @transform_12(%arg0: i32) -> (i32, i32) {
    %c0_i32 = arith.constant 0 : i32
    %c0_i32_0 = arith.constant 0 : i32
    return %arg0, %c0_i32 : i32, i32
  }
  func.func @transform_13(%arg0: i32) -> (i32, i32) {
    %c0_i32 = arith.constant 0 : i32
    %c0_i32_0 = arith.constant 0 : i32
    return %arg0, %c0_i32 : i32, i32
  }
}

</mosaic_0001>

<bundles_post_ra>
// kernel: tpu_custom_call.1
= control target key start
LH: loop header
LB: loop body
LE: loop exit
PB: predicated region body
PF: predicated region fallthrough
CT: control target
= control target key end

     0   :  { %s7526_s25 = smov 0   ;;  %s9240_s0 = inlined_call_operand.vmem [shape: bf16[256,784], index: 0, kind: input, shape index: {}]   ;;  %s9241_s1 = inlined_call_operand.vmem [shape: f32[256,2], index: 1, kind: input, shape index: {}]   ;;  %s9242_s2 = inlined_call_operand.vmem [shape: bf16[784,128], index: 2, kind: input, shape index: {}]   ;;  %s9243_s3 = inlined_call_operand.vmem [shape: bf16[128,32], index: 3, kind: input, shape index: {}]   ;;  %s9244_s4 = inlined_call_operand.vmem [shape: f32[32,16], index: 4, kind: input, shape index: {}]   ;;  %s9245_s5 = inlined_call_operand.vmem [shape: f32[16,4], index: 5, kind: input, shape index: {}]   ;;  %s9246_s6 = inlined_call_operand.vmem [shape: f32[2,4], index: 6, kind: input, shape index: {}]   ;;  %s9247_s7 = inlined_call_operand.vmem [shape: f32[4,16], index: 7, kind: input, shape index: {}]   ;;  %s9248_s8 = inlined_call_operand.vmem [shape: f32[16,32], index: 8, kind: input, shape index: {}]   ;;  %s9249_s9 = inlined_call_operand.vmem [shape: bf16[32,128], index: 9, kind: input, shape index: {}]   ;;  %s9250_s10 = inlined_call_operand.vmem [shape: bf16[128,784], index: 10, kind: input, shape index: {}]   ;;  %s9251_s11 = inlined_call_operand.vmem [shape: f32[16,1024], index: 11, kind: input, shape index: {}]   ;;  %s9252_s12 = inlined_call_operand.vmem [shape: f32[256,784], index: 12, kind: output, shape index: {0}]   ;;  %s9253_s13 = inlined_call_operand.vmem [shape: f32[256,8], index: 13, kind: output, shape index: {1}]  }
   0x1 LB: > { %s5502_s26 = sadd.s32 4294967295, %s7450_s25   ;;  %p5506_p0 = scmp.ge.s32.totalorder %s7450_s25, 1  ;;  %s7450_s25 = sphi %s7526_s25, %s24_s25  }
   0x2   : > { %p403_p1 = scmp.lt.s32.totalorder %s7450_s25, 3 }
   0x4   : > { %p404_p2 = pnand %p5506_p0, %p403_p1 }
   0x6   : > { %407 = sbr.rel (%p404_p2) target bundleno = 2586 (0xa1a), region = 68 }
   0xd   : > { %v6521_v0 = vld [vmem:[%s9242_s2 + $0x40] sm:$0xff]   ;;  %v6525_v4 = vld [vmem:[%s9242_s2 + $0x48] sm:$0xff]   ;;  %v6529_v8 = vld [vmem:[%s9242_s2 + $0x50] sm:$0xff]   ;;  %s5507_s27 = sshll.u32 %s5502_s26, 4  ;;  %vm1223_vm0 = vcmask 130048   ;;  %vm1971_vm1 = vcmask 261120  }
   0xe   : > { %v6522_v1 = vld [vmem:[%s9242_s2 + $0xc0] sm:$0xff]   ;;  %5900 = vmatprep.subr.bf16.mxu0 %v6521_v0  ;;  %v6526_v5 = vld [vmem:[%s9242_s2 + $0xc8] sm:$0xff]   ;;  %v6530_v9 = vld [vmem:[%s9242_s2 + $0xd0] sm:$0xff]   ;;  %p460_p3 = scmp.lt.s32.totalorder %s5507_s27, 31  ;;  %vm2652_vm2 = vcmask 1041408   ;;  %vm2603_vm3 = vcmask 15360  }
   0xf   : > { %v6523_v2 = vld [vmem:[%s9242_s2] sm:$0xff]   ;;  %5964 = vmatprep.subr.bf16.mxu1 %v6522_v1  ;;  %v6527_v6 = vld [vmem:[%s9242_s2 + $0x8] sm:$0xff]   ;;  %v6531_v10 = vld [vmem:[%s9242_s2 + $0x10] sm:$0xff]   ;;  %vm5299_vm4 = vcmask 31760   ;;  %s7452_s21 = smov 126   ;;  %s7453_s28 = smov 4  }
  0x10   : > { %v6524_v3 = vld [vmem:[%s9242_s2 + $0x80] sm:$0xff]   ;;  %5901 = vmatpush3.bf16.msra.mxu0 %v6523_v2  ;;  %v6528_v7 = vld [vmem:[%s9242_s2 + $0x88] sm:$0xff]   ;;  %v6532_v11 = vld [vmem:[%s9242_s2 + $0x90] sm:$0xff]   ;;  %s9261_s27 = smov (!%p460_p3, %s5507_s27), 31  ;;  %vm2932_vm5 = vcmask 1043456   ;;  %vm5364_vm6 = vcmask 48160  }
  0x11   : > { %5965 = vmatpush3.bf16.msra.mxu1 %v6524_v3  ;;  %5902 = vmatprep.subr.bf16.mxu0 %v6525_v4  ;;  %v6533_v12 = vld [vmem:[%s9242_s2 + $0x58] sm:$0xff]   ;;  %v6537_v16 = vld [vmem:[%s9242_s2 + $0x60] sm:$0xff]   ;;  %v6541_v20 = vld [vmem:[%s9242_s2 + $0x68] sm:$0xff]   ;;  %s6507_s18 = smul.u32 28, %s9261_s27  ;;  %vm5381_vm7 = vcmask 64560   ;;  %vm2883_vm8 = vcmask 31744  }
  0x12   : > { %5966 = vmatprep.subr.bf16.mxu1 %v6526_v5  ;;  %v6534_v13 = vld [vmem:[%s9242_s2 + $0xd8] sm:$0xff]   ;;  %v6538_v17 = vld [vmem:[%s9242_s2 + $0xe0] sm:$0xff]   ;;  %v6542_v21 = vld [vmem:[%s9242_s2 + $0xe8] sm:$0xff]  }
  0x13   : > { %v6535_v14 = vld [vmem:[%s9242_s2 + $0x18] sm:$0xff]   ;;  %v6539_v18 = vld [vmem:[%s9242_s2 + $0x20] sm:$0xff]   ;;  %v6543_v22 = vld [vmem:[%s9242_s2 + $0x28] sm:$0xff]   ;;  %s7632_s14 = scalar_lea.vmem %s9240_s0, %s6507_s18 }
  0x14   : > { %5903 = vmatpush3.bf16.msra.mxu0 %v6527_v6  ;;  %v6536_v15 = vld [vmem:[%s9242_s2 + $0x98] sm:$0xff]   ;;  %v6540_v19 = vld [vmem:[%s9242_s2 + $0xa0] sm:$0xff]   ;;  %v6544_v23 = vld [vmem:[%s9242_s2 + $0xa8] sm:$0xff]  }
  0x15   : > { %5967 = vmatpush3.bf16.msra.mxu1 %v6528_v7  ;;  %5904 = vmatprep.subr.bf16.mxu0 %v6529_v8  ;;  %v6545_v24 = vld [vmem:[%s9242_s2 + $0x70] sm:$0xff]   ;;  %v6549_v28 = vld [vmem:[%s9242_s2 + $0x78] sm:$0xff]   ;;  %v6555_v33 = vld [vmem:[%s7632_s14 + $0x4] ss:$28 sps:$4 sm:$0xff]  }
  0x16   : > { %5968 = vmatprep.subr.bf16.mxu1 %v6530_v9  ;;  %v6546_v25 = vld [vmem:[%s9242_s2 + $0xf0] sm:$0xff]   ;;  %v6550_v29 = vld [vmem:[%s9242_s2 + $0xf8] sm:$0xff]   ;;  %v6556_v34 = vld [vmem:[%s7632_s14 + $0x8] ss:$28 sps:$4 sm:$0xff]   ;;  %1280 = vmatprep.mubr.bf16.mxu0 %v6555_v33 }
  0x17   : > { %v6547_v26 = vld [vmem:[%s9242_s2 + $0x30] sm:$0xff]   ;;  %v6551_v30 = vld [vmem:[%s9242_s2 + $0x38] sm:$0xff]   ;;  %v6558_v35 = vld [vmem:[%s7632_s14 + $0xc] ss:$28 sps:$4 sm:$0xff]  }
  0x18   : > { %5905 = vmatpush3.bf16.msra.mxu0 %v6531_v10  ;;  %v6548_v27 = vld [vmem:[%s9242_s2 + $0xb0] sm:$0xff]   ;;  %v6552_v31 = vld [vmem:[%s9242_s2 + $0xb8] sm:$0xff]   ;;  %v6559_v36 = vld [vmem:[%s9242_s2 + $0x140] sm:$0xff]   ;;  %1377 = vmatprep.mubr.bf16.mxu1 %v6558_v35 }
  0x19   : > { %5969 = vmatpush3.bf16.msra.mxu1 %v6532_v11  ;;  %5906 = vmatprep.subr.bf16.mxu0 %v6533_v12  ;;  %v6553_v32 = vld [vmem:[%s7632_s14] ss:$28 sps:$4 sm:$0xff]   ;;  %v6565_v40 = vld [vmem:[%s7632_s14 + $0x38] ss:$28 sps:$4 sm:$0xff]   ;;  %v6567_v42 = vld [vmem:[%s9242_s2 + $0x148] sm:$0xff]  }
  0x1a   : > { %5970 = vmatprep.subr.bf16.mxu1 %v6534_v13  ;;  %v6560_v37 = vld [vmem:[%s9242_s2 + $0x100] sm:$0xff]   ;;  %v6561_v38 = vld [vmem:[%s7632_s14 + $0x3c] ss:$28 sps:$4 sm:$0xff]   ;;  %v6568_v43 = vld [vmem:[%s9242_s2 + $0x108] sm:$0xff]  }
  0x1b   : > { %v6563_v39 = vld [vmem:[%s7632_s14 + $0x44] ss:$28 sps:$4 sm:$0xff]   ;;  %v6569_v44 = vld [vmem:[%s7632_s14 + $0x74] ss:$28 sps:$4 sm:$0xff]   ;;  %v6571_v45 = vld [vmem:[%s7632_s14 + $0x7c] ss:$28 sps:$4 sm:$0xff]  }
  0x1c   : > { %5907 = vmatpush3.bf16.msra.mxu0 %v6535_v14  ;;  %v6566_v41 = vld [vmem:[%s7632_s14 + $0x40] ss:$28 sps:$4 sm:$0xff]   ;;  %v6575_v46 = vld [vmem:[%s9242_s2 + $0x150] sm:$0xff]   ;;  %v6577_v50 = vld [vmem:[%s7632_s14 + $0xac] ss:$28 sps:$4 sm:$0xff]  }
  0x1d   : > { %5971 = vmatpush3.bf16.msra.mxu1 %v6536_v15  ;;  %5908 = vmatprep.subr.bf16.mxu0 %v6537_v16  ;;  %v6576_v47 = vld [vmem:[%s9242_s2 + $0x110] sm:$0xff]   ;;  %v6583_v52 = vld [vmem:[%s9242_s2 + $0x158] sm:$0xff]   ;;  %v6591_v54 = vld [vmem:[%s9242_s2 + $0x160] sm:$0xff]  }
  0x1e   : > { %5972 = vmatprep.subr.bf16.mxu1 %v6538_v17  ;;  %v6573_v48 = vld [vmem:[%s7632_s14 + $0x70] ss:$28 sps:$4 sm:$0xff]   ;;  %v6574_v49 = vld [vmem:[%s7632_s14 + $0x78] ss:$28 sps:$4 sm:$0xff]   ;;  %v6592_v55 = vld [vmem:[%s9242_s2 + $0x120] sm:$0xff]  }
  0x1f   : > { %v6579_v51 = vld [vmem:[%s7632_s14 + $0xb4] ss:$28 sps:$4 sm:$0xff]   ;;  %v6584_v53 = vld [vmem:[%s9242_s2 + $0x118] sm:$0xff]   ;;  %v6581_v56 = vld [vmem:[%s7632_s14 + $0xa8] ss:$28 sps:$4 sm:$0xff]  }
  0x20   : > { %5909 = vmatpush3.bf16.msra.mxu0 %v6539_v18  ;;  %v6582_v57 = vld [vmem:[%s7632_s14 + $0xb0] ss:$28 sps:$4 sm:$0xff]   ;;  %v6585_v58 = vld [vmem:[%s7632_s14 + $0xe4] ss:$28 sps:$4 sm:$0xff]   ;;  %v6593_v2 = vld [vmem:[%s7632_s14 + $0x11c] ss:$28 sps:$4 sm:$0xff]  }
  0x21   : > { %5973 = vmatpush3.bf16.msra.mxu1 %v6540_v19  ;;  %5910 = vmatprep.subr.bf16.mxu0 %v6541_v20  ;;  %v6587_v59 = vld [vmem:[%s7632_s14 + $0xec] ss:$28 sps:$4 sm:$0xff]   ;;  %v6589_v62 = vld [vmem:[%s7632_s14 + $0xe0] ss:$28 sps:$4 sm:$0xff]   ;;  %v6607_v0 = vld [vmem:[%s9242_s2 + $0x170] sm:$0xff]  }
  0x22   : > { %5974 = vmatprep.subr.bf16.mxu1 %v6542_v21  ;;  %v6599_v60 = vld [vmem:[%s9242_s2 + $0x168] sm:$0xff]   ;;  %v6608_v1 = vld [vmem:[%s9242_s2 + $0x130] sm:$0xff]   ;;  %v6595_v3 = vld [vmem:[%s7632_s14 + $0x124] ss:$28 sps:$4 sm:$0xff]  }
  0x23   : > { %v6600_v61 = vld [vmem:[%s9242_s2 + $0x128] sm:$0xff]   ;;  %v6615_v4 = vld [vmem:[%s9242_s2 + $0x178] sm:$0xff]   ;;  %v6623_v8 = vld [vmem:[%s9242_s2 + $0x180] sm:$0xff]  }
  0x24   : > { %5911 = vmatpush3.bf16.msra.mxu0 %v6543_v22  ;;  %v6590_v63 = vld [vmem:[%s7632_s14 + $0xe8] ss:$28 sps:$4 sm:$0xff]   ;;  %v6616_v5 = vld [vmem:[%s9242_s2 + $0x138] sm:$0xff]   ;;  %v6601_v9 = vld [vmem:[%s7632_s14 + $0x154] ss:$28 sps:$4 sm:$0xff]  }
  0x25   : > { %5975 = vmatpush3.bf16.msra.mxu1 %v6544_v23  ;;  %5912 = vmatprep.subr.bf16.mxu0 %v6545_v24  ;;  %v6597_v6 = vld [vmem:[%s7632_s14 + $0x118] ss:$28 sps:$4 sm:$0xff]   ;;  %v6598_v7 = vld [vmem:[%s7632_s14 + $0x120] ss:$28 sps:$4 sm:$0xff]   ;;  %v6605_v11 = vld [vmem:[%s7632_s14 + $0x150] ss:$28 sps:$4 sm:$0xff]  }
  0x26   : > { %5976 = vmatprep.subr.bf16.mxu1 %v6546_v25  ;;  %v6603_v10 = vld [vmem:[%s7632_s14 + $0x15c] ss:$28 sps:$4 sm:$0xff]   ;;  %v6609_v13 = vld [vmem:[%s7632_s14 + $0x18c] ss:$28 sps:$4 sm:$0xff]   ;;  %v6611_v14 = vld [vmem:[%s7632_s14 + $0x194] ss:$28 sps:$4 sm:$0xff]  }
  0x27   : > { %v6606_v12 = vld [vmem:[%s7632_s14 + $0x158] ss:$28 sps:$4 sm:$0xff]   ;;  %v6613_v15 = vld [vmem:[%s7632_s14 + $0x188] ss:$28 sps:$4 sm:$0xff]   ;;  %v6614_v16 = vld [vmem:[%s7632_s14 + $0x190] ss:$28 sps:$4 sm:$0xff]  }
  0x28   : > { %5913 = vmatpush3.bf16.msra.mxu0 %v6547_v26  ;;  %v6619_v17 = vld [vmem:[%s7632_s14 + $0x14] ss:$28 sps:$4 sm:$0xff]   ;;  %v6622_v18 = vld [vmem:[%s7632_s14 + $0x164] ss:$28 sps:$4 sm:$0xff]   ;;  %v6624_v21 = vld [vmem:[%s7632_s14 + $0x4c] ss:$28 sps:$4 sm:$0xff]  }
  0x29   : > { %5977 = vmatpush3.bf16.msra.mxu1 %v6548_v27  ;;  %5914 = vmatprep.subr.bf16.mxu0 %v6549_v28  ;;  %v6617_v19 = vld [vmem:[%s7632_s14 + $0x10] ss:$28 sps:$4 sm:$0xff]   ;;  %v6620_v20 = vld [vmem:[%s7632_s14 + $0x160] ss:$28 sps:$4 sm:$0xff]   ;;  %v6628_v23 = vld [vmem:[%s7632_s14 + $0x48] ss:$28 sps:$4 sm:$0xff]  }
  0x2a   : > { %5978 = vmatprep.subr.bf16.mxu1 %v6550_v29  ;;  %v6626_v22 = vld [vmem:[%s7632_s14 + $0x19c] ss:$28 sps:$4 sm:$0xff]   ;;  %v6630_v25 = vld [vmem:[%s7632_s14 + $0x84] ss:$28 sps:$4 sm:$0xff]   ;;  %v6634_v28 = vld [vmem:[%s7632_s14 + $0x50] ss:$28 sps:$4 sm:$0xff]  }
  0x2b   : > { %v6629_v24 = vld [vmem:[%s7632_s14 + $0x198] ss:$28 sps:$4 sm:$0xff]   ;;  %v6633_v27 = vld [vmem:[%s7632_s14 + $0x80] ss:$28 sps:$4 sm:$0xff]   ;;  %v6643_v35 = vld [vmem:[%s7632_s14 + $0xf0] ss:$28 sps:$4 sm:$0xff]  }
  0x2c   : > { %5915 = vmatpush3.bf16.msra.mxu0 %v6551_v30  ;;  %v6632_v26 = vld [vmem:[%s7632_s14 + $0x18] ss:$28 sps:$4 sm:$0xff]   ;;  %v6637_v30 = vld [vmem:[%s7632_s14 + $0x88] ss:$28 sps:$4 sm:$0xff]  }
  0x2d   : > { %5979 = vmatpush3.bf16.msra.mxu1 %v6552_v31  ;;  %6028 = vmatprep.subr.bf16.mxu0 %v6559_v36  ;;  %v6635_v29 = vld [vmem:[%s7632_s14 + $0xbc] ss:$28 sps:$4 sm:$0xff]   ;;  %v6640_v33 = vld [vmem:[%s7632_s14 + $0xf4] ss:$28 sps:$4 sm:$0xff]  }
  0x2e   : > { %6491 = vmatprep.subr.bf16.mxu1 %v6559_v36  ;;  %v6638_v31 = vld [vmem:[%s7632_s14 + $0xb8] ss:$28 sps:$4 sm:$0xff]   ;;  %v6644_v36 = vld [vmem:[%s7632_s14 + $0x130] ss:$28 sps:$4 sm:$0xff]  }
  0x2f   : > { %1281 = vmatmul.mubr.bf16.vlgmr.msra.gmra.mrb[0].mxu0 %v6553_v32  ;;  %v6639_v32 = vld [vmem:[%s7632_s14 + $0xc0] ss:$28 sps:$4 sm:$0xff]  }
  0x30   : > { %1378 = vmatmul.mubr.bf16.vlgmr.msra.gmra.mrb[0].mxu1 %v6556_v34  ;;  %6029 = vmatpush3.bf16.msra.mxu0 %v6560_v37  ;;  %v6642_v34 = vld [vmem:[%s7632_s14 + $0xf8] ss:$28 sps:$4 sm:$0xff]  }
  0x31   : > { %6499 = vmatpush3.bf16.msra.mxu1 %v6560_v37  ;;  %1288 = vmatprep.mubr.bf16.mxu0 %v6561_v38  ;;  %v6645_v37 = vld [vmem:[%s7632_s14 + $0x12c] ss:$28 sps:$4 sm:$0xff]  }
  0x32   : > { %1385 = vmatprep.mubr.bf16.mxu1 %v6563_v39  ;;  %6492 = vmatprep.subr.bf16.mxu1 %v6567_v42  ;;  %v6647_v38 = vld [vmem:[%s7632_s14 + $0x168] ss:$28 sps:$4 sm:$0xff]  }
  0x33   : > { %6030 = vmatprep.subr.bf16.mxu0 %v6567_v42  ;;  %v6648_v39 = vld [vmem:[%s7632_s14 + $0x128] ss:$28 sps:$4 sm:$0xff]  }
  0x34   : > { %6031 = vmatpush3.bf16.msra.mxu0 %v6568_v43  ;;  %v6651_v42 = vld [vmem:[%s9243_s3 + $0x8] sm:$0xff]  }
  0x35   : > { %6500 = vmatpush3.bf16.msra.mxu1 %v6568_v43  ;;  %6032 = vmatprep.subr.bf16.mxu0 %v6575_v46  ;;  %v6652_v43 = vld [vmem:[%s9243_s3 + $0x10] sm:$0xff]  }
  0x36   : > { %6493 = vmatprep.subr.bf16.mxu1 %v6575_v46  ;;  %v6655_v46 = vld [vmem:[%s9243_s3 + $0x28] sm:$0xff]  }
  0x37   : > { %1289 = vmatmul.mubr.bf16.gmra.mrb[4].mxu0 %v6565_v40  ;;  %v6649_v40 = vld [vmem:[%s7632_s14 + $0x1a0] ss:$28 sps:$4 sm:$0xff]   ;;  %s5510_s14 = sshll.u32 %s9261_s27, 3 }
  0x38   : > { %1386 = vmatmul.mubr.bf16.gmra.mrb[4].mxu1 %v6566_v41  ;;  %1296 = vmatprep.mubr.bf16.mxu0 %v6569_v44  ;;  %v6650_v41 = vld [vmem:[%s9243_s3] sm:$0xff]   ;;  %v6653_v44 = vld [vmem:[%s9243_s3 + $0x18] sm:$0xff]   ;;  %s7973_s20 = scalar_lea.vmem %s9253_s13, %s5510_s14  ;;  %s8156_s24 = scalar_lea.vmem %s9241_s1, %s5510_s14 }
  0x39   : > { %1393 = vmatprep.mubr.bf16.mxu1 %v6571_v45  ;;  %6501 = vmatpush3.bf16.msra.mxu1 %v6576_v47  ;;  %v6654_v45 = vld [vmem:[%s9243_s3 + $0x20] sm:$0xff]  }
  0x3a   : > { %6033 = vmatpush3.bf16.msra.mxu0 %v6576_v47  ;;  %6494 = vmatprep.subr.bf16.mxu1 %v6583_v52  ;;  %v6656_v47 = vld [vmem:[%s9243_s3 + $0x30] sm:$0xff]  }
  0x3b   : > { %6034 = vmatprep.subr.bf16.mxu0 %v6583_v52 }
  0x3d   : > { %6502 = vmatpush3.bf16.msra.mxu1 %v6584_v53 }
  0x3e   : > { %6035 = vmatpush3.bf16.msra.mxu0 %v6584_v53  ;;  %6495 = vmatprep.subr.bf16.mxu1 %v6591_v54 }
  0x3f   : > { %1297 = vmatmul.mubr.bf16.gmra.mrb[8].mxu0 %v6573_v48  ;;  %6036 = vmatprep.subr.bf16.mxu0 %v6591_v54  ;;  %v6657_v48 = vld [vmem:[%s9243_s3 + $0x38] sm:$0xff]  }
  0x40   : > { %1394 = vmatmul.mubr.bf16.gmra.mrb[8].mxu1 %v6574_v49  ;;  %1304 = vmatprep.mubr.bf16.mxu0 %v6577_v50 }
  0x41   : > { %1401 = vmatprep.mubr.bf16.mxu1 %v6579_v51  ;;  %6503 = vmatpush3.bf16.msra.mxu1 %v6592_v55  ;;  %v7782_v51 = vld [vmem:[%s9251_s11] ss:$0 sm:$0xff] }
  0x42   : > { %6037 = vmatpush3.bf16.msra.mxu0 %v6592_v55  ;;  %6496 = vmatprep.subr.bf16.mxu1 %v6599_v60 }
  0x43   : > { %6038 = vmatprep.subr.bf16.mxu0 %v6599_v60 }
  0x45   : > { %6504 = vmatpush3.bf16.msra.mxu1 %v6600_v61 }
  0x46   : > { %6039 = vmatpush3.bf16.msra.mxu0 %v6600_v61  ;;  %6497 = vmatprep.subr.bf16.mxu1 %v6607_v0 }
  0x47   : > { %1305 = vmatmul.mubr.bf16.gmra.mrb[12].mxu0 %v6581_v56  ;;  %6040 = vmatprep.subr.bf16.mxu0 %v6607_v0 }
  0x48   : > { %1402 = vmatmul.mubr.bf16.gmra.mrb[12].mxu1 %v6582_v57  ;;  %1312 = vmatprep.mubr.bf16.mxu0 %v6585_v58 }
  0x49   : > { %1409 = vmatprep.mubr.bf16.mxu1 %v6587_v59  ;;  %6505 = vmatpush3.bf16.msra.mxu1 %v6608_v1 }
  0x4a   : > { %6041 = vmatpush3.bf16.msra.mxu0 %v6608_v1  ;;  %6498 = vmatprep.subr.bf16.mxu1 %v6615_v4 }
  0x4b   : > { %6042 = vmatprep.subr.bf16.mxu0 %v6615_v4 }
  0x4d   : > { %6506 = vmatpush3.bf16.msra.mxu1 %v6616_v5 }
  0x4e   : > { %6043 = vmatpush3.bf16.msra.mxu0 %v6616_v5  ;;  %6233 = vmatprep.subr.bf16.mxu1 %v6623_v8 }
  0x4f   : > { %1313 = vmatmul.mubr.bf16.gmra.mrb[16].mxu0 %v6589_v62 }
  0x50   : > { %1410 = vmatmul.mubr.bf16.gmra.mrb[16].mxu1 %v6590_v63  ;;  %1320 = vmatprep.mubr.bf16.mxu0 %v6593_v2 }
  0x51   : > { %1417 = vmatprep.mubr.bf16.mxu1 %v6595_v3 }
  0x57   : > { %1321 = vmatmul.mubr.bf16.gmra.mrb[20].mxu0 %v6597_v6 }
  0x58   : > { %1418 = vmatmul.mubr.bf16.gmra.mrb[20].mxu1 %v6598_v7  ;;  %1328 = vmatprep.mubr.bf16.mxu0 %v6601_v9 }
  0x59   : > { %1425 = vmatprep.mubr.bf16.mxu1 %v6603_v10 }
  0x5f   : > { %1329 = vmatmul.mubr.bf16.gmra.mrb[24].mxu0 %v6605_v11 }
  0x60   : > { %1426 = vmatmul.mubr.bf16.gmra.mrb[24].mxu1 %v6606_v12  ;;  %1336 = vmatprep.mubr.bf16.mxu0 %v6609_v13 }
  0x61   : > { %1433 = vmatprep.mubr.bf16.mxu1 %v6611_v14 }
  0x67   : > { %1337 = vmatmul.mubr.bf16.gmra.mrb[28].mxu0 %v6613_v15 }
  0x68   : > { %1434 = vmatmul.mubr.bf16.gmra.mrb[28].mxu1 %v6614_v16  ;;  %1474 = vmatprep.mubr.bf16.mxu0 %v6619_v17  ;;  %v1966_v17 = vld [vmem:[%s9244_s4] sm:$0xff] }
  0x69   : > { %1522 = vmatprep.mubr.bf16.mxu1 %v6622_v18  ;;  %v1967_v18 = vld [vmem:[%s9244_s4 + $0x8] sm:$0xff] }
  0x6f   : > { %1475 = vmatmul.mubr.bf16.vlgmr.msra.gmra.mrb[32].mxu0 %v6617_v19  ;;  %v1968_v19 = vld [vmem:[%s9244_s4 + $0x10] sm:$0xff] }
  0x70   : > { %1523 = vmatmul.mubr.bf16.vlgmr.msra.gmra.mrb[32].mxu1 %v6620_v20  ;;  %1482 = vmatprep.mubr.bf16.mxu0 %v6624_v21 }
  0x71   : > { %6234 = vmatpush3.bf16.msra.mxu1 %v6623_v8  ;;  %1530 = vmatprep.mubr.bf16.mxu1 %v6626_v22  ;;  %v6475_v22 = vpack.c.bf16 %v1967_v18, %v1966_v17 }
  0x72   : > { %6251 = vmatprep.subr.bf16.mxu1 %v6650_v41 }
  0x73   : > { %6476 = vmatprep.subr.bf16.mxu0 %v6475_v22 }
  0x74   : > { %6478 = vmatpush3.bf16.msra.mxu0 %v6475_v22 }
  0x77   : > { %1483 = vmatmul.mubr.bf16.gmra.mrb[36].mxu0 %v6628_v23  ;;  %v1969_v23 = vld [vmem:[%s9244_s4 + $0x18] sm:$0xff] }
  0x78   : > { %1531 = vmatmul.mubr.bf16.gmra.mrb[36].mxu1 %v6629_v24  ;;  %1490 = vmatprep.mubr.bf16.mxu0 %v6630_v25 }
  0x79   : > { %6235 = vmatprep.mubr.msk.bf16.mxu1 %vm1223_vm0, %v6632_v26  ;;  %v6479_v26 = vpack.c.bf16 %v1969_v23, %v1968_v19 }
  0x7b   : > { %6480 = vmatprep.subr.bf16.mxu0 %v6479_v26 }
  0x7c   : > { %6482 = vmatpush3.bf16.msra.mxu0 %v6479_v26 }
  0x7f   : > { %1491 = vmatmul.mubr.bf16.gmra.mrb[40].mxu0 %v6633_v27 }
  0x80   : > { %6236 = vmatmul.mubr.msk.bf16.vlgmr.msra.gmra.mrb[40].mxu1 %vm1223_vm0, %v6634_v28  ;;  %1498 = vmatprep.mubr.bf16.mxu0 %v6635_v29 }
  0x81   : > { %6239 = vmatprep.mubr.msk.bf16.mxu1 %vm1223_vm0, %v6637_v30  ;;  %6252 = vmatpush3.bf16.msra.mxu1 %v6650_v41 }
  0x82   : > { %6253 = vmatprep.subr.bf16.mxu1 %v6651_v42 }
  0x85   : > { %6254 = vmatpush3.bf16.msra.mxu1 %v6651_v42 }
  0x86   : > { %6255 = vmatprep.subr.bf16.mxu1 %v6652_v43 }
  0x87   : > { %1499 = vmatmul.mubr.bf16.gmra.mrb[44].mxu0 %v6638_v31 }
  0x88   : > { %6240 = vmatmul.mubr.msk.bf16.gmra.mrb[44].mxu1 %vm1223_vm0, %v6639_v32  ;;  %1506 = vmatprep.mubr.bf16.mxu0 %v6640_v33 }
  0x89   : > { %6243 = vmatprep.mubr.msk.bf16.mxu1 %vm1223_vm0, %v6642_v34  ;;  %6256 = vmatpush3.bf16.msra.mxu1 %v6652_v43 }
  0x8a   : > { %6257 = vmatprep.subr.bf16.mxu1 %v6653_v44 }
  0x8d   : > { %6258 = vmatpush3.bf16.msra.mxu1 %v6653_v44 }
  0x8e   : > { %6259 = vmatprep.subr.bf16.mxu1 %v6654_v45 }
  0x8f   : > { %1507 = vmatmul.mubr.bf16.gmra.mrb[48].mxu0 %v6643_v35 }
  0x90   : > { %6244 = vmatmul.mubr.msk.bf16.gmra.mrb[48].mxu1 %vm1223_vm0, %v6644_v36  ;;  %1514 = vmatprep.mubr.bf16.mxu0 %v6645_v37 }
  0x91   : > { %6247 = vmatprep.mubr.msk.bf16.mxu1 %vm1223_vm0, %v6647_v38  ;;  %6260 = vmatpush3.bf16.msra.mxu1 %v6654_v45 }
  0x92   : > { %6261 = vmatprep.subr.bf16.mxu1 %v6655_v46 }
  0x95   : > { %6262 = vmatpush3.bf16.msra.mxu1 %v6655_v46 }
  0x96   : > { %6263 = vmatprep.subr.bf16.mxu1 %v6656_v47 }
  0x97   : > { %1515 = vmatmul.mubr.bf16.gmra.mrb[52].mxu0 %v6648_v39 }
  0x98   : > { %6248 = vmatmul.mubr.msk.bf16.gmra.mrb[52].mxu1 %vm1223_vm0, %v6649_v40 }
  0x99   : > { %6264 = vmatpush3.bf16.msra.mxu1 %v6656_v47 }
  0x9a   : > { %6265 = vmatprep.subr.bf16.mxu1 %v6657_v48 }
  0x9d   : > { %6266 = vmatpush3.bf16.msra.mxu1 %v6657_v48 }
 0x102   : > { %v5916_v49 = vpop.f32.mrb[0].mxu0 }
 0x103   : > { %v5980_v50 = vpop.f32.mrb[0].mxu1  ;;  %v5917_v52 = vpop.f32.mrb[1].mxu0 }
 0x104   : > { %v5918_v53 = vadd.f32 %v5917_v52, %v5916_v49  ;;  %v5981_v54 = vpop.f32.mrb[1].mxu1  ;;  %v5919_v55 = vpop.f32.mrb[2].mxu0 }
 0x105   : > { %v5982_v56 = vadd.f32 %v5981_v54, %v5980_v50  ;;  %v5983_v57 = vpop.f32.mrb[2].mxu1  ;;  %v5920_v58 = vpop.f32.mrb[3].mxu0 }
 0x106   : > { %v1283_v59 = vadd.f32 %v5918_v53, %v7782_v51  ;;  %v5921_v60 = vadd.f32 %v5920_v58, %v5919_v55  ;;  %v5984_v61 = vpop.f32.mrb[3].mxu1 }
 0x107   : > { %v5985_v62 = vadd.f32 %v5984_v61, %v5983_v57 }
 0x108   : > { %v7785_v63 = vadd.f32 %v5982_v56, %v1283_v59  ;;  %v1286_v0 = vadd.f32 %v5921_v60, %v7782_v51 }
 0x10a   : > { %v7788_v1 = vadd.f32 %v5985_v62, %v1286_v0  ;;  %v5922_v2 = vpop.f32.mrb[4].mxu0 }
 0x10b   : > { %v5986_v3 = vpop.f32.mrb[4].mxu1  ;;  %v5923_v4 = vpop.f32.mrb[5].mxu0 }
 0x10c   : > { %v5924_v5 = vadd.f32 %v5923_v4, %v5922_v2  ;;  %v5987_v6 = vpop.f32.mrb[5].mxu1  ;;  %v5925_v7 = vpop.f32.mrb[6].mxu0 }
 0x10d   : > { %v5988_v8 = vadd.f32 %v5987_v6, %v5986_v3  ;;  %v5989_v9 = vpop.f32.mrb[6].mxu1  ;;  %v5926_v10 = vpop.f32.mrb[7].mxu0 }
 0x10e   : > { %v1291_v11 = vadd.f32 %v5924_v5, %v7782_v51  ;;  %v5927_v12 = vadd.f32 %v5926_v10, %v5925_v7  ;;  %v5990_v13 = vpop.f32.mrb[7].mxu1 }
 0x10f   : > { %v5991_v14 = vadd.f32 %v5990_v13, %v5989_v9 }
 0x110   : > { %v7791_v15 = vadd.f32 %v5988_v8, %v1291_v11  ;;  %v1294_v16 = vadd.f32 %v5927_v12, %v7782_v51 }
 0x112   : > { %v7803_v20 = vadd.f32 %v5991_v14, %v1294_v16  ;;  %v5928_v21 = vpop.f32.mrb[8].mxu0 }
 0x113   : > { %v5992_v24 = vpop.f32.mrb[8].mxu1  ;;  %v5929_v25 = vpop.f32.mrb[9].mxu0 }
 0x114   : > { %v5930_v27 = vadd.f32 %v5929_v25, %v5928_v21  ;;  %v5993_v28 = vpop.f32.mrb[9].mxu1  ;;  %v5931_v29 = vpop.f32.mrb[10].mxu0 }
 0x115   : > { %v5994_v30 = vadd.f32 %v5993_v28, %v5992_v24  ;;  %v5995_v31 = vpop.f32.mrb[10].mxu1  ;;  %v5932_v32 = vpop.f32.mrb[11].mxu0 }
 0x116   : > { %v1299_v33 = vadd.f32 %v5930_v27, %v7782_v51  ;;  %v5933_v34 = vadd.f32 %v5932_v32, %v5931_v29  ;;  %v5996_v35 = vpop.f32.mrb[11].mxu1 }
 0x117   : > { %v5997_v36 = vadd.f32 %v5996_v35, %v5995_v31 }
 0x118   : > { %v7809_v37 = vadd.f32 %v5994_v30, %v1299_v33  ;;  %v1302_v38 = vadd.f32 %v5933_v34, %v7782_v51 }
 0x11a   : > { %v7812_v39 = vadd.f32 %v5997_v36, %v1302_v38  ;;  %v5934_v40 = vpop.f32.mrb[12].mxu0 }
 0x11b   : > { %v5998_v41 = vpop.f32.mrb[12].mxu1  ;;  %v5935_v42 = vpop.f32.mrb[13].mxu0 }
 0x11c   : > { %v5936_v43 = vadd.f32 %v5935_v42, %v5934_v40  ;;  %v5999_v44 = vpop.f32.mrb[13].mxu1  ;;  %v5937_v45 = vpop.f32.mrb[14].mxu0 }
 0x11d   : > { %v6000_v46 = vadd.f32 %v5999_v44, %v5998_v41  ;;  %v6001_v47 = vpop.f32.mrb[14].mxu1  ;;  %v5938_v48 = vpop.f32.mrb[15].mxu0 }
 0x11e   : > { %v1307_v49 = vadd.f32 %v5936_v43, %v7782_v51  ;;  %v5939_v50 = vadd.f32 %v5938_v48, %v5937_v45  ;;  %v6002_v52 = vpop.f32.mrb[15].mxu1 }
 0x11f   : > { %v6003_v53 = vadd.f32 %v6002_v52, %v6001_v47 }
 0x120   : > { %v7815_v54 = vadd.f32 %v6000_v46, %v1307_v49  ;;  %v1310_v55 = vadd.f32 %v5939_v50, %v7782_v51 }
 0x122   : > { %v7818_v56 = vadd.f32 %v6003_v53, %v1310_v55  ;;  %v5940_v57 = vpop.f32.mrb[16].mxu0 }
 0x123   : > { %v6004_v58 = vpop.f32.mrb[16].mxu1  ;;  %v5941_v59 = vpop.f32.mrb[17].mxu0 }
 0x124   : > { %v5942_v60 = vadd.f32 %v5941_v59, %v5940_v57  ;;  %v6005_v61 = vpop.f32.mrb[17].mxu1  ;;  %v5943_v62 = vpop.f32.mrb[18].mxu0 }
 0x125   : > { %v6006_v0 = vadd.f32 %v6005_v61, %v6004_v58  ;;  %v6007_v2 = vpop.f32.mrb[18].mxu1  ;;  %v5944_v3 = vpop.f32.mrb[19].mxu0 }
 0x126   : > { %v1315_v4 = vadd.f32 %v5942_v60, %v7782_v51  ;;  %v5945_v5 = vadd.f32 %v5944_v3, %v5943_v62  ;;  %v6008_v6 = vpop.f32.mrb[19].mxu1 }
 0x127   : > { %v6009_v7 = vadd.f32 %v6008_v6, %v6007_v2 }
 0x128   : > { %v7821_v8 = vadd.f32 %v6006_v0, %v1315_v4  ;;  %v1318_v9 = vadd.f32 %v5945_v5, %v7782_v51 }
 0x12a   : > { %v7824_v10 = vadd.f32 %v6009_v7, %v1318_v9  ;;  %v5946_v11 = vpop.f32.mrb[20].mxu0 }
 0x12b   : > { %v6010_v12 = vpop.f32.mrb[20].mxu1  ;;  %v5947_v13 = vpop.f32.mrb[21].mxu0 }
 0x12c   : > { %v5948_v14 = vadd.f32 %v5947_v13, %v5946_v11  ;;  %v6011_v16 = vpop.f32.mrb[21].mxu1  ;;  %v5949_v17 = vpop.f32.mrb[22].mxu0 }
 0x12d   : > { %v6012_v18 = vadd.f32 %v6011_v16, %v6010_v12  ;;  %v6013_v19 = vpop.f32.mrb[22].mxu1  ;;  %v5950_v21 = vpop.f32.mrb[23].mxu0 }
 0x12e   : > { %v1323_v22 = vadd.f32 %v5948_v14, %v7782_v51  ;;  %v5951_v23 = vadd.f32 %v5950_v21, %v5949_v17  ;;  %v6014_v24 = vpop.f32.mrb[23].mxu1 }
 0x12f   : > { %v6015_v25 = vadd.f32 %v6014_v24, %v6013_v19 }
 0x130   : > { %v7827_v26 = vadd.f32 %v6012_v18, %v1323_v22  ;;  %v1326_v27 = vadd.f32 %v5951_v23, %v7782_v51 }
 0x132   : > { %v7830_v28 = vadd.f32 %v6015_v25, %v1326_v27  ;;  %v5952_v29 = vpop.f32.mrb[24].mxu0 }
 0x133   : > { %v6016_v30 = vpop.f32.mrb[24].mxu1  ;;  %v5953_v31 = vpop.f32.mrb[25].mxu0 }
 0x134   : > { %v5954_v32 = vadd.f32 %v5953_v31, %v5952_v29  ;;  %v6017_v33 = vpop.f32.mrb[25].mxu1  ;;  %v5955_v34 = vpop.f32.mrb[26].mxu0 }
 0x135   : > { %v6018_v35 = vadd.f32 %v6017_v33, %v6016_v30  ;;  %v6019_v36 = vpop.f32.mrb[26].mxu1  ;;  %v5956_v38 = vpop.f32.mrb[27].mxu0 }
 0x136   : > { %v1331_v40 = vadd.f32 %v5954_v32, %v7782_v51  ;;  %v5957_v41 = vadd.f32 %v5956_v38, %v5955_v34  ;;  %v6020_v42 = vpop.f32.mrb[27].mxu1 }
 0x137   : > { %v6021_v43 = vadd.f32 %v6020_v42, %v6019_v36 }
 0x138   : > { %v1428_v44 = vadd.f32 %v6018_v35, %v1331_v40  ;;  %v1334_v45 = vadd.f32 %v5957_v41, %v7782_v51 }
 0x13a   : > { %v1431_v46 = vadd.f32 %v6021_v43, %v1334_v45  ;;  %v5958_v47 = vpop.f32.mrb[28].mxu0 }
 0x13b   : > { %v6022_v48 = vpop.f32.mrb[28].mxu1  ;;  %v5959_v49 = vpop.f32.mrb[29].mxu0 }
 0x13c   : > { %v5960_v50 = vadd.f32 %v5959_v49, %v5958_v47  ;;  %v6023_v52 = vpop.f32.mrb[29].mxu1  ;;  %v5961_v53 = vpop.f32.mrb[30].mxu0 }
 0x13d   : > { %v6024_v55 = vadd.f32 %v6023_v52, %v6022_v48  ;;  %v6025_v57 = vpop.f32.mrb[30].mxu1  ;;  %v5962_v58 = vpop.f32.mrb[31].mxu0 }
 0x13e   : > { %v1339_v59 = vadd.f32 %v5960_v50, %v7782_v51  ;;  %v5963_v60 = vadd.f32 %v5962_v58, %v5961_v53  ;;  %v6026_v61 = vpop.f32.mrb[31].mxu1 }
 0x13f   : > { %v6027_v62 = vadd.f32 %v6026_v61, %v6025_v57 }
 0x140   : > { %v1436_v0 = vadd.f32 %v6024_v55, %v1339_v59  ;;  %v1342_v2 = vadd.f32 %v5963_v60, %v7782_v51 }
 0x142   : > { %v1439_v3 = vadd.f32 %v6027_v62, %v1342_v2  ;;  %v6044_v4 = vpop.f32.mrb[32].mxu0 }
 0x143   : > { %v6080_v5 = vpop.f32.mrb[32].mxu1  ;;  %v6045_v6 = vpop.f32.mrb[33].mxu0 }
 0x144   : > { %v6046_v7 = vadd.f32 %v6045_v6, %v6044_v4  ;;  %v6081_v9 = vpop.f32.mrb[33].mxu1  ;;  %v6047_v11 = vpop.f32.mrb[34].mxu0 }
 0x145   : > { %v6082_v12 = vadd.f32 %v6081_v9, %v6080_v5  ;;  %v6083_v13 = vpop.f32.mrb[34].mxu1  ;;  %v6048_v14 = vpop.f32.mrb[35].mxu0 }
 0x146   : > { %v6049_v16 = vadd.f32 %v6048_v14, %v6047_v11  ;;  %v6084_v17 = vpop.f32.mrb[35].mxu1  ;;  %v1477_v18 = vadd.f32 %v6046_v7, %v7785_v63 }
 0x147   : > { %v6085_v19 = vadd.f32 %v6084_v17, %v6083_v13  ;;  %v7837_v21 = vadd.f32 %v6082_v12, %v1428_v44 }
 0x148   : > { %v1480_v22 = vadd.f32 %v6049_v16, %v7788_v1 }
 0x149   : > { %v7840_v51 = vadd.f32 %v6085_v19, %v1431_v46 }
 0x14a   : > { %v6050_v23 = vpop.f32.mrb[36].mxu0 }
 0x14b   : > { %v6086_v24 = vpop.f32.mrb[36].mxu1  ;;  %v6051_v25 = vpop.f32.mrb[37].mxu0 }
 0x14c   : > { %v6052_v27 = vadd.f32 %v6051_v25, %v6050_v23  ;;  %v6087_v29 = vpop.f32.mrb[37].mxu1  ;;  %v6053_v30 = vpop.f32.mrb[38].mxu0 }
 0x14d   : > { %v6088_v31 = vadd.f32 %v6087_v29, %v6086_v24  ;;  %v6089_v32 = vpop.f32.mrb[38].mxu1  ;;  %v6054_v33 = vpop.f32.mrb[39].mxu0 }
 0x14e   : > { %v6055_v34 = vadd.f32 %v6054_v33, %v6053_v30  ;;  %v6090_v35 = vpop.f32.mrb[39].mxu1  ;;  %v1485_v63 = vadd.f32 %v6052_v27, %v7791_v15 }
 0x14f   : > { %v6091_v36 = vadd.f32 %v6090_v35, %v6089_v32  ;;  %v7843_v38 = vadd.f32 %v6088_v31, %v1436_v0 }
 0x150   : > { %v1488_v1 = vadd.f32 %v6055_v34, %v7803_v20 }
 0x151   : > { %v7846_v40 = vadd.f32 %v6091_v36, %v1439_v3 }
 0x152   : > { %v6056_v41 = vpop.f32.mrb[40].mxu0 }
 0x153   : > { %v6237_v42 = vpop.f32.mrb[40].mxu1  ;;  %v6057_v43 = vpop.f32.mrb[41].mxu0 }
 0x154   : > { %v1582_v44 = vadd.f32 %v6237_v42, %v1485_v63  ;;  %v6058_v45 = vadd.f32 %v6057_v43, %v6056_v41  ;;  %v1573_v46 = vpop.f32.mrb[41].mxu1  ;;  %v6059_v47 = vpop.f32.mrb[42].mxu0 }
 0x155   : > { %v1574_v48 = vadd.f32 %v1573_v46, %v1477_v18  ;;  %v6238_v49 = vpop.f32.mrb[42].mxu1  ;;  %v6060_v50 = vpop.f32.mrb[43].mxu0 }
 0x156   : > { %v1654_v52 = vmul.f32 0.70710677, %v1582_v44  ;;  %v1585_v53 = vadd.f32 %v6238_v49, %v1488_v1  ;;  %v6061_v15 = vadd.f32 %v6060_v50, %v6059_v47  ;;  %v1576_v55 = vpop.f32.mrb[43].mxu1  ;;  %v1493_v20 = vadd.f32 %v6058_v45, %v7809_v37 }
 0x157   : > { %v1652_v57 = vmul.f32 0.70710677, %v1574_v48  ;;  %v1577_v58 = vadd.f32 %v1576_v55, %v1480_v22  ;;  %v1638_v30 = vmul.f32 0.5, %v1582_v44  ;;  %v1636_v35 = vmul.f32 0.5, %v1574_v48 }
 0x158   : > { %6740 = verf.f32 %v1654_v52  ;;  %v1655_v59 = vmul.f32 0.70710677, %v1585_v53  ;;  %v1496_v60 = vadd.f32 %v6061_v15, %v7812_v39  ;;  %v1639_v63 = vmul.f32 0.5, %v1585_v53 }
 0x159   : > { %6742 = verf.f32 %v1652_v57  ;;  %v1653_v61 = vmul.f32 0.70710677, %v1577_v58  ;;  %v1637_v43 = vmul.f32 0.5, %v1577_v58 }
 0x15a   : > { %6744 = verf.f32 %v1655_v59  ;;  %v6062_v62 = vpop.f32.mrb[44].mxu0 }
 0x15b   : > { %6746 = verf.f32 %v1653_v61  ;;  %v6241_v0 = vpop.f32.mrb[44].mxu1  ;;  %v6063_v2 = vpop.f32.mrb[45].mxu0 }
 0x15c   : > { %v6064_v3 = vadd.f32 %v6063_v2, %v6062_v62  ;;  %v1589_v4 = vpop.f32.mrb[45].mxu1  ;;  %v6065_v5 = vpop.f32.mrb[46].mxu0 }
 0x15d   : > { %v7850_v6 = vadd.f32 %v1589_v4, %v1493_v20  ;;  %v6242_v7 = vpop.f32.mrb[46].mxu1  ;;  %v6066_v9 = vpop.f32.mrb[47].mxu0 }
 0x15e   : > { %v1501_v37 = vadd.f32 %v6064_v3, %v7815_v54  ;;  %v6067_v11 = vadd.f32 %v6066_v9, %v6065_v5  ;;  %v1592_v12 = vpop.f32.mrb[47].mxu1 }
 0x15f   : > { %v1656_v39 = vmul.f32 0.70710677, %v7850_v6  ;;  %v1593_v13 = vadd.f32 %v1592_v12, %v1496_v60 }
 0x160   : > { %v7854_v14 = vadd.f32 %v6241_v0, %v1501_v37  ;;  %v1504_v16 = vadd.f32 %v6067_v11, %v7818_v56 }
 0x161   : > { %6748 = verf.f32 %v1656_v39  ;;  %v1657_v17 = vmul.f32 0.70710677, %v1593_v13  ;;  %v1641_v12 = vmul.f32 0.5, %v1593_v13 }
 0x162   : > { %v6741_v18 = vpop.eup %6740  ;;  %v1658_v19 = vmul.f32 0.70710677, %v7854_v14  ;;  %v7858_v22 = vadd.f32 %v6242_v7, %v1504_v16  ;;  %v6068_v23 = vpop.f32.mrb[48].mxu0 }
 0x163   : > { %v6743_v24 = vpop.eup %6742  ;;  %v1686_v25 = vadd.f32 1.0, %v6741_v18  ;;  %6750 = verf.f32 %v1657_v17  ;;  %v6069_v54 = vpop.f32.mrb[49].mxu0 }
 0x164   : > { %v7860_v27 = vpop.f32.mrb[48].mxu1  ;;  %v6745_v29 = vpop.eup %6744  ;;  %v1684_v31 = vadd.f32 1.0, %v6743_v24  ;;  %6752 = verf.f32 %v1658_v19  ;;  %v1659_v56 = vmul.f32 0.70710677, %v7858_v22  ;;  %v6070_v1 = vadd.f32 %v6069_v54, %v6068_v23 }
 0x165   : > { %v6071_v32 = vpop.f32.mrb[50].mxu0  ;;  %v1605_v33 = vpop.f32.mrb[49].mxu1  ;;  %v1687_v36 = vadd.f32 1.0, %v6745_v29  ;;  %v1702_v49 = vmul.f32 %v1686_v25, %v1638_v30 }
 0x166   : > { %v6747_v34 = vpop.eup %6746  ;;  %v6072_v41 = vpop.f32.mrb[51].mxu0  ;;  %6754 = verf.f32 %v1659_v56  ;;  %v1509_v50 = vadd.f32 %v6070_v1, %v7821_v8  ;;  %v1700_v52 = vmul.f32 %v1684_v31, %v1636_v35 }
 0x167   : > { %v6246_v42 = vpop.f32.mrb[50].mxu1  ;;  %v1685_v45 = vadd.f32 1.0, %v6747_v34  ;;  %v6073_v46 = vadd.f32 %v6072_v41, %v6071_v32  ;;  %v1703_v44 = vmul.f32 %v1687_v36, %v1639_v63  ;;  %v1643_v32 = vmul.f32 0.5, %v7858_v22 }
 0x168   : > { %v1608_v47 = vpop.f32.mrb[51].mxu1  ;;  %v1606_v48 = vadd.f32 %v1605_v33, %v1509_v50 }
 0x169   : > { %v1701_v15 = vmul.f32 %v1685_v45, %v1637_v43  ;;  %v1512_v55 = vadd.f32 %v6073_v46, %v7824_v10  ;;  %v1733_v57 = vpack.c.bf16 %v1703_v44, %v1702_v49 }
 0x16a   : > { %v6074_v20 = vpop.f32.mrb[52].mxu0  ;;  %v1660_v61 = vmul.f32 0.70710677, %v1606_v48 }
 0x16b   : > { %v1609_v53 = vadd.f32 %v1608_v47, %v1512_v55  ;;  %v1732_v59 = vpack.c.bf16 %v1701_v15, %v1700_v52  ;;  %v6749_v60 = vpop.eup %6748  ;;  %v6249_v58 = vpop.f32.mrb[52].mxu1 }
 0x16c   : > { %v6075_v62 = vpop.f32.mrb[53].mxu0  ;;  %v7866_v2 = vadd.f32 %v6249_v58, %v7843_v38  ;;  %v1621_v3 = vpop.f32.mrb[53].mxu1  ;;  %6756 = verf.f32 %v1660_v61  ;;  %v1688_v11 = vadd.f32 1.0, %v6749_v60  ;;  %v1640_v38 = vmul.f32 0.5, %v7850_v6 }
 0x16d   : > { %v1661_v0 = vmul.f32 0.70710677, %v1609_v53  ;;  %6267 = vmatprep.mubr.bf16.mxu1 %v1732_v59  ;;  %v6077_v8 = vpop.f32.mrb[54].mxu0  ;;  %v6751_v4 = vpop.eup %6750  ;;  %v6076_v5 = vadd.f32 %v6075_v62, %v6074_v20  ;;  %v1622_v10 = vadd.f32 %v1621_v3, %v7837_v21 }
 0x16e   : > { %v6250_v7 = vpop.f32.mrb[54].mxu1  ;;  %6268 = vmatmul.mubr.bf16.vlgmr.msra.gmra.mrb[56].mxu1 %v1733_v57  ;;  %v6078_v9 = vpop.f32.mrb[55].mxu0  ;;  %v1689_v39 = vadd.f32 1.0, %v6751_v4  ;;  %v1666_v17 = vmul.f32 0.70710677, %v7866_v2  ;;  %v1704_v31 = vmul.f32 %v1688_v11, %v1640_v38  ;;  %v1650_v15 = vmul.f32 0.5, %v7866_v2 }
 0x16f   : > { %v6753_v37 = vpop.eup %6752  ;;  %6758 = verf.f32 %v1661_v0  ;;  %v1624_v16 = vpop.f32.mrb[55].mxu1  ;;  %v1517_v18 = vadd.f32 %v6076_v5, %v7827_v26  ;;  %v1664_v19 = vmul.f32 0.70710677, %v1622_v10  ;;  %v1633_v21 = vadd.f32 %v6250_v7, %v7846_v40  ;;  %v7888_v38 = vld [vmem:[%s9251_s11 + $0x1] ss:$0 sm:$0xff] }
 0x170   : > { %v6755_v23 = vpop.eup %6754  ;;  %v1705_v24 = vmul.f32 %v1689_v39, %v1641_v12  ;;  %v6079_v25 = vadd.f32 %v6078_v9, %v6077_v8  ;;  %v1625_v54 = vadd.f32 %v1624_v16, %v7840_v51  ;;  %6760 = verf.f32 %v1666_v17  ;;  %v2246_v39 = vld [vmem:[%s9245_s5 + $0x8] sm:$0xff] }
 0x171   : > { %v1614_v13 = vadd.f32 %v7860_v27, %v1517_v18  ;;  %v1690_v29 = vadd.f32 1.0, %v6753_v37  ;;  %v1691_v30 = vadd.f32 1.0, %v6755_v23  ;;  %6762 = verf.f32 %v1664_v19 }
 0x172   : > { %v1667_v6 = vmul.f32 0.70710677, %v1633_v21  ;;  %v1520_v56 = vadd.f32 %v6079_v25, %v7830_v28  ;;  %v1642_v26 = vmul.f32 0.5, %v7854_v14  ;;  %v1665_v34 = vmul.f32 0.70710677, %v1625_v54 }
 0x173   : > { %v1662_v33 = vmul.f32 0.70710677, %v1614_v13  ;;  %v1734_v35 = vpack.c.bf16 %v1705_v24, %v1704_v31  ;;  %v1707_v63 = vmul.f32 %v1691_v30, %v1643_v32  ;;  %v1644_v28 = vmul.f32 0.5, %v1606_v48 }
 0x174   : > { %6764 = verf.f32 %v1667_v6  ;;  %v1617_v40 = vadd.f32 %v6246_v42, %v1520_v56  ;;  %v1706_v51 = vmul.f32 %v1690_v29, %v1642_v26  ;;  %v1645_v14 = vmul.f32 0.5, %v1609_v53 }
 0x175   : > { %6766 = verf.f32 %v1662_v33  ;;  %6271 = vmatprep.mubr.bf16.mxu1 %v1734_v35  ;;  %v1651_v57 = vmul.f32 0.5, %v1633_v21  ;;  %v1648_v60 = vmul.f32 0.5, %v1622_v10  ;;  %v1649_v48 = vmul.f32 0.5, %v1625_v54  ;;  %v2245_v10 = vld [vmem:[%s9245_s5] sm:$0xff] }
 0x176   : > { %v1663_v27 = vmul.f32 0.70710677, %v1617_v40  ;;  %6768 = verf.f32 %v1665_v34  ;;  %v6757_v36 = vpop.eup %6756  ;;  %v1735_v1 = vpack.c.bf16 %v1707_v63, %v1706_v51  ;;  %v1646_v3 = vmul.f32 0.5, %v1614_v13 }
 0x177   : > { %v1692_v43 = vadd.f32 1.0, %v6757_v36  ;;  %v1647_v8 = vmul.f32 0.5, %v1617_v40  ;;  %v6483_v16 = vpack.c.bf16 %v2246_v39, %v2245_v10 }
 0x178   : > { %6770 = verf.f32 %v1663_v27  ;;  %6272 = vmatmul.mubr.bf16.gmra.mrb[60].mxu1 %v1735_v1 }
 0x179   : > { %v6759_v41 = vpop.eup %6758  ;;  %v1708_v46 = vmul.f32 %v1692_v43, %v1644_v28  ;;  %6484 = vmatprep.subr.bf16.mxu1 %v6483_v16 }
 0x17a   : > { %v1693_v45 = vadd.f32 1.0, %v6759_v41  ;;  %v6761_v22 = vpop.eup %6760  ;;  %6486 = vmatpush3.bf16.msra.mxu1 %v6483_v16 }
 0x17b   : > { %v6763_v42 = vpop.eup %6762  ;;  %v1698_v49 = vadd.f32 1.0, %v6761_v22 }
 0x17c   : > { %v1709_v47 = vmul.f32 %v1693_v45, %v1645_v14  ;;  %v1696_v55 = vadd.f32 1.0, %v6763_v42 }
 0x17d   : > { %v1714_v53 = vmul.f32 %v1698_v49, %v1650_v15 }
 0x17e   : > { %v1736_v44 = vpack.c.bf16 %v1709_v47, %v1708_v46  ;;  %v6765_v50 = vpop.eup %6764  ;;  %v1712_v4 = vmul.f32 %v1696_v55, %v1648_v60 }
 0x17f   : > { %v6767_v52 = vpop.eup %6766  ;;  %v1699_v20 = vadd.f32 1.0, %v6765_v50 }
 0x180   : > { %6275 = vmatprep.mubr.bf16.mxu1 %v1736_v44  ;;  %v6769_v59 = vpop.eup %6768  ;;  %v1694_v62 = vadd.f32 1.0, %v6767_v52 }
 0x181   : > { %v1715_v61 = vmul.f32 %v1699_v20, %v1651_v57  ;;  %v1697_v58 = vadd.f32 1.0, %v6769_v59 }
 0x182   : > { %v6771_v0 = vpop.eup %6770  ;;  %v1710_v37 = vmul.f32 %v1694_v62, %v1646_v3 }
 0x183   : > { %v1713_v5 = vmul.f32 %v1697_v58, %v1649_v48  ;;  %v1695_v7 = vadd.f32 1.0, %v6771_v0  ;;  %v1739_v9 = vpack.c.bf16 %v1715_v61, %v1714_v53 }
 0x185   : > { %v1711_v2 = vmul.f32 %v1695_v7, %v1647_v8  ;;  %v1738_v11 = vpack.c.bf16 %v1713_v5, %v1712_v4 }
 0x187   : > { %v1737_v12 = vpack.c.bf16 %v1711_v2, %v1710_v37 }
 0x189   : > { %6276 = vmatmul.mubr.bf16.gmra.mrb[64].mxu1 %v1737_v12 }
 0x18a   : > { %6279 = vmatprep.mubr.bf16.mxu1 %v1738_v11 }
 0x191   : > { %6280 = vmatmul.mubr.bf16.gmra.mrb[68].mxu1 %v1739_v9 }
 0x241   : > { %v6269_v17 = vpop.f32.mrb[56].mxu1 }
 0x242   : > { %v1832_v18 = vadd.f32 %v6269_v17, %v7888_v38  ;;  %v1823_v19 = vpop.f32.mrb[57].mxu1 }
 0x243   : > { %v1824_v23 = vadd.f32 %v1823_v19, %v7888_v38  ;;  %v6270_v24 = vpop.f32.mrb[58].mxu1 }
 0x244   : > { %v1904_v21 = vmul.f32 0.70710677, %v1832_v18  ;;  %v1835_v25 = vadd.f32 %v6270_v24, %v7888_v38  ;;  %v1826_v54 = vpop.f32.mrb[59].mxu1  ;;  %v1888_v49 = vmul.f32 0.5, %v1832_v18 }
 0x245   : > { %v1902_v13 = vmul.f32 0.70710677, %v1824_v23  ;;  %v1827_v29 = vadd.f32 %v1826_v54, %v7888_v38  ;;  %v1886_v41 = vmul.f32 0.5, %v1824_v23 }
 0x246   : > { %6772 = verf.f32 %v1904_v21  ;;  %v1905_v30 = vmul.f32 0.70710677, %v1835_v25  ;;  %v1889_v15 = vmul.f32 0.5, %v1835_v25 }
 0x247   : > { %6774 = verf.f32 %v1902_v13  ;;  %v1903_v31 = vmul.f32 0.70710677, %v1827_v29  ;;  %v1887_v46 = vmul.f32 0.5, %v1827_v29 }
 0x248   : > { %6776 = verf.f32 %v1905_v30 }
 0x249   : > { %6778 = verf.f32 %v1903_v31 }
 0x24b   : > { %v6273_v6 = vpop.f32.mrb[60].mxu1 }
 0x24c   : > { %v1848_v56 = vadd.f32 %v6273_v6, %v7888_v38  ;;  %v1839_v26 = vpop.f32.mrb[61].mxu1 }
 0x24d   : > { %v1840_v32 = vadd.f32 %v1839_v26, %v7888_v38  ;;  %v6274_v33 = vpop.f32.mrb[62].mxu1 }
 0x24e   : > { %v1908_v40 = vmul.f32 0.70710677, %v1848_v56  ;;  %v1851_v35 = vadd.f32 %v6274_v33, %v7888_v38  ;;  %v1842_v51 = vpop.f32.mrb[63].mxu1  ;;  %v1892_v12 = vmul.f32 0.5, %v1848_v56 }
 0x24f   : > { %v1906_v27 = vmul.f32 0.70710677, %v1840_v32  ;;  %v1843_v36 = vadd.f32 %v1842_v51, %v7888_v38  ;;  %v1890_v60 = vmul.f32 0.5, %v1840_v32 }
 0x250   : > { %v6773_v34 = vpop.eup %6772  ;;  %6780 = verf.f32 %v1908_v40  ;;  %v1909_v28 = vmul.f32 0.70710677, %v1851_v35  ;;  %v1893_v23 = vmul.f32 0.5, %v1851_v35 }
 0x251   : > { %v6775_v63 = vpop.eup %6774  ;;  %v1936_v45 = vadd.f32 1.0, %v6773_v34  ;;  %6782 = verf.f32 %v1906_v27  ;;  %v1907_v42 = vmul.f32 0.70710677, %v1843_v36  ;;  %v1891_v37 = vmul.f32 0.5, %v1843_v36 }
 0x252   : > { %v6777_v1 = vpop.eup %6776  ;;  %v1934_v43 = vadd.f32 1.0, %v6775_v63  ;;  %6784 = verf.f32 %v1909_v28 }
 0x253   : > { %v6779_v14 = vpop.eup %6778  ;;  %v1937_v44 = vadd.f32 1.0, %v6777_v1  ;;  %6786 = verf.f32 %v1907_v42  ;;  %v1952_v52 = vmul.f32 %v1936_v45, %v1888_v49 }
 0x254   : > { %v1950_v22 = vmul.f32 %v1934_v43, %v1886_v41  ;;  %v1935_v47 = vadd.f32 1.0, %v6779_v14 }
 0x255   : > { %v1953_v55 = vmul.f32 %v1937_v44, %v1889_v15 }
 0x256   : > { %v1951_v50 = vmul.f32 %v1935_v47, %v1887_v46  ;;  %6291 = vmatprep.mubr.msk.f32.mxu0 %vm1971_vm1, %v1950_v22 }
 0x258   : > { %6292 = vmatmul.mubr.msk.f32.vlgmr.msra.gmra.mrb[56].mxu0 %vm1971_vm1, %v1951_v50 }
 0x259   : > { %6294 = vmatprep.mubr.msk.f32.mxu0 %vm1971_vm1, %v1952_v52 }
 0x25a   : > { %v6781_v57 = vpop.eup %6780 }
 0x25b   : > { %v6783_v20 = vpop.eup %6782  ;;  %v1940_v8 = vadd.f32 1.0, %v6781_v57 }
 0x25c   : > { %6295 = vmatmul.mubr.msk.f32.gmra.mrb[58].mxu0 %vm1971_vm1, %v1953_v55  ;;  %v6277_v59 = vpop.f32.mrb[64].mxu1  ;;  %v1938_v48 = vadd.f32 1.0, %v6783_v20  ;;  %v6785_v58 = vpop.eup %6784 }
 0x25d   : > { %v1864_v53 = vadd.f32 %v6277_v59, %v7888_v38  ;;  %v1855_v61 = vpop.f32.mrb[65].mxu1  ;;  %v6787_v3 = vpop.eup %6786  ;;  %v1941_v16 = vadd.f32 1.0, %v6785_v58  ;;  %v1956_v18 = vmul.f32 %v1940_v8, %v1892_v12 }
 0x25e   : > { %v1856_v62 = vadd.f32 %v1855_v61, %v7888_v38  ;;  %v6278_v0 = vpop.f32.mrb[66].mxu1  ;;  %v1954_v4 = vmul.f32 %v1938_v48, %v1890_v60  ;;  %v1939_v2 = vadd.f32 1.0, %v6787_v3 }
 0x25f   : > { %v1912_v5 = vmul.f32 0.70710677, %v1864_v53  ;;  %v1867_v7 = vadd.f32 %v6278_v0, %v7888_v38  ;;  %v1858_v9 = vpop.f32.mrb[67].mxu1  ;;  %v1957_v54 = vmul.f32 %v1941_v16, %v1893_v23  ;;  %v1896_v28 = vmul.f32 0.5, %v1864_v53 }
 0x260   : > { %v1910_v11 = vmul.f32 0.70710677, %v1856_v62  ;;  %v1859_v39 = vadd.f32 %v1858_v9, %v7888_v38  ;;  %6297 = vmatprep.mubr.msk.f32.mxu0 %vm1971_vm1, %v1954_v4  ;;  %v1955_v17 = vmul.f32 %v1939_v2, %v1891_v37  ;;  %v1894_v35 = vmul.f32 0.5, %v1856_v62  ;;  %v7925_v62 = vld [vmem:[%s9251_s11 + $0x2] ss:$0 sm:$0xff] }
 0x261   : > { %6788 = verf.f32 %v1912_v5  ;;  %v1913_v10 = vmul.f32 0.70710677, %v1867_v7  ;;  %v1897_v47 = vmul.f32 0.5, %v1867_v7 }
 0x262   : > { %6790 = verf.f32 %v1910_v11  ;;  %v1911_v19 = vmul.f32 0.70710677, %v1859_v39  ;;  %6298 = vmatmul.mubr.msk.f32.gmra.mrb[60].mxu0 %vm1971_vm1, %v1955_v17  ;;  %v1895_v41 = vmul.f32 0.5, %v1859_v39 }
 0x263   : > { %6792 = verf.f32 %v1913_v10  ;;  %6300 = vmatprep.mubr.msk.f32.mxu0 %vm1971_vm1, %v1956_v18 }
 0x264   : > { %v6281_v24 = vpop.f32.mrb[68].mxu1  ;;  %6794 = verf.f32 %v1911_v19 }
 0x265   : > { %v1880_v21 = vadd.f32 %v6281_v24, %v7888_v38  ;;  %v1871_v25 = vpop.f32.mrb[69].mxu1 }
 0x266   : > { %v1872_v13 = vadd.f32 %v1871_v25, %v7888_v38  ;;  %v6282_v29 = vpop.f32.mrb[70].mxu1  ;;  %6301 = vmatmul.mubr.msk.f32.gmra.mrb[62].mxu0 %vm1971_vm1, %v1957_v54 }
 0x267   : > { %v1916_v30 = vmul.f32 0.70710677, %v1880_v21  ;;  %v1883_v31 = vadd.f32 %v6282_v29, %v7888_v38  ;;  %v1874_v6 = vpop.f32.mrb[71].mxu1  ;;  %v1900_v59 = vmul.f32 0.5, %v1880_v21 }
 0x268   : > { %v1914_v56 = vmul.f32 0.70710677, %v1872_v13  ;;  %v1875_v26 = vadd.f32 %v1874_v6, %v7888_v38  ;;  %v1898_v42 = vmul.f32 0.5, %v1872_v13 }
 0x269   : > { %6796 = verf.f32 %v1916_v30  ;;  %v1917_v32 = vmul.f32 0.70710677, %v1883_v31  ;;  %v1901_v61 = vmul.f32 0.5, %v1883_v31 }
 0x26a   : > { %6798 = verf.f32 %v1914_v56  ;;  %v1915_v33 = vmul.f32 0.70710677, %v1875_v26  ;;  %v1899_v57 = vmul.f32 0.5, %v1875_v26 }
 0x26b   : > { %v6789_v34 = vpop.eup %6788 }
 0x26c   : > { %v6791_v40 = vpop.eup %6790  ;;  %6800 = verf.f32 %v1915_v33  ;;  %v1944_v36 = vadd.f32 1.0, %v6789_v34 }
 0x26d   : > { %v1942_v51 = vadd.f32 1.0, %v6791_v40  ;;  %6802 = verf.f32 %v1917_v32  ;;  %v6793_v63 = vpop.eup %6792 }
 0x26e   : > { %v6795_v27 = vpop.eup %6794  ;;  %v1945_v38 = vadd.f32 1.0, %v6793_v63  ;;  %v1960_v22 = vmul.f32 %v1944_v36, %v1896_v28 }
 0x26f   : > { %v1958_v1 = vmul.f32 %v1942_v51, %v1894_v35  ;;  %v1943_v43 = vadd.f32 1.0, %v6795_v27 }
 0x270   : > { %v1961_v50 = vmul.f32 %v1945_v38, %v1897_v47 }
 0x271   : > { %6303 = vmatprep.mubr.msk.f32.mxu0 %vm1971_vm1, %v1958_v1  ;;  %v1959_v14 = vmul.f32 %v1943_v43, %v1895_v41 }
 0x273   : > { %v6797_v45 = vpop.eup %6796  ;;  %6304 = vmatmul.mubr.msk.f32.gmra.mrb[64].mxu0 %vm1971_vm1, %v1959_v14 }
 0x274   : > { %v6799_v46 = vpop.eup %6798  ;;  %6306 = vmatprep.mubr.msk.f32.mxu0 %vm1971_vm1, %v1960_v22  ;;  %v1948_v15 = vadd.f32 1.0, %v6797_v45 }
 0x275   : > { %v1946_v49 = vadd.f32 1.0, %v6799_v46 }
 0x276   : > { %v6801_v44 = vpop.eup %6800  ;;  %v1964_v53 = vmul.f32 %v1948_v15, %v1900_v59 }
 0x277   : > { %v6803_v52 = vpop.eup %6802  ;;  %v1962_v55 = vmul.f32 %v1946_v49, %v1898_v42  ;;  %v1947_v20 = vadd.f32 1.0, %v6801_v44  ;;  %6307 = vmatmul.mubr.msk.f32.gmra.mrb[66].mxu0 %vm1971_vm1, %v1961_v50 }
 0x278   : > { %v1949_v48 = vadd.f32 1.0, %v6803_v52 }
 0x279   : > { %v1963_v60 = vmul.f32 %v1947_v20, %v1899_v57  ;;  %6309 = vmatprep.mubr.msk.f32.mxu0 %vm1971_vm1, %v1962_v55 }
 0x27a   : > { %v1965_v58 = vmul.f32 %v1949_v48, %v1901_v61 }
 0x27b   : > { %6310 = vmatmul.mubr.msk.f32.gmra.mrb[68].mxu0 %vm1971_vm1, %v1963_v60 }
 0x27c   : > { %6312 = vmatprep.mubr.msk.f32.mxu0 %vm1971_vm1, %v1964_v53 }
 0x27f   : > { %6313 = vmatmul.mubr.msk.f32.gmra.mrb[70].mxu0 %vm1971_vm1, %v1965_v58 }
 0x32b   : > { %v6293_v0 = vpop.f32.mrb[56].mxu0 }
 0x32c   : > { %v2092_v3 = vadd.f32 %v6293_v0, %v7925_v62  ;;  %v2086_v8 = vpop.f32.mrb[57].mxu0 }
 0x32d   : > { %v2087_v4 = vadd.f32 %v2086_v8, %v7925_v62 }
 0x32e   : > { %v2182_v5 = vmul.f32 0.70710677, %v2092_v3  ;;  %v2166_v30 = vmul.f32 0.5, %v2092_v3 }
 0x32f   : > { %v2181_v7 = vmul.f32 0.70710677, %v2087_v4  ;;  %v6296_v9 = vpop.f32.mrb[58].mxu0  ;;  %v2165_v25 = vmul.f32 0.5, %v2087_v4 }
 0x330   : > { %6804 = verf.f32 %v2182_v5  ;;  %v2102_v37 = vadd.f32 %v6296_v9, %v7925_v62  ;;  %v2096_v2 = vpop.f32.mrb[59].mxu0 }
 0x331   : > { %6806 = verf.f32 %v2181_v7  ;;  %v2097_v11 = vadd.f32 %v2096_v2, %v7925_v62 }
 0x332   : > { %v2184_v12 = vmul.f32 0.70710677, %v2102_v37  ;;  %v2168_v36 = vmul.f32 0.5, %v2102_v37 }
 0x333   : > { %v2183_v10 = vmul.f32 0.70710677, %v2097_v11  ;;  %v2167_v51 = vmul.f32 0.5, %v2097_v11 }
 0x334   : > { %6808 = verf.f32 %v2184_v12 }
 0x335   : > { %6810 = verf.f32 %v2183_v10  ;;  %v6299_v39 = vpop.f32.mrb[60].mxu0 }
 0x336   : > { %v2112_v16 = vadd.f32 %v6299_v39, %v7925_v62  ;;  %v2106_v17 = vpop.f32.mrb[61].mxu0 }
 0x337   : > { %v2107_v19 = vadd.f32 %v2106_v17, %v7925_v62 }
 0x338   : > { %v2186_v21 = vmul.f32 0.70710677, %v2112_v16  ;;  %v2170_v42 = vmul.f32 0.5, %v2112_v16 }
 0x339   : > { %v2185_v13 = vmul.f32 0.70710677, %v2107_v19  ;;  %v6302_v29 = vpop.f32.mrb[62].mxu0  ;;  %v2169_v45 = vmul.f32 0.5, %v2107_v19 }
 0x33a   : > { %v6805_v18 = vpop.eup %6804  ;;  %6812 = verf.f32 %v2186_v21  ;;  %v2122_v31 = vadd.f32 %v6302_v29, %v7925_v62  ;;  %v2116_v6 = vpop.f32.mrb[63].mxu0 }
 0x33b   : > { %v6807_v23 = vpop.eup %6806  ;;  %v2214_v24 = vadd.f32 1.0, %v6805_v18  ;;  %6814 = verf.f32 %v2185_v13  ;;  %v2117_v32 = vadd.f32 %v2116_v6, %v7925_v62 }
 0x33c   : > { %v2213_v54 = vadd.f32 1.0, %v6807_v23  ;;  %v2188_v35 = vmul.f32 0.70710677, %v2122_v31  ;;  %v2172_v58 = vmul.f32 0.5, %v2122_v31 }
 0x33d   : > { %v2230_v34 = vmul.f32 %v2214_v24, %v2166_v30  ;;  %v2187_v27 = vmul.f32 0.70710677, %v2117_v32  ;;  %v2171_v60 = vmul.f32 0.5, %v2117_v32 }
 0x33e   : > { %v6809_v56 = vpop.eup %6808  ;;  %v2229_v26 = vmul.f32 %v2213_v54, %v2165_v25  ;;  %6816 = verf.f32 %v2188_v35 }
 0x33f   : > { %v6811_v33 = vpop.eup %6810  ;;  %v2216_v40 = vadd.f32 1.0, %v6809_v56  ;;  %6818 = verf.f32 %v2187_v27 }
 0x340   : > { %v2215_v63 = vadd.f32 1.0, %v6811_v33  ;;  %6319 = vmatprep.mubr.msk.f32.mxu1 %vm1223_vm0, %v2229_v26 }
 0x341   : > { %6320 = vmatmul.mubr.msk.f32.vlgmr.msra.gmra.mrb[72].mxu1 %vm1223_vm0, %v2230_v34  ;;  %v2232_v41 = vmul.f32 %v2216_v40, %v2168_v36 }
 0x342   : > { %v2231_v1 = vmul.f32 %v2215_v63, %v2167_v51 }
 0x344   : > { %6322 = vmatprep.mubr.msk.f32.mxu1 %vm1223_vm0, %v2231_v1  ;;  %v6813_v43 = vpop.eup %6812 }
 0x345   : > { %6323 = vmatmul.mubr.msk.f32.gmra.mrb[74].mxu1 %vm1223_vm0, %v2232_v41  ;;  %v6815_v28 = vpop.eup %6814  ;;  %v2218_v38 = vadd.f32 1.0, %v6813_v43 }
 0x346   : > { %v6305_v14 = vpop.f32.mrb[64].mxu0  ;;  %v2217_v22 = vadd.f32 1.0, %v6815_v28 }
 0x347   : > { %v2132_v46 = vadd.f32 %v6305_v14, %v7925_v62  ;;  %v2126_v47 = vpop.f32.mrb[65].mxu0  ;;  %v2234_v55 = vmul.f32 %v2218_v38, %v2170_v42  ;;  %v2601_v42 = vld [vmem:[%s9246_s6] sm:$0x3] }
 0x348   : > { %v2127_v49 = vadd.f32 %v2126_v47, %v7925_v62  ;;  %v6817_v44 = vpop.eup %6816  ;;  %v2233_v50 = vmul.f32 %v2217_v22, %v2169_v45  ;;  %6343 = vmatprep.subr.msk.mxu0 %vm2652_vm2, %v2601_v42 }
 0x349   : > { %v2190_v52 = vmul.f32 0.70710677, %v2132_v46  ;;  %v6819_v15 = vpop.eup %6818  ;;  %v2220_v57 = vadd.f32 1.0, %v6817_v44  ;;  %v2174_v13 = vmul.f32 0.5, %v2132_v46  ;;  %6344 = vmatpush3.msk.msra.mxu0 %vm2652_vm2, %v2601_v42 }
 0x34a   : > { %v2189_v20 = vmul.f32 0.70710677, %v2127_v49  ;;  %v6308_v59 = vpop.f32.mrb[66].mxu0  ;;  %v2219_v48 = vadd.f32 1.0, %v6819_v15  ;;  %6325 = vmatprep.mubr.msk.f32.mxu1 %vm1223_vm0, %v2233_v50  ;;  %v2173_v25 = vmul.f32 0.5, %v2127_v49 }
 0x34b   : > { %6820 = verf.f32 %v2190_v52  ;;  %v2142_v53 = vadd.f32 %v6308_v59, %v7925_v62  ;;  %v2136_v61 = vpop.f32.mrb[67].mxu0  ;;  %6326 = vmatmul.mubr.msk.f32.gmra.mrb[76].mxu1 %vm1223_vm0, %v2234_v55  ;;  %v2236_v4 = vmul.f32 %v2220_v57, %v2172_v58  ;;  %v7966_v49 = vld [vmem:[%s9251_s11 + $0x3] ss:$0 sm:$0xff] }
 0x34c   : > { %6822 = verf.f32 %v2189_v20  ;;  %v2137_v0 = vadd.f32 %v2136_v61, %v7925_v62  ;;  %v2235_v3 = vmul.f32 %v2219_v48, %v2171_v60 }
 0x34d   : > { %v2192_v8 = vmul.f32 0.70710677, %v2142_v53 }
 0x34e   : > { %v2191_v5 = vmul.f32 0.70710677, %v2137_v0  ;;  %v6311_v7 = vpop.f32.mrb[68].mxu0  ;;  %6328 = vmatprep.mubr.msk.f32.mxu1 %vm1223_vm0, %v2235_v3  ;;  %v2175_v26 = vmul.f32 0.5, %v2137_v0 }
 0x34f   : > { %6824 = verf.f32 %v2192_v8  ;;  %v2152_v9 = vadd.f32 %v6311_v7, %v7925_v62  ;;  %v2146_v37 = vpop.f32.mrb[69].mxu0  ;;  %6329 = vmatmul.mubr.msk.f32.gmra.mrb[78].mxu1 %vm1223_vm0, %v2236_v4 }
 0x350   : > { %6826 = verf.f32 %v2191_v5  ;;  %v2147_v2 = vadd.f32 %v2146_v37, %v7925_v62 }
 0x351   : > { %v2194_v11 = vmul.f32 0.70710677, %v2152_v9  ;;  %v2178_v36 = vmul.f32 0.5, %v2152_v9 }
 0x352   : > { %v2193_v12 = vmul.f32 0.70710677, %v2147_v2  ;;  %v6314_v10 = vpop.f32.mrb[70].mxu0  ;;  %v2177_v63 = vmul.f32 0.5, %v2147_v2 }
 0x353   : > { %6828 = verf.f32 %v2194_v11  ;;  %v2162_v39 = vadd.f32 %v6314_v10, %v7925_v62  ;;  %v2156_v16 = vpop.f32.mrb[71].mxu0 }
 0x354   : > { %6830 = verf.f32 %v2193_v12  ;;  %v2157_v17 = vadd.f32 %v2156_v16, %v7925_v62  ;;  %v2176_v62 = vmul.f32 0.5, %v2142_v53 }
 0x355   : > { %v6821_v18 = vpop.eup %6820  ;;  %v2196_v19 = vmul.f32 0.70710677, %v2162_v39  ;;  %v2180_v22 = vmul.f32 0.5, %v2162_v39 }
 0x356   : > { %v6823_v23 = vpop.eup %6822  ;;  %v2222_v24 = vadd.f32 1.0, %v6821_v18  ;;  %v2195_v21 = vmul.f32 0.70710677, %v2157_v17  ;;  %v2179_v14 = vmul.f32 0.5, %v2157_v17 }
 0x357   : > { %v2221_v54 = vadd.f32 1.0, %v6823_v23  ;;  %6832 = verf.f32 %v2196_v19 }
 0x358   : > { %6834 = verf.f32 %v2195_v21  ;;  %v2238_v6 = vmul.f32 %v2222_v24, %v2174_v13 }
 0x359   : > { %v6825_v29 = vpop.eup %6824  ;;  %v2237_v30 = vmul.f32 %v2221_v54, %v2173_v25 }
 0x35a   : > { %v6827_v31 = vpop.eup %6826  ;;  %v2224_v56 = vadd.f32 1.0, %v6825_v29 }
 0x35b   : > { %v2223_v32 = vadd.f32 1.0, %v6827_v31  ;;  %6331 = vmatprep.mubr.msk.f32.mxu1 %vm1223_vm0, %v2237_v30 }
 0x35c   : > { %6332 = vmatmul.mubr.msk.f32.gmra.mrb[80].mxu1 %vm1223_vm0, %v2238_v6  ;;  %v2240_v35 = vmul.f32 %v2224_v56, %v2176_v62 }
 0x35d   : > { %v6829_v33 = vpop.eup %6828  ;;  %v2239_v34 = vmul.f32 %v2223_v32, %v2175_v26 }
 0x35e   : > { %v6831_v40 = vpop.eup %6830  ;;  %v2226_v51 = vadd.f32 1.0, %v6829_v33 }
 0x35f   : > { %v2225_v27 = vadd.f32 1.0, %v6831_v40  ;;  %6334 = vmatprep.mubr.msk.f32.mxu1 %vm1223_vm0, %v2239_v34 }
 0x360   : > { %6335 = vmatmul.mubr.msk.f32.gmra.mrb[82].mxu1 %vm1223_vm0, %v2240_v35  ;;  %v2242_v28 = vmul.f32 %v2226_v51, %v2178_v36 }
 0x361   : > { %v6833_v1 = vpop.eup %6832  ;;  %v2241_v41 = vmul.f32 %v2225_v27, %v2177_v63 }
 0x362   : > { %v6835_v43 = vpop.eup %6834  ;;  %v2228_v38 = vadd.f32 1.0, %v6833_v1 }
 0x363   : > { %v2227_v45 = vadd.f32 1.0, %v6835_v43  ;;  %6337 = vmatprep.mubr.msk.f32.mxu1 %vm1223_vm0, %v2241_v41 }
 0x364   : > { %6338 = vmatmul.mubr.msk.f32.gmra.mrb[84].mxu1 %vm1223_vm0, %v2242_v28  ;;  %v2244_v47 = vmul.f32 %v2228_v38, %v2180_v22 }
 0x365   : > { %v2243_v46 = vmul.f32 %v2227_v45, %v2179_v14 }
 0x367   : > { %6340 = vmatprep.mubr.msk.f32.mxu1 %vm1223_vm0, %v2243_v46 }
 0x368   : > { %6341 = vmatmul.mubr.msk.f32.gmra.mrb[86].mxu1 %vm1223_vm0, %v2244_v47 }
 0x414   : > { %v6321_v44 = vpop.f32.mrb[72].mxu1 }
 0x415   : > { %v7976_v50 = vadd.f32 %v6321_v44, %v7966_v49  ;;  %v2362_v52 = vpop.f32.mrb[73].mxu1 }
 0x416   : > { %v7979_v15 = vadd.f32 %v2362_v52, %v7966_v49 }
 0x417   : > { %v2442_v55 = vmul.f32 0.5, %v7976_v50  ;;  %5284 = vst.msk [vmem:[%s7973_s20 + $0x8] sm:$0xff] %vm2603_vm3, %v7976_v50 }
 0x418   : > { %v2441_v57 = vmul.f32 0.5, %v7979_v15  ;;  %5283 = vst.msk [vmem:[%s7973_s20] sm:$0xff] %vm2603_vm3, %v7979_v15  ;;  %v6324_v20 = vpop.f32.mrb[74].mxu1 }
 0x419   : > { %5301 = vst.msk [vmem:[%s7973_s20 + $0x8] sm:$0xff] %vm5299_vm4, %v7976_v50  ;;  %v7993_v59 = vadd.f32 %v6324_v20, %v7966_v49  ;;  %v2372_v60 = vpop.f32.mrb[75].mxu1  ;;  %5300 = vst.msk [vmem:[%s7973_s20] sm:$0xff] %vm5299_vm4, %v7979_v15  ;;  %v2459_v61 = vmul.f32 1.442695, %v2442_v55 }
 0x41a   : > { %v2457_v48 = vmul.f32 1.442695, %v2441_v57  ;;  %v7999_v53 = vadd.f32 %v2372_v60, %v7966_v49 }
 0x41b   : > { %5286 = vst.msk [vmem:[%s7973_s20 + $0x18] sm:$0xff] %vm2603_vm3, %v7993_v59  ;;  %v2444_v58 = vmul.f32 0.5, %v7993_v59 }
 0x41c   : > { %6836 = vpow2.f32 %v2457_v48  ;;  %v2443_v0 = vmul.f32 0.5, %v7999_v53  ;;  %5285 = vst.msk [vmem:[%s7973_s20 + $0x10] sm:$0xff] %vm2603_vm3, %v7999_v53 }
 0x41d   : > { %5303 = vst.msk [vmem:[%s7973_s20 + $0x18] sm:$0xff] %vm5299_vm4, %v7993_v59  ;;  %5302 = vst.msk [vmem:[%s7973_s20 + $0x10] sm:$0xff] %vm5299_vm4, %v7999_v53  ;;  %6838 = vpow2.f32 %v2459_v61  ;;  %v2463_v8 = vmul.f32 1.442695, %v2444_v58 }
 0x41e   : > { %v2461_v3 = vmul.f32 1.442695, %v2443_v0  ;;  %v6327_v4 = vpop.f32.mrb[76].mxu1 }
 0x41f   : > { %v8016_v5 = vadd.f32 %v6327_v4, %v7966_v49  ;;  %v2382_v7 = vpop.f32.mrb[77].mxu1 }
 0x420   : > { %6840 = vpow2.f32 %v2461_v3  ;;  %v8019_v9 = vadd.f32 %v2382_v7, %v7966_v49 }
 0x421   : > { %6842 = vpow2.f32 %v2463_v8  ;;  %v2446_v37 = vmul.f32 0.5, %v8016_v5  ;;  %5288 = vst.msk [vmem:[%s7973_s20 + $0x28] sm:$0xff] %vm2603_vm3, %v8016_v5 }
 0x422   : > { %v2445_v2 = vmul.f32 0.5, %v8019_v9  ;;  %5287 = vst.msk [vmem:[%s7973_s20 + $0x20] sm:$0xff] %vm2603_vm3, %v8019_v9  ;;  %v6330_v11 = vpop.f32.mrb[78].mxu1 }
 0x423   : > { %5305 = vst.msk [vmem:[%s7973_s20 + $0x28] sm:$0xff] %vm5299_vm4, %v8016_v5  ;;  %v2467_v10 = vmul.f32 1.442695, %v2446_v37  ;;  %v8033_v39 = vadd.f32 %v6330_v11, %v7966_v49  ;;  %v2392_v16 = vpop.f32.mrb[79].mxu1  ;;  %5304 = vst.msk [vmem:[%s7973_s20 + $0x20] sm:$0xff] %vm5299_vm4, %v8019_v9  ;;  %v2489_v11 = vld [vmem:[%s8156_s24] sm:$0xff] }
 0x424   : > { %v2465_v17 = vmul.f32 1.442695, %v2445_v2  ;;  %v8039_v18 = vadd.f32 %v2392_v16, %v7966_v49  ;;  %v2491_v16 = vld [vmem:[%s8156_s24 + $0x10] sm:$0xff] }
 0x425   : > { %6844 = vpow2.f32 %v2467_v10  ;;  %v2448_v19 = vmul.f32 0.5, %v8033_v39  ;;  %5290 = vst.msk [vmem:[%s7973_s20 + $0x38] sm:$0xff] %vm2603_vm3, %v8033_v39 }
 0x426   : > { %v6837_v12 = vpop.eup %6836  ;;  %6846 = vpow2.f32 %v2465_v17  ;;  %v2447_v24 = vmul.f32 0.5, %v8039_v18  ;;  %5289 = vst.msk [vmem:[%s7973_s20 + $0x30] sm:$0xff] %vm2603_vm3, %v8039_v18  ;;  %v2490_v17 = vld [vmem:[%s8156_s24 + $0x8] sm:$0xff] }
 0x427   : > { %2521 = vrot.lane.b32.xlu0 %v6837_v12, %s7452_s21  ;;  %v6839_v23 = vpop.eup %6838  ;;  %5307 = vst.msk [vmem:[%s7973_s20 + $0x38] sm:$0xff] %vm5299_vm4, %v8033_v39  ;;  %v2471_v25 = vmul.f32 1.442695, %v2448_v19  ;;  %5306 = vst.msk [vmem:[%s7973_s20 + $0x30] sm:$0xff] %vm5299_vm4, %v8039_v18 }
 0x428   : > { %v2469_v54 = vmul.f32 1.442695, %v2447_v24 }
 0x429   : > { %6848 = vpow2.f32 %v2471_v25 }
 0x42a   : > { %v6841_v21 = vpop.eup %6840  ;;  %6850 = vpow2.f32 %v2469_v54  ;;  %v2492_v54 = vld [vmem:[%s8156_s24 + $0x18] sm:$0xff] }
 0x42b   : > { %2525 = vrot.lane.b32.xlu1 %v6841_v21, %s7452_s21  ;;  %2523 = vrot.lane.b32.xlu0 %v6839_v23, %s7452_s21  ;;  %v6843_v13 = vpop.eup %6842 }
 0x42f   : > { %2527 = vrot.lane.b32.xlu1 %v6843_v13, %s7452_s21  ;;  %v6333_v29 = vpop.f32.mrb[80].mxu1  ;;  %v6845_v30 = vpop.eup %6844 }
 0x430   : > { %v8060_v31 = vadd.f32 %v6333_v29, %v7966_v49  ;;  %v2402_v6 = vpop.f32.mrb[81].mxu1  ;;  %v6847_v56 = vpop.eup %6846 }
 0x431   : > { %v8063_v26 = vadd.f32 %v2402_v6, %v7966_v49  ;;  %2529 = vrot.lane.b32.xlu0 %v6847_v56, %s7452_s21 }
 0x432   : > { %v2450_v32 = vmul.f32 0.5, %v8060_v31  ;;  %5292 = vst.msk [vmem:[%s7973_s20 + $0x48] sm:$0xff] %vm2603_vm3, %v8060_v31 }
 0x433   : > { %2531 = vrot.lane.b32.xlu1 %v6845_v30, %s7452_s21  ;;  %v2449_v62 = vmul.f32 0.5, %v8063_v26  ;;  %5291 = vst.msk [vmem:[%s7973_s20 + $0x40] sm:$0xff] %vm2603_vm3, %v8063_v26  ;;  %v6336_v33 = vpop.f32.mrb[82].mxu1  ;;  %v6849_v34 = vpop.eup %6848 }
 0x434   : > { %5309 = vst.msk [vmem:[%s7973_s20 + $0x48] sm:$0xff] %vm5299_vm4, %v8060_v31  ;;  %v2475_v40 = vmul.f32 1.442695, %v2450_v32  ;;  %v8079_v35 = vadd.f32 %v6336_v33, %v7966_v49  ;;  %v2412_v51 = vpop.f32.mrb[83].mxu1  ;;  %5308 = vst.msk [vmem:[%s7973_s20 + $0x40] sm:$0xff] %vm5299_vm4, %v8063_v26  ;;  %v6851_v63 = vpop.eup %6850  ;;  %v2493_v32 = vld [vmem:[%s8156_s24 + $0x20] sm:$0xff] }
 0x435   : > { %v2473_v27 = vmul.f32 1.442695, %v2449_v62  ;;  %v8085_v36 = vadd.f32 %v2412_v51, %v7966_v49  ;;  %2533 = vrot.lane.b32.xlu0 %v6851_v63, %s7452_s21  ;;  %v2495_v51 = vld [vmem:[%s8156_s24 + $0x30] sm:$0xff] }
 0x436   : > { %6852 = vpow2.f32 %v2475_v40  ;;  %v2452_v1 = vmul.f32 0.5, %v8079_v35  ;;  %5294 = vst.msk [vmem:[%s7973_s20 + $0x58] sm:$0xff] %vm2603_vm3, %v8079_v35 }
 0x437   : > { %2535 = vrot.lane.b32.xlu1 %v6849_v34, %s7452_s21  ;;  %6854 = vpow2.f32 %v2473_v27  ;;  %v2451_v41 = vmul.f32 0.5, %v8085_v36  ;;  %5293 = vst.msk [vmem:[%s7973_s20 + $0x50] sm:$0xff] %vm2603_vm3, %v8085_v36  ;;  %v6339_v43 = vpop.f32.mrb[84].mxu1  ;;  %v2496_v34 = vld [vmem:[%s8156_s24 + $0x38] sm:$0xff] }
 0x438   : > { %5311 = vst.msk [vmem:[%s7973_s20 + $0x58] sm:$0xff] %vm5299_vm4, %v8079_v35  ;;  %v2479_v28 = vmul.f32 1.442695, %v2452_v1  ;;  %v8101_v38 = vadd.f32 %v6339_v43, %v7966_v49  ;;  %v2422_v14 = vpop.f32.mrb[85].mxu1  ;;  %5310 = vst.msk [vmem:[%s7973_s20 + $0x50] sm:$0xff] %vm5299_vm4, %v8085_v36 }
 0x439   : > { %v2477_v45 = vmul.f32 1.442695, %v2451_v41  ;;  %v8107_v22 = vadd.f32 %v2422_v14, %v7966_v49 }
 0x43a   : > { %6856 = vpow2.f32 %v2479_v28  ;;  %v2454_v46 = vmul.f32 0.5, %v8101_v38  ;;  %5296 = vst.msk [vmem:[%s7973_s20 + $0x68] sm:$0xff] %vm2603_vm3, %v8101_v38  ;;  %v2497_v28 = vld [vmem:[%s8156_s24 + $0x40] sm:$0xff] }
 0x43b   : > { %6858 = vpow2.f32 %v2477_v45  ;;  %v2453_v47 = vmul.f32 0.5, %v8107_v22  ;;  %5295 = vst.msk [vmem:[%s7973_s20 + $0x60] sm:$0xff] %vm2603_vm3, %v8107_v22  ;;  %v6342_v42 = vpop.f32.mrb[86].mxu1 }
 0x43c   : > { %5313 = vst.msk [vmem:[%s7973_s20 + $0x68] sm:$0xff] %vm5299_vm4, %v8101_v38  ;;  %v2483_v44 = vmul.f32 1.442695, %v2454_v46  ;;  %v8121_v52 = vadd.f32 %v6342_v42, %v7966_v49  ;;  %v2432_v55 = vpop.f32.mrb[87].mxu1  ;;  %5312 = vst.msk [vmem:[%s7973_s20 + $0x60] sm:$0xff] %vm5299_vm4, %v8107_v22 }
 0x43d   : > { %v2481_v57 = vmul.f32 1.442695, %v2453_v47  ;;  %v8127_v20 = vadd.f32 %v2432_v55, %v7966_v49 }
 0x43e   : > { %6860 = vpow2.f32 %v2483_v44  ;;  %v2456_v60 = vmul.f32 0.5, %v8121_v52  ;;  %5298 = vst.msk [vmem:[%s7973_s20 + $0x78] sm:$0xff] %vm2603_vm3, %v8121_v52 }
 0x43f   : > { %6862 = vpow2.f32 %v2481_v57  ;;  %v2455_v48 = vmul.f32 0.5, %v8127_v20  ;;  %5297 = vst.msk [vmem:[%s7973_s20 + $0x70] sm:$0xff] %vm2603_vm3, %v8127_v20 }
 0x440   : > { %5315 = vst.msk [vmem:[%s7973_s20 + $0x78] sm:$0xff] %vm5299_vm4, %v8121_v52  ;;  %v6853_v61 = vpop.eup %6852  ;;  %v2487_v58 = vmul.f32 1.442695, %v2456_v60  ;;  %5314 = vst.msk [vmem:[%s7973_s20 + $0x70] sm:$0xff] %vm5299_vm4, %v8127_v20 }
 0x441   : > { %v6855_v49 = vpop.eup %6854  ;;  %v2485_v0 = vmul.f32 1.442695, %v2455_v48  ;;  %2539 = vrot.lane.b32.xlu1 %v6853_v61, %s7452_s21  ;;  %v2502_v61 = vld [vmem:[%s8156_s24 + $0x68] sm:$0xff] }
 0x442   : > { %6864 = vpow2.f32 %v2487_v58  ;;  %2537 = vrot.lane.b32.xlu0 %v6855_v49, %s7452_s21  ;;  %v2881_v58 = vld [vmem:[%s9247_s7] sm:$0xf] }
 0x443   : > { %6866 = vpow2.f32 %v2485_v0  ;;  %6369 = vmatprep.subr.msk.mxu1 %vm2932_vm5, %v2881_v58 }
 0x444   : > { %v6857_v3 = vpop.eup %6856  ;;  %6370 = vmatpush3.msk.msra.mxu1 %vm2932_vm5, %v2881_v58 }
 0x445   : > { %v6859_v8 = vpop.eup %6858  ;;  %2543 = vrot.lane.b32.xlu1 %v6857_v3, %s7452_s21 }
 0x446   : > { %2541 = vrot.lane.b32.xlu0 %v6859_v8, %s7452_s21 }
 0x448   : > { %v6861_v4 = vpop.eup %6860 }
 0x449   : > { %v6863_v7 = vpop.eup %6862  ;;  %2547 = vrot.lane.b32.xlu1 %v6861_v4, %s7452_s21 }
 0x44a   : > { %2545 = vrot.lane.b32.xlu0 %v6863_v7, %s7452_s21  ;;  %v2504_v7 = vld [vmem:[%s8156_s24 + $0x78] sm:$0xff] }
 0x44c   : > { %v6865_v37 = vpop.eup %6864 }
 0x44d   : > { %v6867_v2 = vpop.eup %6866  ;;  %2551 = vrot.lane.b32.xlu1 %v6865_v37, %s7452_s21  ;;  %v2503_v37 = vld [vmem:[%s8156_s24 + $0x70] sm:$0xff] }
 0x44e   : > { %2549 = vrot.lane.b32.xlu0 %v6867_v2, %s7452_s21 }
 0x499   : > { %v2522_v12 = vpop.permute.xlu0 %2521 }
 0x49a   : > { %v2569_v10 = vmul.f32 %v2522_v12, %v2489_v11 }
 0x49c   : > { %v2585_v19 = vadd.f32 %v2569_v10, %v7979_v15  ;;  %v2494_v15 = vld [vmem:[%s8156_s24 + $0x28] sm:$0xff] }
 0x49d   : > { %v2526_v23 = vpop.permute.xlu1 %2525  ;;  %v2524_v24 = vpop.permute.xlu0 %2523 }
 0x49e   : > { %v2571_v21 = vmul.f32 %v2526_v23, %v2491_v16  ;;  %v2570_v25 = vmul.f32 %v2524_v24, %v2490_v17  ;;  %5316 = vrot.lane.b32.xlu0 %v2585_v19, %s7453_s28  ;;  %6345 = vmatprep.mubr.msk.f32.mxu0 %vm2603_vm3, %v2585_v19 }
 0x4a0   : > { %v2587_v13 = vadd.f32 %v2571_v21, %v7999_v53  ;;  %v2586_v29 = vadd.f32 %v2570_v25, %v7976_v50 }
 0x4a1   : > { %v2528_v30 = vpop.permute.xlu1 %2527 }
 0x4a2   : > { %v2572_v6 = vmul.f32 %v2528_v30, %v2492_v54  ;;  %5320 = vrot.lane.b32.xlu0 %v2587_v13, %s7453_s28  ;;  %5318 = vrot.lane.b32.xlu1 %v2586_v29, %s7453_s28 }
 0x4a3   : > { %6346 = vmatmul.mubr.msk.f32.vlgmr.msra.gmra.mrb[72].mxu0 %vm2603_vm3, %v2586_v29  ;;  %v2530_v53 = vpop.permute.xlu0 %2529 }
 0x4a4   : > { %v2588_v56 = vadd.f32 %v2572_v6, %v7993_v59  ;;  %6348 = vmatprep.mubr.msk.f32.mxu0 %vm2603_vm3, %v2587_v13  ;;  %v2573_v50 = vmul.f32 %v2530_v53, %v2493_v32  ;;  %v3161_v6 = vld [vmem:[%s9248_s8] sm:$0xff] }
 0x4a5   : > { %v2532_v62 = vpop.permute.xlu1 %2531 }
 0x4a6   : > { %v2574_v33 = vmul.f32 %v2532_v62, %v2494_v15  ;;  %5322 = vrot.lane.b32.xlu1 %v2588_v56, %s7453_s28  ;;  %v2589_v63 = vadd.f32 %v2573_v50, %v8019_v9  ;;  %v2498_v9 = vld [vmem:[%s8156_s24 + $0x48] sm:$0xff]  ;;  %v8298_v50 = vld [vmem:[%s9251_s11 + $0x4] ss:$0 sm:$0xff] }
 0x4a7   : > { %6349 = vmatmul.mubr.msk.f32.gmra.mrb[74].mxu0 %vm2603_vm3, %v2588_v56  ;;  %v2534_v27 = vpop.permute.xlu0 %2533  ;;  %v3162_v15 = vld [vmem:[%s9248_s8 + $0x8] sm:$0xff] }
 0x4a8   : > { %v2590_v40 = vadd.f32 %v2574_v33, %v8016_v5  ;;  %v2575_v41 = vmul.f32 %v2534_v27, %v2495_v51  ;;  %5324 = vrot.lane.b32.xlu0 %v2589_v63, %s7453_s28  ;;  %6351 = vmatprep.mubr.msk.f32.mxu0 %vm2603_vm3, %v2589_v63  ;;  %v6487_v56 = vpack.c.bf16 %v3162_v15, %v3161_v6 }
 0x4a9   : > { %v2536_v59 = vpop.permute.xlu1 %2535 }
 0x4aa   : > { %v2576_v1 = vmul.f32 %v2536_v59, %v2496_v34  ;;  %5326 = vrot.lane.b32.xlu1 %v2590_v40, %s7453_s28  ;;  %v2591_v5 = vadd.f32 %v2575_v41, %v8039_v18  ;;  %v2499_v18 = vld [vmem:[%s8156_s24 + $0x50] sm:$0xff]  ;;  %6488 = vmatprep.subr.bf16.mxu0 %v6487_v56 }
 0x4ab   : > { %6352 = vmatmul.mubr.msk.f32.gmra.mrb[76].mxu0 %vm2603_vm3, %v2590_v40 }
 0x4ac   : > { %v2592_v43 = vadd.f32 %v2576_v1, %v8033_v39  ;;  %5328 = vrot.lane.b32.xlu0 %v2591_v5, %s7453_s28  ;;  %6354 = vmatprep.mubr.msk.f32.mxu0 %vm2603_vm3, %v2591_v5  ;;  %v2500_v39 = vld [vmem:[%s8156_s24 + $0x58] sm:$0xff] }
 0x4ad   : > { %6490 = vmatpush3.bf16.msra.mxu0 %v6487_v56 }
 0x4ae   : > { %5330 = vrot.lane.b32.xlu1 %v2592_v43, %s7453_s28 }
 0x4af   : > { %6355 = vmatmul.mubr.msk.f32.gmra.mrb[78].mxu0 %vm2603_vm3, %v2592_v43 }
 0x4b3   : > { %v2540_v14 = vpop.permute.xlu1 %2539 }
 0x4b4   : > { %v2578_v45 = vmul.f32 %v2540_v14, %v2498_v9  ;;  %v2538_v46 = vpop.permute.xlu0 %2537 }
 0x4b5   : > { %v2577_v47 = vmul.f32 %v2538_v46, %v2497_v28 }
 0x4b6   : > { %v2594_v42 = vadd.f32 %v2578_v45, %v8060_v31 }
 0x4b7   : > { %v2593_v44 = vadd.f32 %v2577_v47, %v8063_v26  ;;  %v2544_v55 = vpop.permute.xlu1 %2543  ;;  %v2501_v26 = vld [vmem:[%s8156_s24 + $0x60] sm:$0xff] }
 0x4b8   : > { %v2580_v57 = vmul.f32 %v2544_v55, %v2500_v39  ;;  %5334 = vrot.lane.b32.xlu1 %v2594_v42, %s7453_s28  ;;  %v2542_v60 = vpop.permute.xlu0 %2541 }
 0x4b9   : > { %v2579_v48 = vmul.f32 %v2542_v60, %v2499_v18  ;;  %5332 = vrot.lane.b32.xlu0 %v2593_v44, %s7453_s28  ;;  %6357 = vmatprep.mubr.msk.f32.mxu0 %vm2603_vm3, %v2593_v44 }
 0x4ba   : > { %v2596_v31 = vadd.f32 %v2580_v57, %v8079_v35  ;;  %6358 = vmatmul.mubr.msk.f32.gmra.mrb[80].mxu0 %vm2603_vm3, %v2594_v42 }
 0x4bb   : > { %v2595_v49 = vadd.f32 %v2579_v48, %v8085_v36  ;;  %v2548_v0 = vpop.permute.xlu1 %2547 }
 0x4bc   : > { %v2582_v3 = vmul.f32 %v2548_v0, %v2502_v61  ;;  %5338 = vrot.lane.b32.xlu1 %v2596_v31, %s7453_s28  ;;  %v2546_v8 = vpop.permute.xlu0 %2545 }
 0x4bd   : > { %v2581_v4 = vmul.f32 %v2546_v8, %v2501_v26  ;;  %5336 = vrot.lane.b32.xlu0 %v2595_v49, %s7453_s28  ;;  %6360 = vmatprep.mubr.msk.f32.mxu0 %vm2603_vm3, %v2595_v49 }
 0x4be   : > { %v2598_v35 = vadd.f32 %v2582_v3, %v8101_v38  ;;  %6361 = vmatmul.mubr.msk.f32.gmra.mrb[82].mxu0 %vm2603_vm3, %v2596_v31 }
 0x4bf   : > { %v2597_v2 = vadd.f32 %v2581_v4, %v8107_v22  ;;  %v2552_v36 = vpop.permute.xlu1 %2551 }
 0x4c0   : > { %v2584_v11 = vmul.f32 %v2552_v36, %v2504_v7  ;;  %5342 = vrot.lane.b32.xlu1 %v2598_v35, %s7453_s28  ;;  %v2550_v12 = vpop.permute.xlu0 %2549 }
 0x4c1   : > { %v2583_v10 = vmul.f32 %v2550_v12, %v2503_v37  ;;  %5340 = vrot.lane.b32.xlu0 %v2597_v2, %s7453_s28  ;;  %6363 = vmatprep.mubr.msk.f32.mxu0 %vm2603_vm3, %v2597_v2 }
 0x4c2   : > { %v2600_v38 = vadd.f32 %v2584_v11, %v8121_v52  ;;  %6364 = vmatmul.mubr.msk.f32.gmra.mrb[84].mxu0 %vm2603_vm3, %v2598_v35 }
 0x4c3   : > { %v2599_v22 = vadd.f32 %v2583_v10, %v8127_v20  ;;  %v7454_v20 = vmov 0.0  }
 0x4c4   : > { %5346 = vrot.lane.b32.xlu1 %v2600_v38, %s7453_s28 }
 0x4c5   : > { %5344 = vrot.lane.b32.xlu0 %v2599_v22, %s7453_s28  ;;  %6366 = vmatprep.mubr.msk.f32.mxu0 %vm2603_vm3, %v2599_v22  ;;  %s6508_s28 = smul.u32 56, %s9261_s27 }
 0x4c6   : > { %6367 = vmatmul.mubr.msk.f32.gmra.mrb[86].mxu0 %vm2603_vm3, %v2600_v38 }
 0x4c7   : > { %s8737_s30 = scalar_lea.vmem %s9252_s12, %s6508_s28 }
 0x510   : > { %v5317_v52 = vpop.permute.xlu0 %5316 }
 0x511   : > { %5365 = vst.msk [vmem:[%s7973_s20] sm:$0xff] %vm5364_vm6, %v5317_v52 }
 0x512   : > { %5382 = vst.msk [vmem:[%s7973_s20] sm:$0xff] %vm5381_vm7, %v7454_v20 }
 0x514   : > { %v5319_v16 = vpop.permute.xlu1 %5318  ;;  %v5321_v17 = vpop.permute.xlu0 %5320 }
 0x515   : > { %5366 = vst.msk [vmem:[%s7973_s20 + $0x8] sm:$0xff] %vm5364_vm6, %v5319_v16  ;;  %5367 = vst.msk [vmem:[%s7973_s20 + $0x10] sm:$0xff] %vm5364_vm6, %v5321_v17 }
 0x516   : > { %5383 = vst.msk [vmem:[%s7973_s20 + $0x8] sm:$0xff] %vm5381_vm7, %v7454_v20  ;;  %5384 = vst.msk [vmem:[%s7973_s20 + $0x10] sm:$0xff] %vm5381_vm7, %v7454_v20 }
 0x518   : > { %v5323_v19 = vpop.permute.xlu1 %5322 }
 0x519   : > { %5368 = vst.msk [vmem:[%s7973_s20 + $0x18] sm:$0xff] %vm5364_vm6, %v5323_v19 }
 0x51a   : > { %5385 = vst.msk [vmem:[%s7973_s20 + $0x18] sm:$0xff] %vm5381_vm7, %v7454_v20  ;;  %v5325_v24 = vpop.permute.xlu0 %5324 }
 0x51b   : > { %5369 = vst.msk [vmem:[%s7973_s20 + $0x20] sm:$0xff] %vm5364_vm6, %v5325_v24 }
 0x51c   : > { %v5327_v23 = vpop.permute.xlu1 %5326  ;;  %5386 = vst.msk [vmem:[%s7973_s20 + $0x20] sm:$0xff] %vm5381_vm7, %v7454_v20 }
 0x51d   : > { %5370 = vst.msk [vmem:[%s7973_s20 + $0x28] sm:$0xff] %vm5364_vm6, %v5327_v23 }
 0x51e   : > { %5387 = vst.msk [vmem:[%s7973_s20 + $0x28] sm:$0xff] %vm5381_vm7, %v7454_v20  ;;  %v5329_v25 = vpop.permute.xlu0 %5328 }
 0x51f   : > { %5371 = vst.msk [vmem:[%s7973_s20 + $0x30] sm:$0xff] %vm5364_vm6, %v5329_v25 }
 0x520   : > { %v5331_v21 = vpop.permute.xlu1 %5330  ;;  %5388 = vst.msk [vmem:[%s7973_s20 + $0x30] sm:$0xff] %vm5381_vm7, %v7454_v20 }
 0x521   : > { %5372 = vst.msk [vmem:[%s7973_s20 + $0x38] sm:$0xff] %vm5364_vm6, %v5331_v21 }
 0x522   : > { %5389 = vst.msk [vmem:[%s7973_s20 + $0x38] sm:$0xff] %vm5381_vm7, %v7454_v20 }
 0x52a   : > { %v5335_v54 = vpop.permute.xlu1 %5334 }
 0x52b   : > { %5374 = vst.msk [vmem:[%s7973_s20 + $0x48] sm:$0xff] %vm5364_vm6, %v5335_v54  ;;  %v5333_v13 = vpop.permute.xlu0 %5332 }
 0x52c   : > { %5391 = vst.msk [vmem:[%s7973_s20 + $0x48] sm:$0xff] %vm5381_vm7, %v7454_v20 }
 0x52d   : > { %5373 = vst.msk [vmem:[%s7973_s20 + $0x40] sm:$0xff] %vm5364_vm6, %v5333_v13 }
 0x52e   : > { %5390 = vst.msk [vmem:[%s7973_s20 + $0x40] sm:$0xff] %vm5381_vm7, %v7454_v20  ;;  %v5339_v29 = vpop.permute.xlu1 %5338 }
 0x52f   : > { %5376 = vst.msk [vmem:[%s7973_s20 + $0x58] sm:$0xff] %vm5364_vm6, %v5339_v29  ;;  %v5337_v30 = vpop.permute.xlu0 %5336 }
 0x530   : > { %5393 = vst.msk [vmem:[%s7973_s20 + $0x58] sm:$0xff] %vm5381_vm7, %v7454_v20 }
 0x531   : > { %5375 = vst.msk [vmem:[%s7973_s20 + $0x50] sm:$0xff] %vm5364_vm6, %v5337_v30 }
 0x532   : > { %5392 = vst.msk [vmem:[%s7973_s20 + $0x50] sm:$0xff] %vm5381_vm7, %v7454_v20  ;;  %v5343_v32 = vpop.permute.xlu1 %5342 }
 0x533   : > { %5378 = vst.msk [vmem:[%s7973_s20 + $0x68] sm:$0xff] %vm5364_vm6, %v5343_v32  ;;  %v5341_v62 = vpop.permute.xlu0 %5340 }
 0x534   : > { %5395 = vst.msk [vmem:[%s7973_s20 + $0x68] sm:$0xff] %vm5381_vm7, %v7454_v20 }
 0x535   : > { %5377 = vst.msk [vmem:[%s7973_s20 + $0x60] sm:$0xff] %vm5364_vm6, %v5341_v62 }
 0x536   : > { %5394 = vst.msk [vmem:[%s7973_s20 + $0x60] sm:$0xff] %vm5381_vm7, %v7454_v20  ;;  %v5347_v53 = vpop.permute.xlu1 %5346 }
 0x537   : > { %5380 = vst.msk [vmem:[%s7973_s20 + $0x78] sm:$0xff] %vm5364_vm6, %v5347_v53  ;;  %v5345_v33 = vpop.permute.xlu0 %5344 }
 0x538   : > { %5397 = vst.msk [vmem:[%s7973_s20 + $0x78] sm:$0xff] %vm5381_vm7, %v7454_v20 }
 0x539   : > { %5379 = vst.msk [vmem:[%s7973_s20 + $0x70] sm:$0xff] %vm5364_vm6, %v5345_v33 }
 0x53a   : > { %5396 = vst.msk [vmem:[%s7973_s20 + $0x70] sm:$0xff] %vm5381_vm7, %v7454_v20 }
 0x576   : > { %v6347_v34 = vpop.f32.mrb[72].mxu0 }
 0x577   : > { %v2728_v40 = vadd.f32 %v6347_v34, %v8298_v50  ;;  %v2722_v51 = vpop.f32.mrb[73].mxu0 }
 0x578   : > { %v2723_v63 = vadd.f32 %v2722_v51, %v8298_v50 }
 0x579   : > { %v2818_v59 = vmul.f32 0.70710677, %v2728_v40  ;;  %v2802_v0 = vmul.f32 0.5, %v2728_v40 }
 0x57a   : > { %v2817_v27 = vmul.f32 0.70710677, %v2723_v63  ;;  %v6350_v1 = vpop.f32.mrb[74].mxu0  ;;  %v2801_v31 = vmul.f32 0.5, %v2723_v63 }
 0x57b   : > { %6868 = verf.f32 %v2818_v59  ;;  %v2738_v41 = vadd.f32 %v6350_v1, %v8298_v50  ;;  %v2732_v43 = vpop.f32.mrb[75].mxu0 }
 0x57c   : > { %6870 = verf.f32 %v2817_v27  ;;  %v2733_v5 = vadd.f32 %v2732_v43, %v8298_v50 }
 0x57d   : > { %v2820_v9 = vmul.f32 0.70710677, %v2738_v41  ;;  %v2804_v36 = vmul.f32 0.5, %v2738_v41 }
 0x57e   : > { %v2819_v28 = vmul.f32 0.70710677, %v2733_v5  ;;  %v6353_v14 = vpop.f32.mrb[76].mxu0  ;;  %v2803_v37 = vmul.f32 0.5, %v2733_v5 }
 0x57f   : > { %6872 = verf.f32 %v2820_v9  ;;  %v2748_v45 = vadd.f32 %v6353_v14, %v8298_v50  ;;  %v2742_v46 = vpop.f32.mrb[77].mxu0 }
 0x580   : > { %6874 = verf.f32 %v2819_v28  ;;  %v2743_v47 = vadd.f32 %v2742_v46, %v8298_v50 }
 0x581   : > { %v2822_v39 = vmul.f32 0.70710677, %v2748_v45  ;;  %v2806_v23 = vmul.f32 0.5, %v2748_v45 }
 0x582   : > { %v2821_v42 = vmul.f32 0.70710677, %v2743_v47  ;;  %v6356_v18 = vpop.f32.mrb[78].mxu0  ;;  %v2805_v20 = vmul.f32 0.5, %v2743_v47 }
 0x583   : > { %6876 = verf.f32 %v2822_v39  ;;  %v2758_v44 = vadd.f32 %v6356_v18, %v8298_v50  ;;  %v2752_v55 = vpop.f32.mrb[79].mxu0 }
 0x584   : > { %6878 = verf.f32 %v2821_v42  ;;  %v2753_v60 = vadd.f32 %v2752_v55, %v8298_v50 }
 0x585   : > { %v6869_v57 = vpop.eup %6868  ;;  %v2824_v58 = vmul.f32 0.70710677, %v2758_v44  ;;  %v2808_v33 = vmul.f32 0.5, %v2758_v44 }
 0x586   : > { %v6871_v48 = vpop.eup %6870  ;;  %v2850_v61 = vadd.f32 1.0, %v6869_v57  ;;  %v2823_v49 = vmul.f32 0.70710677, %v2753_v60  ;;  %v2807_v56 = vmul.f32 0.5, %v2753_v60 }
 0x587   : > { %v2849_v26 = vadd.f32 1.0, %v6871_v48  ;;  %6880 = verf.f32 %v2824_v58 }
 0x588   : > { %6882 = verf.f32 %v2823_v49  ;;  %v2866_v7 = vmul.f32 %v2850_v61, %v2802_v0 }
 0x589   : > { %v6873_v3 = vpop.eup %6872  ;;  %v2865_v8 = vmul.f32 %v2849_v26, %v2801_v31 }
 0x58a   : > { %v6875_v4 = vpop.eup %6874  ;;  %v2852_v35 = vadd.f32 1.0, %v6873_v3 }
 0x58b   : > { %v2851_v2 = vadd.f32 1.0, %v6875_v4  ;;  %6371 = vmatprep.mubr.msk.f32.mxu1 %vm2883_vm8, %v2865_v8 }
 0x58c   : > { %6372 = vmatmul.mubr.msk.f32.vlgmr.msra.gmra.mrb[88].mxu1 %vm2883_vm8, %v2866_v7  ;;  %v2868_v10 = vmul.f32 %v2852_v35, %v2804_v36 }
 0x58d   : > { %v2867_v11 = vmul.f32 %v2851_v2, %v2803_v37  ;;  %v6877_v12 = vpop.eup %6876  ;;  %v6359_v52 = vpop.f32.mrb[80].mxu0 }
 0x58e   : > { %v6879_v38 = vpop.eup %6878  ;;  %v2854_v22 = vadd.f32 1.0, %v6877_v12  ;;  %v2768_v17 = vadd.f32 %v6359_v52, %v8298_v50  ;;  %v2762_v19 = vpop.f32.mrb[81].mxu0 }
 0x58f   : > { %6374 = vmatprep.mubr.msk.f32.mxu1 %vm2883_vm8, %v2867_v11  ;;  %v2853_v16 = vadd.f32 1.0, %v6879_v38  ;;  %v2763_v24 = vadd.f32 %v2762_v19, %v8298_v50 }
 0x590   : > { %6375 = vmatmul.mubr.msk.f32.gmra.mrb[90].mxu1 %vm2883_vm8, %v2868_v10  ;;  %v2826_v54 = vmul.f32 0.70710677, %v2768_v17  ;;  %v2870_v29 = vmul.f32 %v2854_v22, %v2806_v23  ;;  %v2810_v60 = vmul.f32 0.5, %v2768_v17  ;;  %v6658_v23 = vld [vmem:[%s9249_s9] sm:$0xff]  }
 0x591   : > { %v6881_v21 = vpop.eup %6880  ;;  %v2869_v25 = vmul.f32 %v2853_v16, %v2805_v20  ;;  %v2825_v6 = vmul.f32 0.70710677, %v2763_v24  ;;  %v6362_v15 = vpop.f32.mrb[82].mxu0  ;;  %v2809_v55 = vmul.f32 0.5, %v2763_v24  ;;  %6423 = vmatprep.subr.bf16.mxu1 %v6658_v23  ;;  %v8338_v24 = vld [vmem:[%s9251_s11 + $0x5] ss:$0 sm:$0xff] }
 0x592   : > { %v6883_v13 = vpop.eup %6882  ;;  %v2856_v30 = vadd.f32 1.0, %v6881_v21  ;;  %6884 = verf.f32 %v2826_v54  ;;  %v2778_v62 = vadd.f32 %v6362_v15, %v8298_v50  ;;  %v2772_v53 = vpop.f32.mrb[83].mxu0  ;;  %6424 = vmatpush3.bf16.msra.mxu1 %v6658_v23 }
 0x593   : > { %v2855_v32 = vadd.f32 1.0, %v6883_v13  ;;  %6377 = vmatprep.mubr.msk.f32.mxu1 %vm2883_vm8, %v2869_v25  ;;  %6886 = verf.f32 %v2825_v6  ;;  %v2773_v34 = vadd.f32 %v2772_v53, %v8298_v50 }
 0x594   : > { %6378 = vmatmul.mubr.msk.f32.gmra.mrb[92].mxu1 %vm2883_vm8, %v2870_v29  ;;  %v2828_v51 = vmul.f32 0.70710677, %v2778_v62  ;;  %v2872_v63 = vmul.f32 %v2856_v30, %v2808_v33 }
 0x595   : > { %v2871_v40 = vmul.f32 %v2855_v32, %v2807_v56  ;;  %v2827_v59 = vmul.f32 0.70710677, %v2773_v34  ;;  %v6365_v27 = vpop.f32.mrb[84].mxu0  ;;  %v2811_v49 = vmul.f32 0.5, %v2773_v34 }
 0x596   : > { %6888 = verf.f32 %v2828_v51  ;;  %v2788_v1 = vadd.f32 %v6365_v27, %v8298_v50  ;;  %v2782_v41 = vpop.f32.mrb[85].mxu0 }
 0x597   : > { %6380 = vmatprep.mubr.msk.f32.mxu1 %vm2883_vm8, %v2871_v40  ;;  %6890 = verf.f32 %v2827_v59  ;;  %v2783_v43 = vadd.f32 %v2782_v41, %v8298_v50 }
 0x598   : > { %6381 = vmatmul.mubr.msk.f32.gmra.mrb[94].mxu1 %vm2883_vm8, %v2872_v63  ;;  %v2830_v5 = vmul.f32 0.70710677, %v2788_v1  ;;  %v2814_v36 = vmul.f32 0.5, %v2788_v1 }
 0x599   : > { %v2829_v9 = vmul.f32 0.70710677, %v2783_v43  ;;  %v6368_v28 = vpop.f32.mrb[86].mxu0  ;;  %v2813_v37 = vmul.f32 0.5, %v2783_v43 }
 0x59a   : > { %6892 = verf.f32 %v2830_v5  ;;  %v2798_v14 = vadd.f32 %v6368_v28, %v8298_v50  ;;  %v2792_v45 = vpop.f32.mrb[87].mxu0 }
 0x59b   : > { %6894 = verf.f32 %v2829_v9  ;;  %v2793_v46 = vadd.f32 %v2792_v45, %v8298_v50  ;;  %v2812_v50 = vmul.f32 0.5, %v2778_v62 }
 0x59c   : > { %v6885_v47 = vpop.eup %6884  ;;  %v2832_v39 = vmul.f32 0.70710677, %v2798_v14  ;;  %v2816_v16 = vmul.f32 0.5, %v2798_v14 }
 0x59d   : > { %v6887_v42 = vpop.eup %6886  ;;  %v2858_v18 = vadd.f32 1.0, %v6885_v47  ;;  %v2831_v44 = vmul.f32 0.70710677, %v2793_v46  ;;  %v2815_v52 = vmul.f32 0.5, %v2793_v46 }
 0x59e   : > { %v2857_v57 = vadd.f32 1.0, %v6887_v42  ;;  %6896 = verf.f32 %v2832_v39 }
 0x59f   : > { %6898 = verf.f32 %v2831_v44  ;;  %v2874_v31 = vmul.f32 %v2858_v18, %v2810_v60 }
 0x5a0   : > { %v6889_v48 = vpop.eup %6888  ;;  %v2873_v61 = vmul.f32 %v2857_v57, %v2809_v55 }
 0x5a1   : > { %v6891_v58 = vpop.eup %6890  ;;  %v2860_v26 = vadd.f32 1.0, %v6889_v48 }
 0x5a2   : > { %v2859_v0 = vadd.f32 1.0, %v6891_v58  ;;  %6383 = vmatprep.mubr.msk.f32.mxu1 %vm2883_vm8, %v2873_v61 }
 0x5a3   : > { %6384 = vmatmul.mubr.msk.f32.gmra.mrb[96].mxu1 %vm2883_vm8, %v2874_v31  ;;  %v2876_v7 = vmul.f32 %v2860_v26, %v2812_v50 }
 0x5a4   : > { %v6893_v3 = vpop.eup %6892  ;;  %v2875_v8 = vmul.f32 %v2859_v0, %v2811_v49 }
 0x5a5   : > { %v6895_v4 = vpop.eup %6894  ;;  %v2862_v35 = vadd.f32 1.0, %v6893_v3 }
 0x5a6   : > { %v2861_v2 = vadd.f32 1.0, %v6895_v4  ;;  %6386 = vmatprep.mubr.msk.f32.mxu1 %vm2883_vm8, %v2875_v8 }
 0x5a7   : > { %6387 = vmatmul.mubr.msk.f32.gmra.mrb[98].mxu1 %vm2883_vm8, %v2876_v7  ;;  %v2878_v38 = vmul.f32 %v2862_v35, %v2814_v36 }
 0x5a8   : > { %v6897_v11 = vpop.eup %6896  ;;  %v2877_v12 = vmul.f32 %v2861_v2, %v2813_v37 }
 0x5a9   : > { %v6899_v10 = vpop.eup %6898  ;;  %v2864_v22 = vadd.f32 1.0, %v6897_v11 }
 0x5aa   : > { %v2863_v20 = vadd.f32 1.0, %v6899_v10  ;;  %6389 = vmatprep.mubr.msk.f32.mxu1 %vm2883_vm8, %v2877_v12 }
 0x5ab   : > { %6390 = vmatmul.mubr.msk.f32.gmra.mrb[100].mxu1 %vm2883_vm8, %v2878_v38  ;;  %v2880_v19 = vmul.f32 %v2864_v22, %v2816_v16 }
 0x5ac   : > { %v2879_v17 = vmul.f32 %v2863_v20, %v2815_v52 }
 0x5ae   : > { %6392 = vmatprep.mubr.msk.f32.mxu1 %vm2883_vm8, %v2879_v17 }
 0x5af   : > { %6393 = vmatmul.mubr.msk.f32.gmra.mrb[102].mxu1 %vm2883_vm8, %v2880_v19 }
 0x65f   : > { %v6373_v21 = vpop.f32.mrb[88].mxu1 }
 0x660   : > { %v3008_v25 = vadd.f32 %v6373_v21, %v8338_v24  ;;  %v3002_v54 = vpop.f32.mrb[89].mxu1 }
 0x661   : > { %v3003_v13 = vadd.f32 %v3002_v54, %v8338_v24 }
 0x662   : > { %v3098_v29 = vmul.f32 0.70710677, %v3008_v25  ;;  %v3082_v39 = vmul.f32 0.5, %v3008_v25 }
 0x663   : > { %v3097_v30 = vmul.f32 0.70710677, %v3003_v13  ;;  %v6376_v6 = vpop.f32.mrb[90].mxu1  ;;  %v3081_v45 = vmul.f32 0.5, %v3003_v13 }
 0x664   : > { %6900 = verf.f32 %v3098_v29  ;;  %v3018_v15 = vadd.f32 %v6376_v6, %v8338_v24  ;;  %v3012_v56 = vpop.f32.mrb[91].mxu1 }
 0x665   : > { %6902 = verf.f32 %v3097_v30  ;;  %v3013_v32 = vadd.f32 %v3012_v56, %v8338_v24 }
 0x666   : > { %v3100_v62 = vmul.f32 0.70710677, %v3018_v15  ;;  %v3084_v61 = vmul.f32 0.5, %v3018_v15 }
 0x667   : > { %v3099_v53 = vmul.f32 0.70710677, %v3013_v32  ;;  %v6379_v33 = vpop.f32.mrb[92].mxu1  ;;  %v3083_v60 = vmul.f32 0.5, %v3013_v32 }
 0x668   : > { %6904 = verf.f32 %v3100_v62  ;;  %v3028_v34 = vadd.f32 %v6379_v33, %v8338_v24  ;;  %v3022_v40 = vpop.f32.mrb[93].mxu1 }
 0x669   : > { %6906 = verf.f32 %v3099_v53  ;;  %v3023_v51 = vadd.f32 %v3022_v40, %v8338_v24 }
 0x66a   : > { %v3102_v63 = vmul.f32 0.70710677, %v3028_v34  ;;  %v3086_v35 = vmul.f32 0.5, %v3028_v34 }
 0x66b   : > { %v3101_v59 = vmul.f32 0.70710677, %v3023_v51  ;;  %v6382_v27 = vpop.f32.mrb[94].mxu1  ;;  %v3085_v3 = vmul.f32 0.5, %v3023_v51 }
 0x66c   : > { %6908 = verf.f32 %v3102_v63  ;;  %v3038_v1 = vadd.f32 %v6382_v27, %v8338_v24  ;;  %v3032_v41 = vpop.f32.mrb[95].mxu1 }
 0x66d   : > { %6910 = verf.f32 %v3101_v59  ;;  %v3033_v5 = vadd.f32 %v3032_v41, %v8338_v24 }
 0x66e   : > { %v6901_v43 = vpop.eup %6900  ;;  %v3104_v14 = vmul.f32 0.70710677, %v3038_v1  ;;  %v3088_v23 = vmul.f32 0.5, %v3038_v1 }
 0x66f   : > { %v6903_v9 = vpop.eup %6902  ;;  %v3130_v28 = vadd.f32 1.0, %v6901_v43  ;;  %v3103_v47 = vmul.f32 0.70710677, %v3033_v5  ;;  %v3087_v20 = vmul.f32 0.5, %v3033_v5 }
 0x670   : > { %v3129_v46 = vadd.f32 1.0, %v6903_v9  ;;  %6912 = verf.f32 %v3104_v14 }
 0x671   : > { %6914 = verf.f32 %v3103_v47  ;;  %v3146_v55 = vmul.f32 %v3130_v28, %v3082_v39 }
 0x672   : > { %v6905_v42 = vpop.eup %6904  ;;  %v3145_v18 = vmul.f32 %v3129_v46, %v3081_v45 }
 0x673   : > { %v6907_v44 = vpop.eup %6906  ;;  %v3132_v57 = vadd.f32 1.0, %v6905_v42 }
 0x674   : > { %v3131_v48 = vadd.f32 1.0, %v6907_v44  ;;  %6399 = vmatprep.mubr.msk.f32.mxu0 %vm1223_vm0, %v3145_v18 }
 0x675   : > { %6400 = vmatmul.mubr.msk.f32.vlgmr.msra.gmra.mrb[88].mxu0 %vm1223_vm0, %v3146_v55  ;;  %v3148_v26 = vmul.f32 %v3132_v57, %v3084_v61 }
 0x676   : > { %v3147_v58 = vmul.f32 %v3131_v48, %v3083_v60  ;;  %v6909_v31 = vpop.eup %6908  ;;  %v6385_v50 = vpop.f32.mrb[96].mxu1 }
 0x677   : > { %v6911_v49 = vpop.eup %6910  ;;  %v3134_v0 = vadd.f32 1.0, %v6909_v31  ;;  %v3048_v4 = vadd.f32 %v6385_v50, %v8338_v24  ;;  %v3042_v7 = vpop.f32.mrb[97].mxu1 }
 0x678   : > { %6402 = vmatprep.mubr.msk.f32.mxu0 %vm1223_vm0, %v3147_v58  ;;  %v3133_v8 = vadd.f32 1.0, %v6911_v49  ;;  %v3043_v37 = vadd.f32 %v3042_v7, %v8338_v24 }
 0x679   : > { %6403 = vmatmul.mubr.msk.f32.gmra.mrb[90].mxu0 %vm1223_vm0, %v3148_v26  ;;  %v3106_v11 = vmul.f32 0.70710677, %v3048_v4  ;;  %v3150_v10 = vmul.f32 %v3134_v0, %v3086_v35  ;;  %v3090_v5 = vmul.f32 0.5, %v3048_v4  ;;  %v6659_v35 = vld [vmem:[%s9249_s9 + $0x8] sm:$0xff]  }
 0x67a   : > { %v6913_v2 = vpop.eup %6912  ;;  %v3149_v36 = vmul.f32 %v3133_v8, %v3085_v3  ;;  %v3105_v22 = vmul.f32 0.70710677, %v3043_v37  ;;  %v6388_v52 = vpop.f32.mrb[98].mxu1  ;;  %v3089_v41 = vmul.f32 0.5, %v3043_v37  ;;  %6425 = vmatprep.subr.bf16.mxu1 %v6659_v35  ;;  %v6660_v37 = vld [vmem:[%s9250_s10] ss:$28 sps:$4 sm:$0xff]  }
 0x67b   : > { %v6915_v12 = vpop.eup %6914  ;;  %v3136_v38 = vadd.f32 1.0, %v6913_v2  ;;  %6916 = verf.f32 %v3106_v11  ;;  %v3058_v17 = vadd.f32 %v6388_v52, %v8338_v24  ;;  %v3052_v19 = vpop.f32.mrb[99].mxu1  ;;  %6426 = vmatpush3.bf16.msra.mxu1 %v6659_v35  ;;  %v6662_v2 = vld [vmem:[%s9250_s10 + $0x4] ss:$28 sps:$4 sm:$0xff]   ;;  %v6668_v11 = vld [vmem:[%s9250_s10 + $0x3c] ss:$28 sps:$4 sm:$0xff]  }
 0x67c   : > { %v3135_v16 = vadd.f32 1.0, %v6915_v12  ;;  %6405 = vmatprep.mubr.msk.f32.mxu0 %vm1223_vm0, %v3149_v36  ;;  %6918 = verf.f32 %v3105_v22  ;;  %v3053_v21 = vadd.f32 %v3052_v19, %v8338_v24  ;;  %v6665_v36 = vld [vmem:[%s9250_s10 + $0xc] ss:$28 sps:$4 sm:$0xff]   ;;  %4063 = vmatprep.subr.bf16.mxu0 %v6662_v2  ;;  %v6666_v12 = vld [vmem:[%s9250_s10 + $0x38] ss:$28 sps:$4 sm:$0xff]  }
 0x67d   : > { %6406 = vmatmul.mubr.msk.f32.gmra.mrb[92].mxu0 %vm1223_vm0, %v3150_v10  ;;  %v3108_v54 = vmul.f32 0.70710677, %v3058_v17  ;;  %v3152_v13 = vmul.f32 %v3136_v38, %v3088_v23  ;;  %4176 = vmatprep.subr.bf16.mxu1 %v6665_v36  ;;  %v8393_v10 = vld [vmem:[%s9251_s11 + $0x6] ss:$0 sm:$0xff] }
 0x67e   : > { %v3151_v25 = vmul.f32 %v3135_v16, %v3087_v20  ;;  %v3107_v29 = vmul.f32 0.70710677, %v3053_v21  ;;  %v6391_v30 = vpop.f32.mrb[100].mxu1  ;;  %v3091_v47 = vmul.f32 0.5, %v3053_v21  ;;  %4064 = vmatpush1.bf16.msra.mxu0 %v6660_v37  ;;  %v6669_v37 = vld [vmem:[%s9250_s10 + $0x40] ss:$28 sps:$4 sm:$0xff]  }
 0x67f   : > { %6920 = verf.f32 %v3108_v54  ;;  %v3068_v6 = vadd.f32 %v6391_v30, %v8338_v24  ;;  %v3062_v15 = vpop.f32.mrb[101].mxu1  ;;  %4065 = vmatprep.subr.bf16.mxu0 %v6668_v11 }
 0x680   : > { %6408 = vmatprep.mubr.msk.f32.mxu0 %vm1223_vm0, %v3151_v25  ;;  %6922 = verf.f32 %v3107_v29  ;;  %v3063_v56 = vadd.f32 %v3062_v15, %v8338_v24 }
 0x681   : > { %6409 = vmatmul.mubr.msk.f32.gmra.mrb[94].mxu0 %vm1223_vm0, %v3152_v13  ;;  %v3110_v32 = vmul.f32 0.70710677, %v3068_v6  ;;  %v3094_v61 = vmul.f32 0.5, %v3068_v6 }
 0x682   : > { %v3109_v62 = vmul.f32 0.70710677, %v3063_v56  ;;  %v6394_v53 = vpop.f32.mrb[102].mxu1  ;;  %v3093_v60 = vmul.f32 0.5, %v3063_v56  ;;  %4066 = vmatpush1.bf16.msra.mxu0 %v6666_v12 }
 0x683   : > { %6924 = verf.f32 %v3110_v32  ;;  %v3078_v33 = vadd.f32 %v6394_v53, %v8338_v24  ;;  %v3072_v34 = vpop.f32.mrb[103].mxu1 }
 0x684   : > { %6926 = verf.f32 %v3109_v62  ;;  %v3073_v40 = vadd.f32 %v3072_v34, %v8338_v24  ;;  %v3092_v24 = vmul.f32 0.5, %v3058_v17 }
 0x685   : > { %v6917_v51 = vpop.eup %6916  ;;  %v3112_v63 = vmul.f32 0.70710677, %v3078_v33  ;;  %v3096_v8 = vmul.f32 0.5, %v3078_v33 }
 0x686   : > { %v6919_v59 = vpop.eup %6918  ;;  %v3138_v27 = vadd.f32 1.0, %v6917_v51  ;;  %v3111_v1 = vmul.f32 0.70710677, %v3073_v40  ;;  %v3095_v50 = vmul.f32 0.5, %v3073_v40 }
 0x687   : > { %v3137_v43 = vadd.f32 1.0, %v6919_v59  ;;  %6928 = verf.f32 %v3112_v63 }
 0x688   : > { %6930 = verf.f32 %v3111_v1  ;;  %v3154_v45 = vmul.f32 %v3138_v27, %v3090_v5 }
 0x689   : > { %v6921_v9 = vpop.eup %6920  ;;  %v3153_v28 = vmul.f32 %v3137_v43, %v3089_v41 }
 0x68a   : > { %v6923_v14 = vpop.eup %6922  ;;  %v3140_v46 = vadd.f32 1.0, %v6921_v9 }
 0x68b   : > { %v3139_v39 = vadd.f32 1.0, %v6923_v14  ;;  %6411 = vmatprep.mubr.msk.f32.mxu0 %vm1223_vm0, %v3153_v28 }
 0x68c   : > { %6412 = vmatmul.mubr.msk.f32.gmra.mrb[96].mxu0 %vm1223_vm0, %v3154_v45  ;;  %v3156_v55 = vmul.f32 %v3140_v46, %v3092_v24 }
 0x68d   : > { %v6925_v42 = vpop.eup %6924  ;;  %v3155_v18 = vmul.f32 %v3139_v39, %v3091_v47 }
 0x68e   : > { %v6927_v44 = vpop.eup %6926  ;;  %v3142_v57 = vadd.f32 1.0, %v6925_v42 }
 0x68f   : > { %v3141_v48 = vadd.f32 1.0, %v6927_v44  ;;  %6414 = vmatprep.mubr.msk.f32.mxu0 %vm1223_vm0, %v3155_v18 }
 0x690   : > { %6415 = vmatmul.mubr.msk.f32.gmra.mrb[98].mxu0 %vm1223_vm0, %v3156_v55  ;;  %v3158_v49 = vmul.f32 %v3142_v57, %v3094_v61  ;;  %v6663_v55 = vld [vmem:[%s9250_s10 + $0x8] ss:$28 sps:$4 sm:$0xff]  }
 0x691   : > { %v6929_v58 = vpop.eup %6928  ;;  %v3157_v31 = vmul.f32 %v3141_v48, %v3093_v60 }
 0x692   : > { %v6931_v26 = vpop.eup %6930  ;;  %v3144_v0 = vadd.f32 1.0, %v6929_v58 }
 0x693   : > { %v3143_v3 = vadd.f32 1.0, %v6931_v26  ;;  %6417 = vmatprep.mubr.msk.f32.mxu0 %vm1223_vm0, %v3157_v31  ;;  %v6671_v31 = vld [vmem:[%s9250_s10 + $0x44] ss:$28 sps:$4 sm:$0xff]  }
 0x694   : > { %6418 = vmatmul.mubr.msk.f32.gmra.mrb[100].mxu0 %vm1223_vm0, %v3158_v49  ;;  %v3160_v7 = vmul.f32 %v3144_v0, %v3096_v8 }
 0x695   : > { %v3159_v4 = vmul.f32 %v3143_v3, %v3095_v50 }
 0x697   : > { %6420 = vmatprep.mubr.msk.f32.mxu0 %vm1223_vm0, %v3159_v4 }
 0x698   : > { %6421 = vmatmul.mubr.msk.f32.gmra.mrb[102].mxu0 %vm1223_vm0, %v3160_v7 }
 0x748   : > { %v6401_v38 = vpop.f32.mrb[88].mxu0 }
 0x749   : > { %v3284_v22 = vadd.f32 %v6401_v38, %v8393_v10  ;;  %v3278_v52 = vpop.f32.mrb[89].mxu0 }
 0x74a   : > { %v3279_v20 = vadd.f32 %v3278_v52, %v8393_v10 }
 0x74b   : > { %v3374_v16 = vmul.f32 0.70710677, %v3284_v22  ;;  %v3358_v63 = vmul.f32 0.5, %v3284_v22 }
 0x74c   : > { %v3373_v17 = vmul.f32 0.70710677, %v3279_v20  ;;  %v6404_v19 = vpop.f32.mrb[90].mxu0  ;;  %v3357_v1 = vmul.f32 0.5, %v3279_v20 }
 0x74d   : > { %6932 = verf.f32 %v3374_v16  ;;  %v3294_v23 = vadd.f32 %v6404_v19, %v8393_v10  ;;  %v3288_v21 = vpop.f32.mrb[91].mxu0 }
 0x74e   : > { %6934 = verf.f32 %v3373_v17  ;;  %v3289_v25 = vadd.f32 %v3288_v21, %v8393_v10 }
 0x74f   : > { %v3376_v54 = vmul.f32 0.70710677, %v3294_v23  ;;  %v3360_v45 = vmul.f32 0.5, %v3294_v23 }
 0x750   : > { %v3375_v13 = vmul.f32 0.70710677, %v3289_v25  ;;  %v6407_v29 = vpop.f32.mrb[92].mxu0  ;;  %v3359_v39 = vmul.f32 0.5, %v3289_v25 }
 0x751   : > { %6936 = verf.f32 %v3376_v54  ;;  %v3304_v30 = vadd.f32 %v6407_v29, %v8393_v10  ;;  %v3298_v6 = vpop.f32.mrb[93].mxu0 }
 0x752   : > { %6938 = verf.f32 %v3375_v13  ;;  %v3299_v15 = vadd.f32 %v3298_v6, %v8393_v10 }
 0x753   : > { %v3378_v56 = vmul.f32 0.70710677, %v3304_v30  ;;  %v3362_v48 = vmul.f32 0.5, %v3304_v30 }
 0x754   : > { %v3377_v32 = vmul.f32 0.70710677, %v3299_v15  ;;  %v6410_v62 = vpop.f32.mrb[94].mxu0  ;;  %v3361_v26 = vmul.f32 0.5, %v3299_v15 }
 0x755   : > { %6940 = verf.f32 %v3378_v56  ;;  %v3314_v53 = vadd.f32 %v6410_v62, %v8393_v10  ;;  %v3308_v33 = vpop.f32.mrb[95].mxu0 }
 0x756   : > { %6942 = verf.f32 %v3377_v32  ;;  %v3309_v40 = vadd.f32 %v3308_v33, %v8393_v10 }
 0x757   : > { %v6933_v34 = vpop.eup %6932  ;;  %v3380_v27 = vmul.f32 0.70710677, %v3314_v53  ;;  %v3364_v36 = vmul.f32 0.5, %v3314_v53 }
 0x758   : > { %v6935_v51 = vpop.eup %6934  ;;  %v3406_v59 = vadd.f32 1.0, %v6933_v34  ;;  %v3379_v43 = vmul.f32 0.70710677, %v3309_v40  ;;  %v3363_v12 = vmul.f32 0.5, %v3309_v40 }
 0x759   : > { %v3405_v41 = vadd.f32 1.0, %v6935_v51  ;;  %6944 = verf.f32 %v3380_v27 }
 0x75a   : > { %v3422_v5 = vmul.f32 %v3406_v59, %v3358_v63  ;;  %6946 = verf.f32 %v3379_v43 }
 0x75b   : > { %v6937_v9 = vpop.eup %6936  ;;  %v3421_v28 = vmul.f32 %v3405_v41, %v3357_v1 }
 0x75c   : > { %v6939_v14 = vpop.eup %6938  ;;  %v3408_v46 = vadd.f32 1.0, %v6937_v9 }
 0x75d   : > { %v3441_v47 = vpack.c.bf16 %v3422_v5, %v3421_v28  ;;  %v3407_v24 = vadd.f32 1.0, %v6939_v14 }
 0x75e   : > { %v3424_v42 = vmul.f32 %v3408_v46, %v3360_v45 }
 0x75f   : > { %v3423_v18 = vmul.f32 %v3407_v24, %v3359_v39  ;;  %6427 = vmatprep.mubr.msk.bf16.mxu1 %vm1971_vm1, %v3441_v47  ;;  %v6941_v44 = vpop.eup %6940  ;;  %v6413_v58 = vpop.f32.mrb[96].mxu0 }
 0x760   : > { %v6943_v57 = vpop.eup %6942  ;;  %v3410_v61 = vadd.f32 1.0, %v6941_v44  ;;  %v3324_v0 = vadd.f32 %v6413_v58, %v8393_v10  ;;  %v3318_v50 = vpop.f32.mrb[97].mxu0 }
 0x761   : > { %v3442_v60 = vpack.c.bf16 %v3424_v42, %v3423_v18  ;;  %v3409_v49 = vadd.f32 1.0, %v6943_v57  ;;  %v3319_v8 = vadd.f32 %v3318_v50, %v8393_v10 }
 0x762   : > { %v3426_v3 = vmul.f32 %v3410_v61, %v3362_v48  ;;  %v3382_v35 = vmul.f32 0.70710677, %v3324_v0  ;;  %v3366_v59 = vmul.f32 0.5, %v3324_v0 }
 0x763   : > { %6428 = vmatmul.mubr.msk.bf16.vlgmr.msra.gmra.mrb[104].mxu1 %vm1971_vm1, %v3442_v60  ;;  %v6945_v4 = vpop.eup %6944  ;;  %v3425_v7 = vmul.f32 %v3409_v49, %v3361_v26  ;;  %v3381_v38 = vmul.f32 0.70710677, %v3319_v8  ;;  %v6416_v22 = vpop.f32.mrb[98].mxu0  ;;  %v3365_v41 = vmul.f32 0.5, %v3319_v8 }
 0x764   : > { %4177 = vmatpush1.bf16.msra.mxu1 %v6663_v55  ;;  %v6947_v2 = vpop.eup %6946  ;;  %v3412_v11 = vadd.f32 1.0, %v6945_v4  ;;  %6948 = verf.f32 %v3382_v35  ;;  %v3334_v16 = vadd.f32 %v6416_v22, %v8393_v10  ;;  %v3328_v17 = vpop.f32.mrb[99].mxu0  ;;  %v6683_v22 = vld [vmem:[%s9250_s10 + $0xb4] ss:$28 sps:$4 sm:$0xff]  }
 0x765   : > { %4178 = vmatprep.subr.bf16.mxu1 %v6671_v31  ;;  %v3443_v52 = vpack.c.bf16 %v3426_v3, %v3425_v7  ;;  %v3411_v20 = vadd.f32 1.0, %v6947_v2  ;;  %6950 = verf.f32 %v3381_v38  ;;  %v3329_v23 = vadd.f32 %v3328_v17, %v8393_v10  ;;  %v6674_v2 = vld [vmem:[%s9250_s10 + $0x74] ss:$28 sps:$4 sm:$0xff]   ;;  %v6680_v38 = vld [vmem:[%s9250_s10 + $0xac] ss:$28 sps:$4 sm:$0xff]  }
 0x766   : > { %v3428_v19 = vmul.f32 %v3412_v11, %v3364_v36  ;;  %v3384_v25 = vmul.f32 0.70710677, %v3334_v16  ;;  %v3368_v45 = vmul.f32 0.5, %v3334_v16  ;;  %v6677_v36 = vld [vmem:[%s9250_s10 + $0x7c] ss:$28 sps:$4 sm:$0xff]   ;;  %4067 = vmatprep.subr.bf16.mxu0 %v6674_v2 }
 0x767   : > { %v3427_v21 = vmul.f32 %v3411_v20, %v3363_v12  ;;  %6431 = vmatprep.mubr.msk.bf16.mxu1 %vm1971_vm1, %v3443_v52  ;;  %v3383_v54 = vmul.f32 0.70710677, %v3329_v23  ;;  %v6419_v13 = vpop.f32.mrb[100].mxu0  ;;  %v3367_v39 = vmul.f32 0.5, %v3329_v23  ;;  %v6672_v11 = vld [vmem:[%s9250_s10 + $0x70] ss:$28 sps:$4 sm:$0xff]  }
 0x768   : > { %4179 = vmatpush1.bf16.msra.mxu1 %v6669_v37  ;;  %6952 = verf.f32 %v3384_v25  ;;  %v3344_v30 = vadd.f32 %v6419_v13, %v8393_v10  ;;  %v3338_v6 = vpop.f32.mrb[101].mxu0  ;;  %v6675_v12 = vld [vmem:[%s9250_s10 + $0x78] ss:$28 sps:$4 sm:$0xff]   ;;  %4068 = vmatpush1.bf16.msra.mxu0 %v6672_v11  ;;  %v6678_v52 = vld [vmem:[%s9250_s10 + $0xa8] ss:$28 sps:$4 sm:$0xff]  }
 0x769   : > { %v3444_v29 = vpack.c.bf16 %v3428_v19, %v3427_v21  ;;  %6954 = verf.f32 %v3383_v54  ;;  %v3339_v15 = vadd.f32 %v3338_v6, %v8393_v10  ;;  %4180 = vmatprep.subr.bf16.mxu1 %v6677_v36  ;;  %v6681_v20 = vld [vmem:[%s9250_s10 + $0xb0] ss:$28 sps:$4 sm:$0xff]   ;;  %4069 = vmatprep.subr.bf16.mxu0 %v6680_v38  ;;  %v6686_v16 = vld [vmem:[%s9250_s10 + $0xe4] ss:$28 sps:$4 sm:$0xff]   ;;  %v6692_v21 = vld [vmem:[%s9250_s10 + $0x11c] ss:$28 sps:$4 sm:$0xff]  }
 0x76a   : > { %v3386_v56 = vmul.f32 0.70710677, %v3344_v30  ;;  %v3370_v55 = vmul.f32 0.5, %v3344_v30  ;;  %v6689_v17 = vld [vmem:[%s9250_s10 + $0xec] ss:$28 sps:$4 sm:$0xff]  }
 0x76b   : > { %6432 = vmatmul.mubr.msk.bf16.gmra.mrb[108].mxu1 %vm1971_vm1, %v3444_v29  ;;  %v3385_v32 = vmul.f32 0.70710677, %v3339_v15  ;;  %v6422_v62 = vpop.f32.mrb[102].mxu0  ;;  %v3369_v48 = vmul.f32 0.5, %v3339_v15  ;;  %v6684_v19 = vld [vmem:[%s9250_s10 + $0xe0] ss:$28 sps:$4 sm:$0xff]  }
 0x76c   : > { %6956 = verf.f32 %v3386_v56  ;;  %v3354_v53 = vadd.f32 %v6422_v62, %v8393_v10  ;;  %v3348_v33 = vpop.f32.mrb[103].mxu0  ;;  %4181 = vmatpush1.bf16.msra.mxu1 %v6675_v12  ;;  %4070 = vmatpush1.bf16.msra.mxu0 %v6678_v52  ;;  %v6687_v23 = vld [vmem:[%s9250_s10 + $0xe8] ss:$28 sps:$4 sm:$0xff]   ;;  %v6690_v54 = vld [vmem:[%s9250_s10 + $0x118] ss:$28 sps:$4 sm:$0xff]  }
 0x76d   : > { %6958 = verf.f32 %v3385_v32  ;;  %v3349_v34 = vadd.f32 %v3348_v33, %v8393_v10  ;;  %4182 = vmatprep.subr.bf16.mxu1 %v6683_v22  ;;  %4071 = vmatprep.subr.bf16.mxu0 %v6686_v16  ;;  %v6695_v25 = vld [vmem:[%s9250_s10 + $0x124] ss:$28 sps:$4 sm:$0xff]   ;;  %v6698_v29 = vld [vmem:[%s9250_s10 + $0x154] ss:$28 sps:$4 sm:$0xff]   ;;  %v6701_v30 = vld [vmem:[%s9250_s10 + $0x15c] ss:$28 sps:$4 sm:$0xff]  }
 0x76e   : > { %v6949_v40 = vpop.eup %6948  ;;  %v3388_v51 = vmul.f32 0.70710677, %v3354_v53  ;;  %v3372_v0 = vmul.f32 0.5, %v3354_v53  ;;  %v6693_v13 = vld [vmem:[%s9250_s10 + $0x120] ss:$28 sps:$4 sm:$0xff]   ;;  %v7455_v33 = vmov 0  }
 0x76f   : > { %v6951_v63 = vpop.eup %6950  ;;  %v3414_v27 = vadd.f32 1.0, %v6949_v40  ;;  %v3387_v1 = vmul.f32 0.70710677, %v3349_v34  ;;  %v3371_v8 = vmul.f32 0.5, %v3349_v34  ;;  %v6696_v6 = vld [vmem:[%s9250_s10 + $0x150] ss:$28 sps:$4 sm:$0xff]   ;;  %4095 = vmatprep.mubr.bf16.mxu0 %v7455_v33 }
 0x770   : > { %v3413_v43 = vadd.f32 1.0, %v6951_v63  ;;  %6960 = verf.f32 %v3388_v51  ;;  %4183 = vmatpush1.bf16.msra.mxu1 %v6681_v20  ;;  %4072 = vmatpush1.bf16.msra.mxu0 %v6684_v19  ;;  %v6699_v15 = vld [vmem:[%s9250_s10 + $0x158] ss:$28 sps:$4 sm:$0xff]   ;;  %v6704_v56 = vld [vmem:[%s9250_s10 + $0x18c] ss:$28 sps:$4 sm:$0xff]  }
 0x771   : > { %v3430_v5 = vmul.f32 %v3414_v27, %v3366_v59  ;;  %6962 = verf.f32 %v3387_v1  ;;  %4184 = vmatprep.subr.bf16.mxu1 %v6689_v17  ;;  %4073 = vmatprep.subr.bf16.mxu0 %v6692_v21  ;;  %v6707_v32 = vld [vmem:[%s9250_s10 + $0x194] ss:$28 sps:$4 sm:$0xff]   ;;  %v6702_v62 = vld [vmem:[%s9250_s10 + $0x188] ss:$28 sps:$4 sm:$0xff]  }
 0x772   : > { %v6953_v9 = vpop.eup %6952  ;;  %v3429_v28 = vmul.f32 %v3413_v43, %v3365_v41  ;;  %v6705_v53 = vld [vmem:[%s9250_s10 + $0x190] ss:$28 sps:$4 sm:$0xff]   ;;  %v8508_v40 = vld [vmem:[%s9250_s10 + $0x18] ss:$28 sps:$4 sm:$0xff]   ;;  %v8514_v51 = vld [vmem:[%s9251_s11 + $0x7] ss:$0 sm:$0xff] }
 0x773   : > { %v6955_v14 = vpop.eup %6954  ;;  %v3416_v46 = vadd.f32 1.0, %v6953_v9  ;;  %v6710_v34 = vld [vmem:[%s9250_s10 + $0x14] ss:$28 sps:$4 sm:$0xff]   ;;  %v6713_v20 = vld [vmem:[%s9250_s10 + $0x4c] ss:$28 sps:$4 sm:$0xff]  }
 0x774   : > { %v3445_v47 = vpack.c.bf16 %v3430_v5, %v3429_v28  ;;  %v3415_v24 = vadd.f32 1.0, %v6955_v14  ;;  %4185 = vmatpush1.bf16.msra.mxu1 %v6687_v23  ;;  %4074 = vmatpush1.bf16.msra.mxu0 %v6690_v54  ;;  %v6708_v22 = vld [vmem:[%s9250_s10 + $0x10] ss:$28 sps:$4 sm:$0xff]  }
 0x775   : > { %v3432_v10 = vmul.f32 %v3416_v46, %v3368_v45  ;;  %4186 = vmatprep.subr.bf16.mxu1 %v6695_v25  ;;  %4075 = vmatprep.subr.bf16.mxu0 %v6698_v29  ;;  %v6724_v21 = vld [vmem:[%s9250_s10 + $0x50] ss:$28 sps:$4 sm:$0xff]  }
 0x776   : > { %v6957_v42 = vpop.eup %6956  ;;  %v3431_v18 = vmul.f32 %v3415_v24, %v3367_v39  ;;  %6435 = vmatprep.mubr.msk.bf16.mxu1 %vm1971_vm1, %v3445_v47 }
 0x777   : > { %v6959_v44 = vpop.eup %6958  ;;  %v3418_v57 = vadd.f32 1.0, %v6957_v42 }
 0x778   : > { %v3446_v60 = vpack.c.bf16 %v3432_v10, %v3431_v18  ;;  %v3417_v61 = vadd.f32 1.0, %v6959_v44  ;;  %4187 = vmatpush1.bf16.msra.mxu1 %v6693_v13  ;;  %4076 = vmatpush1.bf16.msra.mxu0 %v6696_v6 }
 0x779   : > { %v3434_v58 = vmul.f32 %v3418_v57, %v3370_v55  ;;  %4188 = vmatprep.subr.bf16.mxu1 %v6701_v30  ;;  %4077 = vmatprep.subr.bf16.mxu0 %v6704_v56  ;;  %v6711_v30 = vld [vmem:[%s9250_s10 + $0x48] ss:$28 sps:$4 sm:$0xff]  }
 0x77a   : > { %v6961_v31 = vpop.eup %6960  ;;  %v3433_v26 = vmul.f32 %v3417_v61, %v3369_v48  ;;  %6436 = vmatmul.mubr.msk.bf16.gmra.mrb[112].mxu1 %vm1971_vm1, %v3446_v60 }
 0x77b   : > { %v6963_v49 = vpop.eup %6962  ;;  %v3420_v50 = vadd.f32 1.0, %v6961_v31 }
 0x77c   : > { %v3447_v3 = vpack.c.bf16 %v3434_v58, %v3433_v26  ;;  %v3419_v4 = vadd.f32 1.0, %v6963_v49  ;;  %4189 = vmatpush1.bf16.msra.mxu1 %v6699_v15  ;;  %4078 = vmatpush1.bf16.msra.mxu0 %v6702_v62 }
 0x77d   : > { %v3436_v7 = vmul.f32 %v3420_v50, %v3372_v0  ;;  %4190 = vmatprep.subr.bf16.mxu1 %v6707_v32  ;;  %4289 = vmatprep.subr.bf16.mxu0 %v6710_v34  ;;  %v6716_v34 = vld [vmem:[%s9250_s10 + $0x84] ss:$28 sps:$4 sm:$0xff]  }
 0x77e   : > { %v3435_v35 = vmul.f32 %v3419_v4, %v3371_v8  ;;  %6439 = vmatprep.mubr.msk.bf16.mxu1 %vm1971_vm1, %v3447_v3 }
 0x780   : > { %v3448_v37 = vpack.c.bf16 %v3436_v7, %v3435_v35  ;;  %4191 = vmatpush1.bf16.msra.mxu1 %v6705_v53 }
 0x781   : > { %6443 = vmatprep.subr.bf16.mxu1 %v8508_v40 }
 0x782   : > { %6440 = vmatmul.mubr.msk.bf16.gmra.mrb[116].mxu1 %vm1971_vm1, %v3448_v37 }
 0x783   : > { %4208 = vmatprep.mubr.bf16.mxu1 %v7455_v33 }
 0x836   : > { %v6429_v63 = vpop.f32.mrb[104].mxu1 }
 0x837   : > { %v3529_v59 = vadd.f32 %v6429_v63, %v8514_v51  ;;  %v3520_v27 = vpop.f32.mrb[105].mxu1 }
 0x838   : > { %v3521_v1 = vadd.f32 %v3520_v27, %v8514_v51  ;;  %v6430_v41 = vpop.f32.mrb[106].mxu1 }
 0x839   : > { %v3601_v43 = vmul.f32 0.70710677, %v3529_v59  ;;  %v3532_v5 = vadd.f32 %v6430_v41, %v8514_v51  ;;  %v3523_v9 = vpop.f32.mrb[107].mxu1  ;;  %v3585_v3 = vmul.f32 0.5, %v3529_v59 }
 0x83a   : > { %v3599_v28 = vmul.f32 0.70710677, %v3521_v1  ;;  %v3524_v14 = vadd.f32 %v3523_v9, %v8514_v51  ;;  %v3583_v7 = vmul.f32 0.5, %v3521_v1 }
 0x83b   : > { %6964 = verf.f32 %v3601_v43  ;;  %v3602_v45 = vmul.f32 0.70710677, %v3532_v5  ;;  %v3586_v8 = vmul.f32 0.5, %v3532_v5 }
 0x83c   : > { %6966 = verf.f32 %v3599_v28  ;;  %v3600_v46 = vmul.f32 0.70710677, %v3524_v14  ;;  %v3584_v35 = vmul.f32 0.5, %v3524_v14 }
 0x83d   : > { %6968 = verf.f32 %v3602_v45 }
 0x83e   : > { %6970 = verf.f32 %v3600_v46  ;;  %v6433_v47 = vpop.f32.mrb[108].mxu1 }
 0x83f   : > { %v3545_v39 = vadd.f32 %v6433_v47, %v8514_v51  ;;  %v3536_v24 = vpop.f32.mrb[109].mxu1 }
 0x840   : > { %v3537_v10 = vadd.f32 %v3536_v24, %v8514_v51  ;;  %v6434_v42 = vpop.f32.mrb[110].mxu1  ;;  %v6728_v24 = vld [vmem:[%s9250_s10 + $0x88] ss:$28 sps:$4 sm:$0xff]  }
 0x841   : > { %v3605_v18 = vmul.f32 0.70710677, %v3545_v39  ;;  %v3548_v44 = vadd.f32 %v6434_v42, %v8514_v51  ;;  %v3539_v55 = vpop.f32.mrb[111].mxu1  ;;  %v3589_v15 = vmul.f32 0.5, %v3545_v39  ;;  %v6714_v39 = vld [vmem:[%s9250_s10 + $0x80] ss:$28 sps:$4 sm:$0xff]  }
 0x842   : > { %v3603_v57 = vmul.f32 0.70710677, %v3537_v10  ;;  %v3540_v60 = vadd.f32 %v3539_v55, %v8514_v51  ;;  %v3587_v63 = vmul.f32 0.5, %v3537_v10  ;;  %v6729_v55 = vld [vmem:[%s9250_s10 + $0xc0] ss:$28 sps:$4 sm:$0xff]  }
 0x843   : > { %6972 = verf.f32 %v3605_v18  ;;  %v3606_v48 = vmul.f32 0.70710677, %v3548_v44  ;;  %v3590_v56 = vmul.f32 0.5, %v3548_v44  ;;  %v6719_v18 = vld [vmem:[%s9250_s10 + $0xbc] ss:$28 sps:$4 sm:$0xff]  }
 0x844   : > { %6974 = verf.f32 %v3603_v57  ;;  %v3604_v58 = vmul.f32 0.70710677, %v3540_v60  ;;  %v3588_v59 = vmul.f32 0.5, %v3540_v60 }
 0x845   : > { %v6965_v61 = vpop.eup %6964  ;;  %6976 = verf.f32 %v3606_v48 }
 0x846   : > { %v6967_v31 = vpop.eup %6966  ;;  %v3633_v26 = vadd.f32 1.0, %v6965_v61  ;;  %6978 = verf.f32 %v3604_v58  ;;  %v6717_v58 = vld [vmem:[%s9250_s10 + $0xb8] ss:$28 sps:$4 sm:$0xff]  }
 0x847   : > { %v6969_v49 = vpop.eup %6968  ;;  %v3631_v0 = vadd.f32 1.0, %v6967_v31 }
 0x848   : > { %v6971_v50 = vpop.eup %6970  ;;  %v3634_v4 = vadd.f32 1.0, %v6969_v49  ;;  %v3649_v2 = vmul.f32 %v3633_v26, %v3585_v3 }
 0x849   : > { %v3632_v37 = vadd.f32 1.0, %v6971_v50  ;;  %v3647_v11 = vmul.f32 %v3631_v0, %v3583_v7  ;;  %v6722_v0 = vld [vmem:[%s9250_s10 + $0xf4] ss:$28 sps:$4 sm:$0xff]  }
 0x84a   : > { %v3650_v36 = vmul.f32 %v3634_v4, %v3586_v8  ;;  %v6720_v7 = vld [vmem:[%s9250_s10 + $0xf0] ss:$28 sps:$4 sm:$0xff]  }
 0x84b   : > { %v3648_v12 = vmul.f32 %v3632_v37, %v3584_v35  ;;  %v6733_v35 = vld [vmem:[%s9250_s10 + $0xf8] ss:$28 sps:$4 sm:$0xff]  }
 0x84c   : > { %v8524_v38 = vpack.c.bf16 %v3650_v36, %v3649_v2  ;;  %v6734_v36 = vld [vmem:[%s9250_s10 + $0x130] ss:$28 sps:$4 sm:$0xff]  }
 0x84d   : > { %v8529_v52 = vpack.c.bf16 %v3648_v12, %v3647_v11  ;;  %v6973_v16 = vpop.eup %6972  ;;  %v6437_v23 = vpop.f32.mrb[112].mxu1 }
 0x84e   : > { %v6975_v17 = vpop.eup %6974  ;;  %v3637_v19 = vadd.f32 1.0, %v6973_v16  ;;  %v8540_v13 = vadd.f32 %v6437_v23, %v8514_v51  ;;  %v3552_v29 = vpop.f32.mrb[113].mxu1 }
 0x84f   : > { %4096 = vmatmul.mubr.bf16.vlgmr.msra.gmra.mrb[104].mxu0 %v8529_v52  ;;  %4209 = vmatmul.mubr.bf16.vlgmr.msra.gmra.mrb[120].mxu1 %v8529_v52  ;;  %v6977_v25 = vpop.eup %6976  ;;  %v3635_v54 = vadd.f32 1.0, %v6975_v17  ;;  %v8547_v62 = vadd.f32 %v3552_v29, %v8514_v51  ;;  %v6438_v53 = vpop.f32.mrb[114].mxu1 }
 0x850   : > { %4290 = vmatpush1.bf16.msra.mxu0 %v6708_v22  ;;  %4105 = vmatprep.mubr.bf16.mxu0 %v7455_v33  ;;  %v6979_v6 = vpop.eup %6978  ;;  %v3638_v32 = vadd.f32 1.0, %v6977_v25  ;;  %v3609_v1 = vmul.f32 0.70710677, %v8540_v13  ;;  %v3555_v41 = vpop.f32.mrb[115].mxu1  ;;  %v3653_v43 = vmul.f32 %v3637_v19, %v3589_v15  ;;  %v8557_v28 = vadd.f32 %v6438_v53, %v8514_v51 }
 0x851   : > { %4218 = vmatprep.mubr.bf16.mxu1 %v7455_v33  ;;  %4291 = vmatprep.subr.bf16.mxu0 %v6713_v20  ;;  %v3636_v27 = vadd.f32 1.0, %v6979_v6  ;;  %v3607_v9 = vmul.f32 0.70710677, %v8547_v62  ;;  %v3651_v14 = vmul.f32 %v3635_v54, %v3587_v63  ;;  %v8560_v46 = vadd.f32 %v3555_v41, %v8514_v51  ;;  %v6725_v20 = vld [vmem:[%s9250_s10 + $0x128] ss:$28 sps:$4 sm:$0xff]  }
 0x852   : > { %6444 = vmatpush3.bf16.msra.mxu1 %v8508_v40  ;;  %v3654_v5 = vmul.f32 %v3638_v32, %v3590_v56  ;;  %6980 = verf.f32 %v3609_v1  ;;  %v3610_v40 = vmul.f32 0.70710677, %v8557_v28  ;;  %v3593_v17 = vmul.f32 0.5, %v8540_v13  ;;  %v6730_v13 = vld [vmem:[%s9250_s10 + $0x160] ss:$28 sps:$4 sm:$0xff]  }
 0x853   : > { %6445 = vmatprep.subr.bf16.mxu1 %v6724_v21  ;;  %v3652_v45 = vmul.f32 %v3636_v27, %v3588_v59  ;;  %6982 = verf.f32 %v3607_v9  ;;  %v3608_v42 = vmul.f32 0.70710677, %v8560_v46  ;;  %v3594_v19 = vmul.f32 0.5, %v8557_v28  ;;  %v6738_v32 = vld [vmem:[%s9250_s10 + $0x168] ss:$28 sps:$4 sm:$0xff]  }
 0x854   : > { %4292 = vmatpush1.bf16.msra.mxu0 %v6711_v30  ;;  %v8562_v47 = vpack.c.bf16 %v3654_v5, %v3653_v43  ;;  %6984 = verf.f32 %v3610_v40  ;;  %v3591_v25 = vmul.f32 0.5, %v8547_v62  ;;  %v3592_v54 = vmul.f32 0.5, %v8560_v46  ;;  %v6737_v62 = vld [vmem:[%s9250_s10 + $0x19c] ss:$28 sps:$4 sm:$0xff]  }
 0x855   : > { %4293 = vmatprep.subr.bf16.mxu0 %v6716_v34  ;;  %v8571_v10 = vpack.c.bf16 %v3652_v45, %v3651_v14  ;;  %v6441_v44 = vpop.f32.mrb[116].mxu1  ;;  %6986 = verf.f32 %v3608_v42  ;;  %v6739_v1 = vld [vmem:[%s9250_s10 + $0x1a0] ss:$28 sps:$4 sm:$0xff]   ;;  %v6735_v45 = vld [vmem:[%s9250_s10 + $0x198] ss:$28 sps:$4 sm:$0xff]  }
 0x856   : > { %6446 = vmatpush3.bf16.msra.mxu1 %v6724_v21  ;;  %v8583_v57 = vadd.f32 %v6441_v44, %v8514_v51  ;;  %v3568_v60 = vpop.f32.mrb[117].mxu1  ;;  %v6732_v21 = vld [vmem:[%s9250_s10 + $0x164] ss:$28 sps:$4 sm:$0xff]  }
 0x857   : > { %4106 = vmatmul.mubr.bf16.gmra.mrb[108].mxu0 %v8524_v38  ;;  %4219 = vmatmul.mubr.bf16.gmra.mrb[124].mxu1 %v8524_v38  ;;  %v8588_v48 = vadd.f32 %v3568_v60, %v8514_v51  ;;  %v6442_v61 = vpop.f32.mrb[118].mxu1 }
 0x858   : > { %4115 = vmatprep.mubr.bf16.mxu0 %v7455_v33  ;;  %4228 = vmatprep.mubr.bf16.mxu1 %v7455_v33  ;;  %v3613_v31 = vmul.f32 0.70710677, %v8583_v57  ;;  %v8595_v26 = vadd.f32 %v6442_v61, %v8514_v51  ;;  %v3571_v49 = vpop.f32.mrb[119].mxu1  ;;  %v3597_v9 = vmul.f32 0.5, %v8583_v57 }
 0x859   : > { %4294 = vmatpush1.bf16.msra.mxu0 %v6714_v39  ;;  %6447 = vmatprep.subr.bf16.mxu1 %v6728_v24  ;;  %v3611_v50 = vmul.f32 0.70710677, %v8588_v48  ;;  %v8602_v3 = vadd.f32 %v3571_v49, %v8514_v51  ;;  %v6727_v51 = vld [vmem:[%s9250_s10 + $0x12c] ss:$28 sps:$4 sm:$0xff]   ;;  %v3595_v46 = vmul.f32 0.5, %v8588_v48 }
 0x85a   : > { %4295 = vmatprep.subr.bf16.mxu0 %v6719_v18  ;;  %6448 = vmatpush3.bf16.msra.mxu1 %v6728_v24  ;;  %6988 = verf.f32 %v3613_v31  ;;  %v3614_v8 = vmul.f32 0.70710677, %v8595_v26  ;;  %v3598_v28 = vmul.f32 0.5, %v8595_v26 }
 0x85b   : > { %6449 = vmatprep.subr.bf16.mxu1 %v6729_v55  ;;  %6990 = verf.f32 %v3611_v50  ;;  %v3612_v4 = vmul.f32 0.70710677, %v8602_v3  ;;  %v3596_v40 = vmul.f32 0.5, %v8602_v3 }
 0x85c   : > { %v6981_v37 = vpop.eup %6980  ;;  %6992 = verf.f32 %v3614_v8 }
 0x85d   : > { %4296 = vmatpush1.bf16.msra.mxu0 %v6717_v58  ;;  %v6983_v2 = vpop.eup %6982  ;;  %6994 = verf.f32 %v3612_v4  ;;  %v3641_v11 = vadd.f32 1.0, %v6981_v37 }
 0x85e   : > { %4297 = vmatprep.subr.bf16.mxu0 %v6722_v0  ;;  %6450 = vmatpush3.bf16.msra.mxu1 %v6729_v55  ;;  %v6985_v12 = vpop.eup %6984  ;;  %v3639_v22 = vadd.f32 1.0, %v6983_v2 }
 0x85f   : > { %4116 = vmatmul.mubr.bf16.gmra.mrb[112].mxu0 %v8571_v10  ;;  %4229 = vmatmul.mubr.bf16.gmra.mrb[128].mxu1 %v8571_v10  ;;  %v6987_v16 = vpop.eup %6986  ;;  %v3642_v23 = vadd.f32 1.0, %v6985_v12  ;;  %v3657_v30 = vmul.f32 %v3641_v11, %v3593_v17 }
 0x860   : > { %4125 = vmatprep.mubr.bf16.mxu0 %v7455_v33  ;;  %4238 = vmatprep.mubr.bf16.mxu1 %v7455_v33  ;;  %v3640_v29 = vadd.f32 1.0, %v6987_v16  ;;  %v3655_v15 = vmul.f32 %v3639_v22, %v3591_v25 }
 0x861   : > { %4298 = vmatpush1.bf16.msra.mxu0 %v6720_v7  ;;  %6451 = vmatprep.subr.bf16.mxu1 %v6733_v35  ;;  %v3658_v6 = vmul.f32 %v3642_v23, %v3594_v19 }
 0x862   : > { %4299 = vmatprep.subr.bf16.mxu0 %v6727_v51  ;;  %6452 = vmatpush3.bf16.msra.mxu1 %v6733_v35  ;;  %v3656_v56 = vmul.f32 %v3640_v29, %v3592_v54 }
 0x863   : > { %6453 = vmatprep.subr.bf16.mxu1 %v6734_v36  ;;  %v8638_v34 = vpack.c.bf16 %v3658_v6, %v3657_v30 }
 0x864   : > { %v6989_v53 = vpop.eup %6988  ;;  %v3731_v59 = vpack.c.bf16 %v3656_v56, %v3655_v15 }
 0x865   : > { %4300 = vmatpush1.bf16.msra.mxu0 %v6725_v20  ;;  %v6991_v63 = vpop.eup %6990  ;;  %v3645_v27 = vadd.f32 1.0, %v6989_v53 }
 0x866   : > { %4301 = vmatprep.subr.bf16.mxu0 %v6732_v21  ;;  %6454 = vmatpush3.bf16.msra.mxu1 %v6734_v36  ;;  %v6993_v41 = vpop.eup %6992  ;;  %v3643_v43 = vadd.f32 1.0, %v6991_v63 }
 0x867   : > { %4126 = vmatmul.mubr.bf16.gmra.mrb[116].mxu0 %v8562_v47  ;;  %4239 = vmatmul.mubr.bf16.gmra.mrb[132].mxu1 %v8562_v47  ;;  %v6995_v5 = vpop.eup %6994  ;;  %v3646_v14 = vadd.f32 1.0, %v6993_v41  ;;  %v3661_v24 = vmul.f32 %v3645_v27, %v3597_v9 }
 0x868   : > { %4135 = vmatprep.mubr.bf16.mxu0 %v7455_v33  ;;  %4248 = vmatprep.mubr.bf16.mxu1 %v7455_v33  ;;  %v3644_v39 = vadd.f32 1.0, %v6995_v5  ;;  %v3659_v18 = vmul.f32 %v3643_v43, %v3595_v46 }
 0x869   : > { %4302 = vmatpush1.bf16.msra.mxu0 %v6730_v13  ;;  %6455 = vmatprep.subr.bf16.mxu1 %v6738_v32  ;;  %v3662_v42 = vmul.f32 %v3646_v14, %v3598_v28 }
 0x86a   : > { %4303 = vmatprep.subr.bf16.mxu0 %v6737_v62  ;;  %6456 = vmatpush3.bf16.msra.mxu1 %v6738_v32  ;;  %v3660_v44 = vmul.f32 %v3644_v39, %v3596_v40 }
 0x86b   : > { %6457 = vmatprep.subr.bf16.mxu1 %v6739_v1  ;;  %v3734_v55 = vpack.c.bf16 %v3662_v42, %v3661_v24 }
 0x86c   : > { %v3733_v57 = vpack.c.bf16 %v3660_v44, %v3659_v18 }
 0x86d   : > { %4304 = vmatpush1.bf16.msra.mxu0 %v6735_v45 }
 0x86e   : > { %6458 = vmatpush3.bf16.msra.mxu1 %v6739_v1 }
 0x86f   : > { %4136 = vmatmul.mubr.bf16.gmra.mrb[120].mxu0 %v3731_v59  ;;  %4249 = vmatmul.mubr.bf16.gmra.mrb[136].mxu1 %v3731_v59 }
 0x870   : > { %4145 = vmatprep.mubr.bf16.mxu0 %v7455_v33  ;;  %4258 = vmatprep.mubr.bf16.mxu1 %v7455_v33 }
 0x877   : > { %4146 = vmatmul.mubr.bf16.gmra.mrb[124].mxu0 %v8638_v34  ;;  %4259 = vmatmul.mubr.bf16.gmra.mrb[140].mxu1 %v8638_v34 }
 0x878   : > { %4155 = vmatprep.mubr.bf16.mxu0 %v7455_v33  ;;  %4268 = vmatprep.mubr.bf16.mxu1 %v7455_v33 }
 0x87f   : > { %4156 = vmatmul.mubr.bf16.gmra.mrb[128].mxu0 %v3733_v57  ;;  %4269 = vmatmul.mubr.bf16.gmra.mrb[144].mxu1 %v3733_v57 }
 0x880   : > { %4165 = vmatprep.mubr.bf16.mxu0 %v7455_v33  ;;  %4278 = vmatprep.mubr.bf16.mxu1 %v7455_v33 }
 0x887   : > { %4166 = vmatmul.mubr.bf16.gmra.mrb[132].mxu0 %v3734_v55  ;;  %4279 = vmatmul.mubr.bf16.gmra.mrb[148].mxu1 %v3734_v55 }
 0x888   : > { %6459 = vmatprep.mubr.bf16.mxu1 %v8529_v52  ;;  %4321 = vmatprep.mubr.bf16.mxu0 %v7455_v33 }
 0x88f   : > { %4322 = vmatmul.mubr.bf16.vlgmr.msra.gmra.mrb[136].mxu0 %v8529_v52  ;;  %6460 = vmatmul.mubr.bf16.vlgmr.msra.gmra.mrb[152].mxu1 %v8524_v38 }
 0x890   : > { %6463 = vmatprep.mubr.bf16.mxu1 %v8571_v10  ;;  %4331 = vmatprep.mubr.bf16.mxu0 %v7455_v33 }
 0x897   : > { %4332 = vmatmul.mubr.bf16.gmra.mrb[140].mxu0 %v8524_v38  ;;  %6464 = vmatmul.mubr.bf16.gmra.mrb[156].mxu1 %v8562_v47  ;;  %v3740_v38 = vlaneseq }
 0x898   : > { %6467 = vmatprep.mubr.bf16.mxu1 %v3731_v59  ;;  %4341 = vmatprep.mubr.bf16.mxu0 %v7455_v33 }
 0x899   : > { %v8683_v52 = vshrl.u32 %v3740_v38, 7 }
 0x89b   : > { %v3742_v48 = vsub.s32 0, %v8683_v52  ;;  %v3750_v61 = vsub.s32 2, %v8683_v52  ;;  %v3754_v58 = vsub.s32 3, %v8683_v52 }
 0x89f   : > { %4342 = vmatmul.mubr.bf16.gmra.mrb[144].mxu0 %v8571_v10  ;;  %6468 = vmatmul.mubr.bf16.gmra.mrb[160].mxu1 %v8638_v34  ;;  %v5729_v10 = vld [vmem:[%s9251_s11 + $0x40] ss:$8 sm:$0x70] }
 0x8a0   : > { %6471 = vmatprep.mubr.bf16.mxu1 %v3733_v57  ;;  %4351 = vmatprep.mubr.bf16.mxu0 %v7455_v33 }
 0x8a7   : > { %4352 = vmatmul.mubr.bf16.gmra.mrb[148].mxu0 %v8562_v47  ;;  %6472 = vmatmul.mubr.bf16.gmra.mrb[164].mxu1 %v3734_v55  ;;  %v5728_v47 = vld [vmem:[%s9251_s11 + $0x40] ss:$8 sm:$0xf] }
 0x8a8   : > { %4361 = vmatprep.mubr.bf16.mxu0 %v7455_v33  ;;  %v8691_v60 = vor.u32 %v5729_v10, %v5728_v47 }
 0x8aa   : > { %v8698_v31 = vrot.slane %v8691_v60, %v3742_v48  ;;  %v8701_v26 = vrot.slane %v8691_v60, %v3750_v61  ;;  %v8707_v0 = vrot.slane %v8691_v60, %v3754_v58 }
 0x8af   : > { %4362 = vmatmul.mubr.bf16.gmra.mrb[152].mxu0 %v3731_v59 }
 0x8b0   : > { %4371 = vmatprep.mubr.bf16.mxu0 %v7455_v33 }
 0x8b7   : > { %4372 = vmatmul.mubr.bf16.gmra.mrb[156].mxu0 %v8638_v34 }
 0x8b8   : > { %4381 = vmatprep.mubr.bf16.mxu0 %v7455_v33 }
 0x8bf   : > { %4382 = vmatmul.mubr.bf16.gmra.mrb[160].mxu0 %v3733_v57 }
 0x8c0   : > { %4391 = vmatprep.mubr.bf16.mxu0 %v7455_v33  ;;  %v3746_v33 = vsub.s32 1, %v8683_v52 }
 0x8c2   : > { %v8704_v49 = vrot.slane %v8691_v60, %v3746_v33 }
 0x8c7   : > { %4392 = vmatmul.mubr.bf16.gmra.mrb[164].mxu0 %v3734_v55 }
 0x922   : > { %v4097_v50 = vpop.f32.mrb[104].mxu0  ;;  %v4210_v3 = vpop.f32.mrb[120].mxu1 }
 0x923   : > { %v4098_v8 = vadd.f32 %v4097_v50, %v8698_v31  ;;  %v4211_v4 = vadd.f32 %v4210_v3, %v8701_v26  ;;  %v4099_v7 = vpop.f32.mrb[105].mxu0  ;;  %v4212_v35 = vpop.f32.mrb[121].mxu1 }
 0x924   : > { %v4100_v37 = vadd.f32 %v4099_v7, %v8704_v49  ;;  %v4213_v51 = vadd.f32 %v4212_v35, %v8707_v0  ;;  %v4101_v2 = vpop.f32.mrb[106].mxu0  ;;  %v4214_v36 = vpop.f32.mrb[122].mxu1 }
 0x925   : > { %v5786_v11 = vmul.f32 -1.442695, %v4098_v8  ;;  %v5788_v12 = vmul.f32 -1.442695, %v4211_v4  ;;  %v4102_v22 = vadd.f32 %v4101_v2, %v8698_v31  ;;  %v4215_v20 = vadd.f32 %v4214_v36, %v8701_v26  ;;  %v4103_v16 = vpop.f32.mrb[107].mxu0  ;;  %v4216_v17 = vpop.f32.mrb[123].mxu1 }
 0x926   : > { %v5787_v19 = vmul.f32 -1.442695, %v4100_v37  ;;  %v5789_v23 = vmul.f32 -1.442695, %v4213_v51  ;;  %v4104_v21 = vadd.f32 %v4103_v16, %v8704_v49  ;;  %v4217_v25 = vadd.f32 %v4216_v17, %v8707_v0 }
 0x927   : > { %6996 = vpow2.f32 %v5786_v11  ;;  %v5793_v54 = vmul.f32 -1.442695, %v4102_v22  ;;  %v5795_v29 = vmul.f32 -1.442695, %v4215_v20 }
 0x928   : > { %6998 = vpow2.f32 %v5788_v12  ;;  %v5794_v30 = vmul.f32 -1.442695, %v4104_v21  ;;  %v5796_v6 = vmul.f32 -1.442695, %v4217_v25 }
 0x929   : > { %7000 = vpow2.f32 %v5787_v19 }
 0x92a   : > { %7002 = vpow2.f32 %v5789_v23  ;;  %v4107_v15 = vpop.f32.mrb[108].mxu0  ;;  %v4220_v56 = vpop.f32.mrb[124].mxu1 }
 0x92b   : > { %7004 = vpow2.f32 %v5793_v54  ;;  %v4108_v13 = vadd.f32 %v4107_v15, %v8698_v31  ;;  %v4221_v32 = vadd.f32 %v4220_v56, %v8701_v26  ;;  %v4109_v53 = vpop.f32.mrb[109].mxu0  ;;  %v4222_v34 = vpop.f32.mrb[125].mxu1 }
 0x92c   : > { %7006 = vpow2.f32 %v5795_v29  ;;  %v4110_v62 = vadd.f32 %v4109_v53, %v8704_v49  ;;  %v4223_v63 = vadd.f32 %v4222_v34, %v8707_v0  ;;  %v4111_v59 = vpop.f32.mrb[110].mxu0  ;;  %v4224_v27 = vpop.f32.mrb[126].mxu1 }
 0x92d   : > { %7008 = vpow2.f32 %v5794_v30  ;;  %v5800_v1 = vmul.f32 -1.442695, %v4108_v13  ;;  %v5802_v41 = vmul.f32 -1.442695, %v4221_v32  ;;  %v4112_v43 = vadd.f32 %v4111_v59, %v8698_v31  ;;  %v4113_v5 = vpop.f32.mrb[111].mxu0  ;;  %v4226_v9 = vpop.f32.mrb[127].mxu1 }
 0x92e   : > { %7010 = vpow2.f32 %v5796_v6  ;;  %v5801_v28 = vmul.f32 -1.442695, %v4110_v62  ;;  %v5803_v14 = vmul.f32 -1.442695, %v4223_v63  ;;  %v4225_v36 = vadd.f32 %v4224_v27, %v8701_v26 }
 0x92f   : > { %7012 = vpow2.f32 %v5800_v1  ;;  %v5807_v45 = vmul.f32 -1.442695, %v4112_v43  ;;  %v4114_v22 = vadd.f32 %v4113_v5, %v8704_v49  ;;  %v4227_v19 = vadd.f32 %v4226_v9, %v8707_v0 }
 0x930   : > { %7014 = vpow2.f32 %v5802_v41  ;;  %v5809_v13 = vmul.f32 -1.442695, %v4225_v36 }
 0x931   : > { %v6997_v46 = vpop.eup %6996  ;;  %7016 = vpow2.f32 %v5801_v28  ;;  %v5808_v59 = vmul.f32 -1.442695, %v4114_v22  ;;  %v5810_v43 = vmul.f32 -1.442695, %v4227_v19 }
 0x932   : > { %v6999_v40 = vpop.eup %6998  ;;  %v4835_v39 = vadd.f32 1.0, %v6997_v46  ;;  %7018 = vpow2.f32 %v5803_v14  ;;  %v4117_v24 = vpop.f32.mrb[112].mxu0 }
 0x933   : > { %v4230_v42 = vpop.f32.mrb[128].mxu1  ;;  %v7001_v18 = vpop.eup %7000  ;;  %v4837_v44 = vadd.f32 1.0, %v6999_v40  ;;  %7020 = vpow2.f32 %v5807_v45  ;;  %v4118_v29 = vadd.f32 %v4117_v24, %v8698_v31 }
 0x934   : > { %v4119_v55 = vpop.f32.mrb[113].mxu0  ;;  %v4232_v57 = vpop.f32.mrb[129].mxu1  ;;  %7022 = vrcp.f32 %v4835_v39  ;;  %v4836_v47 = vadd.f32 1.0, %v7001_v18  ;;  %v4231_v32 = vadd.f32 %v4230_v42, %v8701_v26 }
 0x935   : > { %v7003_v38 = vpop.eup %7002  ;;  %v4121_v10 = vpop.f32.mrb[114].mxu0  ;;  %7024 = vrcp.f32 %v4837_v44  ;;  %v4120_v27 = vadd.f32 %v4119_v55, %v8704_v49  ;;  %v4233_v5 = vadd.f32 %v4232_v57, %v8707_v0  ;;  %v5814_v28 = vmul.f32 -1.442695, %v4118_v29 }
 0x936   : > { %v8722_v48 = vpop.f32.mrb[130].mxu1  ;;  %v7005_v61 = vpop.eup %7004  ;;  %v4838_v33 = vadd.f32 1.0, %v7003_v38  ;;  %7026 = vrcp.f32 %v4836_v47  ;;  %v4122_v14 = vadd.f32 %v4121_v10, %v8698_v31  ;;  %v5816_v46 = vmul.f32 -1.442695, %v4231_v32 }
 0x937   : > { %v8724_v58 = vpop.f32.mrb[115].mxu0  ;;  %v7007_v50 = vpop.eup %7006  ;;  %v4842_v3 = vadd.f32 1.0, %v7005_v61  ;;  %v4235_v40 = vadd.f32 %v8722_v48, %v8701_v26  ;;  %v5815_v24 = vmul.f32 -1.442695, %v4120_v27  ;;  %v5817_v57 = vmul.f32 -1.442695, %v4233_v5 }
 0x938   : > { %v8726_v8 = vpop.f32.mrb[131].mxu1  ;;  %v7009_v4 = vpop.eup %7008  ;;  %7028 = vrcp.f32 %v4838_v33  ;;  %v4844_v7 = vadd.f32 1.0, %v7007_v50  ;;  %v4124_v42 = vadd.f32 %v8724_v58, %v8704_v49  ;;  %v5821_v61 = vmul.f32 -1.442695, %v4122_v14 }
 0x939   : > { %v7011_v35 = vpop.eup %7010  ;;  %7030 = vrcp.f32 %v4842_v3  ;;  %v4843_v37 = vadd.f32 1.0, %v7009_v4  ;;  %v4237_v38 = vadd.f32 %v8726_v8, %v8707_v0  ;;  %v5823_v8 = vmul.f32 -1.442695, %v4235_v40 }
 0x93a   : > { %v7013_v51 = vpop.eup %7012  ;;  %7032 = vrcp.f32 %v4844_v7  ;;  %v4845_v2 = vadd.f32 1.0, %v7011_v35  ;;  %v4127_v20 = vpop.f32.mrb[116].mxu0 }
 0x93b   : > { %v7015_v11 = vpop.eup %7014  ;;  %7034 = vrcp.f32 %v4843_v37  ;;  %v4849_v12 = vadd.f32 1.0, %v7013_v51  ;;  %v4240_v23 = vpop.f32.mrb[132].mxu1  ;;  %v4128_v33 = vadd.f32 %v4127_v20, %v8698_v31  ;;  %v5822_v51 = vmul.f32 -1.442695, %v4124_v42 }
 0x93c   : > { %v7017_v16 = vpop.eup %7016  ;;  %7036 = vrcp.f32 %v4845_v2  ;;  %v4851_v17 = vadd.f32 1.0, %v7015_v11  ;;  %v8732_v21 = vpop.f32.mrb[117].mxu0  ;;  %v4241_v4 = vadd.f32 %v4240_v23, %v8701_v26  ;;  %v5824_v36 = vmul.f32 -1.442695, %v4237_v38 }
 0x93d   : > { %v7019_v25 = vpop.eup %7018  ;;  %7038 = vrcp.f32 %v4849_v12  ;;  %v4850_v54 = vadd.f32 1.0, %v7017_v16  ;;  %v8740_v30 = vpop.f32.mrb[133].mxu1  ;;  %v5828_v22 = vmul.f32 -1.442695, %v4128_v33  ;;  %v4130_v5 = vadd.f32 %v8732_v21, %v8704_v49 }
 0x93e   : > { %v8742_v6 = vpop.f32.mrb[118].mxu0  ;;  %v7021_v15 = vpop.eup %7020  ;;  %7040 = vrcp.f32 %v4851_v17  ;;  %v4852_v56 = vadd.f32 1.0, %v7019_v25  ;;  %v5830_v16 = vmul.f32 -1.442695, %v4241_v4 }
 0x93f   : > { %v8745_v53 = vpop.f32.mrb[134].mxu1  ;;  %v8747_v34 = vpop.f32.mrb[119].mxu0  ;;  %7042 = vrcp.f32 %v4850_v54  ;;  %v4856_v63 = vadd.f32 1.0, %v7021_v15  ;;  %v4132_v4 = vadd.f32 %v8742_v6, %v8698_v31 }
 0x940   : > { %v7023_v62 = vpop.eup %7022  ;;  %v8750_v1 = vpop.f32.mrb[135].mxu1  ;;  %7044 = vrcp.f32 %v4852_v56 }
 0x941   : > { %v7025_v41 = vpop.eup %7024  ;;  %5171 = vst [vmem:[%s8737_s30] sm:$0xff] %v7023_v62  ;;  %7046 = vrcp.f32 %v4856_v63 }
 0x942   : > { %v7027_v9 = vpop.eup %7026  ;;  %5173 = vst [vmem:[%s8737_s30 + $0x10] sm:$0xff] %v7025_v41  ;;  %7048 = vpow2.f32 %v5809_v13  ;;  %v8762_v18 = vpop.f32.mrb[120].mxu0 }
 0x943   : > { %v7029_v45 = vpop.eup %7028  ;;  %5172 = vst [vmem:[%s8737_s30 + $0x8] sm:$0xff] %v7027_v9  ;;  %7050 = vpow2.f32 %v5808_v59  ;;  %v8764_v44 = vpop.f32.mrb[136].mxu1 }
 0x944   : > { %v7031_v39 = vpop.eup %7030  ;;  %5174 = vst [vmem:[%s8737_s30 + $0x18] sm:$0xff] %v7029_v45  ;;  %7052 = vpow2.f32 %v5810_v43  ;;  %v8769_v47 = vpop.f32.mrb[121].mxu0  ;;  %v4243_v45 = vadd.f32 %v8740_v30, %v8707_v0 }
 0x945   : > { %v7033_v55 = vpop.eup %7032  ;;  %5178 = vst [vmem:[%s8737_s30 + $0x38] sm:$0xff] %v7031_v39  ;;  %v8771_v10 = vpop.f32.mrb[137].mxu1  ;;  %7054 = vpow2.f32 %v5814_v28 }
 0x946   : > { %v7035_v48 = vpop.eup %7034  ;;  %5180 = vst [vmem:[%s8737_s30 + $0x48] sm:$0xff] %v7033_v55  ;;  %v8775_v58 = vpop.f32.mrb[122].mxu0  ;;  %7056 = vpow2.f32 %v5816_v46 }
 0x947   : > { %v8777_v50 = vpop.f32.mrb[138].mxu1  ;;  %v7037_v3 = vpop.eup %7036  ;;  %5179 = vst [vmem:[%s8737_s30 + $0x40] sm:$0xff] %v7035_v48  ;;  %7058 = vpow2.f32 %v5815_v24 }
 0x948   : > { %v8781_v7 = vpop.f32.mrb[123].mxu0  ;;  %v4256_v35 = vpop.f32.mrb[139].mxu1  ;;  %5181 = vst [vmem:[%s8737_s30 + $0x50] sm:$0xff] %v7037_v3  ;;  %7060 = vpow2.f32 %v5817_v57 }
 0x949   : > { %v7039_v37 = vpop.eup %7038  ;;  %v8786_v11 = vadd.f32 %v4256_v35, %v8707_v0  ;;  %7062 = vpow2.f32 %v5821_v61  ;;  %v5829_v61 = vmul.f32 -1.442695, %v4130_v5 }
 0x94a   : > { %v7041_v2 = vpop.eup %7040  ;;  %5185 = vst [vmem:[%s8737_s30 + $0x70] sm:$0xff] %v7039_v37  ;;  %7064 = vpow2.f32 %v5823_v8  ;;  %v4147_v19 = vpop.f32.mrb[124].mxu0  ;;  %v8820_v8 = vmul.f32 -1.442695, %v4243_v45 }
 0x94b   : > { %v7043_v12 = vpop.eup %7042  ;;  %5187 = vst [vmem:[%s8737_s30 + $0x80] sm:$0xff] %v7041_v2  ;;  %7066 = vpow2.f32 %v5822_v51  ;;  %v4260_v23 = vpop.f32.mrb[140].mxu1  ;;  %v8793_v54 = vadd.f32 %v4147_v19, %v8698_v31  ;;  %v4245_v2 = vadd.f32 %v8745_v53, %v8701_v26  ;;  %v4134_v53 = vadd.f32 %v8747_v34, %v8704_v49 }
 0x94c   : > { %v7045_v20 = vpop.eup %7044  ;;  %5186 = vst [vmem:[%s8737_s30 + $0x78] sm:$0xff] %v7043_v12  ;;  %7068 = vpow2.f32 %v5824_v36  ;;  %v8796_v29 = vadd.f32 %v4260_v23, %v8701_v26  ;;  %v4149_v15 = vpop.f32.mrb[125].mxu0  ;;  %v4138_v34 = vadd.f32 %v8762_v18, %v8698_v31  ;;  %v4251_v18 = vadd.f32 %v8764_v44, %v8701_v26 }
 0x94d   : > { %v7047_v17 = vpop.eup %7046  ;;  %5188 = vst [vmem:[%s8737_s30 + $0x88] sm:$0xff] %v7045_v20  ;;  %v4262_v56 = vpop.f32.mrb[141].mxu1  ;;  %7070 = vpow2.f32 %v5828_v22  ;;  %v8799_v62 = vadd.f32 %v4149_v15, %v8704_v49  ;;  %v4253_v44 = vadd.f32 %v8771_v10, %v8707_v0 }
 0x94e   : > { %v7049_v25 = vpop.eup %7048  ;;  %5192 = vst [vmem:[%s8737_s30 + $0xa8] sm:$0xff] %v7047_v17  ;;  %v8802_v63 = vadd.f32 %v4262_v56, %v8707_v0  ;;  %v4151_v59 = vpop.f32.mrb[126].mxu0  ;;  %7072 = vpow2.f32 %v5830_v16 }
 0x94f   : > { %v7051_v13 = vpop.eup %7050  ;;  %v4858_v32 = vadd.f32 1.0, %v7049_v25  ;;  %v4264_v27 = vpop.f32.mrb[142].mxu1  ;;  %v8809_v24 = vadd.f32 %v4151_v59, %v8698_v31 }
 0x950   : > { %v7053_v41 = vpop.eup %7052  ;;  %v4857_v43 = vadd.f32 1.0, %v7051_v13  ;;  %v4153_v9 = vpop.f32.mrb[127].mxu0  ;;  %v8812_v42 = vadd.f32 %v4264_v27, %v8701_v26 }
 0x951   : > { %v7055_v28 = vpop.eup %7054  ;;  %7074 = vrcp.f32 %v4858_v32  ;;  %v4859_v14 = vadd.f32 1.0, %v7053_v41  ;;  %v4266_v46 = vpop.f32.mrb[143].mxu1  ;;  %v8815_v57 = vadd.f32 %v4153_v9, %v8704_v49  ;;  %v5835_v41 = vmul.f32 -1.442695, %v4132_v4 }
 0x952   : > { %v7057_v40 = vpop.eup %7056  ;;  %7076 = vrcp.f32 %v4857_v43  ;;  %v4863_v39 = vadd.f32 1.0, %v7055_v28  ;;  %v8818_v38 = vadd.f32 %v4266_v46, %v8707_v0  ;;  %v4157_v35 = vpop.f32.mrb[128].mxu0  ;;  %v4247_v43 = vadd.f32 %v8750_v1, %v8707_v0 }
 0x953   : > { %v7059_v55 = vpop.eup %7058  ;;  %7078 = vrcp.f32 %v4859_v14  ;;  %v4865_v21 = vadd.f32 1.0, %v7057_v40  ;;  %v8827_v36 = vadd.f32 %v4157_v35, %v8698_v31  ;;  %v4270_v12 = vpop.f32.mrb[144].mxu1 }
 0x954   : > { %v7061_v30 = vpop.eup %7060  ;;  %7080 = vrcp.f32 %v4863_v39  ;;  %v4864_v48 = vadd.f32 1.0, %v7059_v55  ;;  %v4159_v22 = vpop.f32.mrb[129].mxu0  ;;  %v8830_v17 = vadd.f32 %v4270_v12, %v8701_v26  ;;  %v5837_v55 = vmul.f32 -1.442695, %v4245_v2 }
 0x955   : > { %v7063_v33 = vpop.eup %7062  ;;  %7082 = vrcp.f32 %v4865_v21  ;;  %v4866_v3 = vadd.f32 1.0, %v7061_v30  ;;  %v8833_v6 = vadd.f32 %v4159_v22, %v8704_v49  ;;  %v4272_v19 = vpop.f32.mrb[145].mxu1 }
 0x956   : > { %v7065_v37 = vpop.eup %7064  ;;  %7084 = vrcp.f32 %v4864_v48  ;;  %v4870_v51 = vadd.f32 1.0, %v7063_v33  ;;  %v4161_v23 = vpop.f32.mrb[130].mxu0  ;;  %v8838_v56 = vadd.f32 %v4272_v19, %v8707_v0  ;;  %v5836_v48 = vmul.f32 -1.442695, %v4134_v53 }
 0x957   : > { %v7067_v20 = vpop.eup %7066  ;;  %7086 = vrcp.f32 %v4866_v3  ;;  %v4872_v16 = vadd.f32 1.0, %v7065_v37  ;;  %v4274_v13 = vpop.f32.mrb[146].mxu1  ;;  %v8845_v14 = vadd.f32 %v4161_v23, %v8698_v31  ;;  %v5838_v33 = vmul.f32 -1.442695, %v4247_v43 }
 0x958   : > { %v7069_v25 = vpop.eup %7068  ;;  %7088 = vrcp.f32 %v4870_v51  ;;  %v4871_v15 = vadd.f32 1.0, %v7067_v20  ;;  %v4163_v32 = vpop.f32.mrb[131].mxu0  ;;  %v8848_v40 = vadd.f32 %v4274_v13, %v8701_v26  ;;  %v4140_v3 = vadd.f32 %v8769_v47, %v8704_v49 }
 0x959   : > { %v7071_v59 = vpop.eup %7070  ;;  %7090 = vrcp.f32 %v4872_v16  ;;  %v4873_v27 = vadd.f32 1.0, %v7069_v25  ;;  %v4276_v5 = vpop.f32.mrb[147].mxu1  ;;  %v8851_v39 = vadd.f32 %v4163_v32, %v8704_v49  ;;  %v5842_v47 = vmul.f32 -1.442695, %v4138_v34 }
 0x95a   : > { %v7073_v9 = vpop.eup %7072  ;;  %7092 = vrcp.f32 %v4871_v15  ;;  %v4877_v28 = vadd.f32 1.0, %v7071_v59  ;;  %v8857_v21 = vadd.f32 %v4276_v5, %v8707_v0  ;;  %v4167_v4 = vpop.f32.mrb[132].mxu0  ;;  %v5844_v25 = vmul.f32 -1.442695, %v4251_v18 }
 0x95b   : > { %v7075_v45 = vpop.eup %7074  ;;  %7094 = vrcp.f32 %v4873_v27  ;;  %v4879_v46 = vadd.f32 1.0, %v7073_v9  ;;  %v4280_v35 = vpop.f32.mrb[148].mxu1  ;;  %v8866_v51 = vadd.f32 %v4167_v4, %v8698_v31  ;;  %v4142_v15 = vadd.f32 %v8775_v58, %v8698_v31 }
 0x95c   : > { %v7077_v1 = vpop.eup %7076  ;;  %5194 = vst [vmem:[%s8737_s30 + $0xb8] sm:$0xff] %v7075_v45  ;;  %7096 = vrcp.f32 %v4877_v28  ;;  %v8869_v2 = vadd.f32 %v4280_v35, %v8701_v26  ;;  %v4169_v12 = vpop.f32.mrb[133].mxu0  ;;  %v5843_v59 = vmul.f32 -1.442695, %v4140_v3  ;;  %v4255_v27 = vadd.f32 %v8777_v50, %v8701_v26 }
 0x95d   : > { %v7079_v30 = vpop.eup %7078  ;;  %5193 = vst [vmem:[%s8737_s30 + $0xb0] sm:$0xff] %v7077_v1  ;;  %7098 = vrcp.f32 %v4879_v46  ;;  %v4282_v22 = vpop.f32.mrb[149].mxu1  ;;  %v8874_v16 = vadd.f32 %v4169_v12, %v8704_v49  ;;  %v5845_v50 = vmul.f32 -1.442695, %v4253_v44  ;;  %v5849_v28 = vmul.f32 -1.442695, %v4142_v15 }
 0x95e   : > { %v7081_v37 = vpop.eup %7080  ;;  %5195 = vst [vmem:[%s8737_s30 + $0xc0] sm:$0xff] %v7079_v30  ;;  %7100 = vpow2.f32 %v5829_v61  ;;  %v8877_v61 = vadd.f32 %v4282_v22, %v8707_v0  ;;  %v4171_v10 = vpop.f32.mrb[134].mxu0 }
 0x95f   : > { %v7083_v20 = vpop.eup %7082  ;;  %5199 = vst [vmem:[%s8737_s30 + $0xe0] sm:$0xff] %v7081_v37  ;;  %7102 = vpow2.f32 %v8820_v8  ;;  %v4284_v19 = vpop.f32.mrb[150].mxu1  ;;  %v8883_v53 = vadd.f32 %v4171_v10, %v8698_v31  ;;  %v4144_v31 = vadd.f32 %v8781_v7, %v8704_v49  ;;  %v5851_v7 = vmul.f32 -1.442695, %v4255_v27 }
 0x960   : > { %v7085_v23 = vpop.eup %7084  ;;  %5201 = vst [vmem:[%s8737_s30 + $0xf0] sm:$0xff] %v7083_v20  ;;  %7104 = vpow2.f32 %v5835_v41  ;;  %v4173_v8 = vpop.f32.mrb[135].mxu0  ;;  %v8889_v41 = vadd.f32 %v4284_v19, %v8701_v26 }
 0x961   : > { %v4286_v13 = vpop.f32.mrb[151].mxu1  ;;  %v7087_v32 = vpop.eup %7086  ;;  %5200 = vst [vmem:[%s8737_s30 + $0xe8] sm:$0xff] %v7085_v23  ;;  %7106 = vpow2.f32 %v5837_v55  ;;  %v8895_v58 = vadd.f32 %v4173_v8, %v8704_v49  ;;  %v5850_v46 = vmul.f32 -1.442695, %v4144_v31 }
 0x962   : > { %v7089_v43 = vpop.eup %7088  ;;  %5202 = vst [vmem:[%s8737_s30 + $0xf8] sm:$0xff] %v7087_v32  ;;  %7108 = vpow2.f32 %v5836_v48  ;;  %v8898_v5 = vadd.f32 %v4286_v13, %v8707_v0  ;;  %v8903_v49 = vpop.f32.mrb[136].mxu0 }
 0x963   : > { %v7091_v9 = vpop.eup %7090  ;;  %5206 = vst [vmem:[%s8737_s30 + $0x118] sm:$0xff] %v7089_v43  ;;  %7110 = vpow2.f32 %v5838_v33  ;;  %v8905_v45 = vpop.f32.mrb[152].mxu1 }
 0x964   : > { %v7093_v26 = vpop.eup %7092  ;;  %5208 = vst [vmem:[%s8737_s30 + $0x128] sm:$0xff] %v7091_v9  ;;  %7112 = vpow2.f32 %v5842_v47  ;;  %v8908_v1 = vpop.f32.mrb[137].mxu0 }
 0x965   : > { %v7095_v34 = vpop.eup %7094  ;;  %5207 = vst [vmem:[%s8737_s30 + $0x120] sm:$0xff] %v7093_v26  ;;  %7114 = vpow2.f32 %v5844_v25  ;;  %v8910_v55 = vpop.f32.mrb[153].mxu1 }
 0x966   : > { %v7097_v0 = vpop.eup %7096  ;;  %5209 = vst [vmem:[%s8737_s30 + $0x130] sm:$0xff] %v7095_v34  ;;  %7116 = vpow2.f32 %v5843_v59  ;;  %v8913_v30 = vpop.f32.mrb[138].mxu0 }
 0x967   : > { %v7099_v18 = vpop.eup %7098  ;;  %5213 = vst [vmem:[%s8737_s30 + $0x150] sm:$0xff] %v7097_v0  ;;  %7118 = vpow2.f32 %v5845_v50  ;;  %v8915_v48 = vpop.f32.mrb[154].mxu1 }
 0x968   : > { %v7101_v33 = vpop.eup %7100  ;;  %5215 = vst [vmem:[%s8737_s30 + $0x160] sm:$0xff] %v7099_v18  ;;  %7120 = vpow2.f32 %v5849_v28  ;;  %v8918_v3 = vpop.f32.mrb[139].mxu0 }
 0x969   : > { %v8920_v4 = vpop.f32.mrb[155].mxu1  ;;  %v7103_v35 = vpop.eup %7102  ;;  %v4878_v37 = vadd.f32 1.0, %v7101_v33  ;;  %7122 = vpow2.f32 %v5851_v7 }
 0x96a   : > { %v7105_v44 = vpop.eup %7104  ;;  %v4880_v12 = vadd.f32 1.0, %v7103_v35  ;;  %7124 = vpow2.f32 %v5850_v46  ;;  %v8922_v25 = vpop.f32.mrb[140].mxu0 }
 0x96b   : > { %v7107_v22 = vpop.eup %7106  ;;  %7126 = vrcp.f32 %v4878_v37  ;;  %v4884_v20 = vadd.f32 1.0, %v7105_v44  ;;  %v8924_v13 = vpop.f32.mrb[156].mxu1 }
 0x96c   : > { %v7109_v47 = vpop.eup %7108  ;;  %7128 = vrcp.f32 %v4880_v12  ;;  %v4886_v10 = vadd.f32 1.0, %v7107_v22  ;;  %v8926_v32 = vpop.f32.mrb[141].mxu0  ;;  %v5852_v12 = vmul.f32 -1.442695, %v8786_v11  ;;  %v5857_v11 = vmul.f32 -1.442695, %v8799_v62 }
 0x96d   : > { %v7111_v19 = vpop.eup %7110  ;;  %7130 = vrcp.f32 %v4884_v20  ;;  %v4885_v23 = vadd.f32 1.0, %v7109_v47  ;;  %v8928_v43 = vpop.f32.mrb[157].mxu1  ;;  %v5856_v47 = vmul.f32 -1.442695, %v8793_v54  ;;  %v5863_v62 = vmul.f32 -1.442695, %v8809_v24 }
 0x96e   : > { %v7113_v15 = vpop.eup %7112  ;;  %7132 = vrcp.f32 %v4886_v10  ;;  %v4887_v8 = vadd.f32 1.0, %v7111_v19  ;;  %v8930_v31 = vpop.f32.mrb[142].mxu0  ;;  %v5866_v24 = vmul.f32 -1.442695, %v8818_v38 }
 0x96f   : > { %v7115_v59 = vpop.eup %7114  ;;  %7134 = vrcp.f32 %v4885_v23  ;;  %v4891_v27 = vadd.f32 1.0, %v7113_v15  ;;  %v8932_v26 = vpop.f32.mrb[158].mxu1  ;;  %v5858_v23 = vmul.f32 -1.442695, %v8796_v29  ;;  %v5859_v29 = vmul.f32 -1.442695, %v8802_v63 }
 0x970   : > { %v7117_v9 = vpop.eup %7116  ;;  %7136 = vrcp.f32 %v4887_v8  ;;  %v4893_v50 = vadd.f32 1.0, %v7115_v59  ;;  %v8934_v28 = vpop.f32.mrb[143].mxu0  ;;  %v3758_v63 = vsub.s32 4, %v8683_v52 }
 0x971   : > { %v7119_v34 = vpop.eup %7118  ;;  %7138 = vrcp.f32 %v4891_v27  ;;  %v4892_v7 = vadd.f32 1.0, %v7117_v9  ;;  %v8936_v0 = vpop.f32.mrb[159].mxu1 }
 0x972   : > { %v7121_v46 = vpop.eup %7120  ;;  %7140 = vrcp.f32 %v4893_v50  ;;  %v4894_v18 = vadd.f32 1.0, %v7119_v34  ;;  %v8940_v10 = vpop.f32.mrb[144].mxu0 }
 0x973   : > { %v7123_v33 = vpop.eup %7122  ;;  %7142 = vrcp.f32 %v4892_v7  ;;  %v4898_v35 = vadd.f32 1.0, %v7121_v46  ;;  %v8944_v15 = vpop.f32.mrb[160].mxu1 }
 0x974   : > { %v7125_v37 = vpop.eup %7124  ;;  %7144 = vrcp.f32 %v4894_v18  ;;  %v4900_v44 = vadd.f32 1.0, %v7123_v33  ;;  %v8946_v8 = vpop.f32.mrb[145].mxu0  ;;  %v5865_v33 = vmul.f32 -1.442695, %v8812_v42 }
 0x975   : > { %v7127_v22 = vpop.eup %7126  ;;  %7146 = vrcp.f32 %v4898_v35  ;;  %v4899_v20 = vadd.f32 1.0, %v7125_v37  ;;  %v8950_v27 = vpop.f32.mrb[161].mxu1  ;;  %v5864_v37 = vmul.f32 -1.442695, %v8815_v57  ;;  %v5872_v57 = vmul.f32 -1.442695, %v8830_v17 }
 0x976   : > { %v7129_v19 = vpop.eup %7128  ;;  %5214 = vst [vmem:[%s8737_s30 + $0x158] sm:$0xff] %v7127_v22  ;;  %7148 = vrcp.f32 %v4900_v44  ;;  %v8952_v54 = vpop.f32.mrb[146].mxu0  ;;  %v5870_v22 = vmul.f32 -1.442695, %v8827_v36  ;;  %v5871_v36 = vmul.f32 -1.442695, %v8833_v6 }
 0x977   : > { %v7131_v59 = vpop.eup %7130  ;;  %5216 = vst [vmem:[%s8737_s30 + $0x168] sm:$0xff] %v7129_v19  ;;  %7150 = vrcp.f32 %v4899_v20  ;;  %v8956_v50 = vpop.f32.mrb[162].mxu1  ;;  %v8980_v19 = vrot.slane %v8691_v60, %v3758_v63  ;;  %v5873_v17 = vmul.f32 -1.442695, %v8838_v56 }
 0x978   : > { %v7133_v9 = vpop.eup %7132  ;;  %5220 = vst [vmem:[%s8737_s30 + $0x188] sm:$0xff] %v7131_v59  ;;  %7152 = vpow2.f32 %v5852_v12  ;;  %v8958_v34 = vpop.f32.mrb[147].mxu0 }
 0x979   : > { %v7135_v7 = vpop.eup %7134  ;;  %5222 = vst [vmem:[%s8737_s30 + $0x198] sm:$0xff] %v7133_v9  ;;  %7154 = vpow2.f32 %v5856_v47  ;;  %v8962_v46 = vpop.f32.mrb[163].mxu1 }
 0x97a   : > { %v7137_v18 = vpop.eup %7136  ;;  %5221 = vst [vmem:[%s8737_s30 + $0x190] sm:$0xff] %v7135_v7  ;;  %7156 = vpow2.f32 %v5858_v23  ;;  %v8973_v42 = vpop.f32.mrb[148].mxu0 }
 0x97b   : > { %v7139_v35 = vpop.eup %7138  ;;  %5223 = vst [vmem:[%s8737_s30 + $0x1a0] sm:$0xff] %v7137_v18  ;;  %7158 = vpow2.f32 %v5857_v11  ;;  %v8975_v20 = vpop.f32.mrb[164].mxu1 }
 0x97c   : > { %v7141_v44 = vpop.eup %7140  ;;  %5227 = vst [vmem:[%s8737_s30 + $0x1c0] sm:$0xff] %v7139_v35  ;;  %7160 = vpow2.f32 %v5859_v29  ;;  %v8982_v23 = vpop.f32.mrb[149].mxu0 }
 0x97d   : > { %v7143_v12 = vpop.eup %7142  ;;  %5229 = vst [vmem:[%s8737_s30 + $0x1d0] sm:$0xff] %v7141_v44  ;;  %7162 = vpow2.f32 %v5863_v62  ;;  %v8984_v38 = vpop.f32.mrb[165].mxu1 }
 0x97e   : > { %v7145_v47 = vpop.eup %7144  ;;  %5228 = vst [vmem:[%s8737_s30 + $0x1c8] sm:$0xff] %v7143_v12  ;;  %7164 = vpow2.f32 %v5865_v33  ;;  %v4357_v11 = vpop.f32.mrb[150].mxu0 }
 0x97f   : > { %v7147_v59 = vpop.eup %7146  ;;  %5230 = vst [vmem:[%s8737_s30 + $0x1d8] sm:$0xff] %v7145_v47  ;;  %7166 = vpow2.f32 %v5864_v37  ;;  %v8988_v9 = vpop.f32.mrb[166].mxu1  ;;  %v8993_v7 = vadd.f32 %v4357_v11, %v8980_v19 }
 0x980   : > { %v7149_v29 = vpop.eup %7148  ;;  %5234 = vst [vmem:[%s8737_s30 + $0x1f8] sm:$0xff] %v7147_v59  ;;  %7168 = vpow2.f32 %v5866_v24  ;;  %v8995_v62 = vpop.f32.mrb[151].mxu0 }
 0x981   : > { %v8997_v18 = vpop.f32.mrb[167].mxu1  ;;  %v7151_v33 = vpop.eup %7150  ;;  %5236 = vst [vmem:[%s8737_s30 + $0x208] sm:$0xff] %v7149_v29  ;;  %7170 = vpow2.f32 %v5870_v22 }
 0x982   : > { %v7153_v63 = vpop.eup %7152  ;;  %5235 = vst [vmem:[%s8737_s30 + $0x200] sm:$0xff] %v7151_v33  ;;  %7172 = vpow2.f32 %v5872_v57  ;;  %v4363_v12 = vpop.f32.mrb[152].mxu0 }
 0x983   : > { %v7155_v6 = vpop.eup %7154  ;;  %v4901_v35 = vadd.f32 1.0, %v7153_v63  ;;  %7174 = vpow2.f32 %v5871_v36  ;;  %v9002_v11 = vadd.f32 %v4363_v12, %v8980_v19  ;;  %v9004_v22 = vpop.f32.mrb[153].mxu0 }
 0x984   : > { %v7157_v37 = vpop.eup %7156  ;;  %v4905_v44 = vadd.f32 1.0, %v7155_v6  ;;  %7176 = vpow2.f32 %v5873_v17  ;;  %v4367_v33 = vpop.f32.mrb[154].mxu0 }
 0x985   : > { %v7159_v56 = vpop.eup %7158  ;;  %7178 = vrcp.f32 %v4901_v35  ;;  %v4907_v24 = vadd.f32 1.0, %v7157_v37  ;;  %9254 = vst [vmem:[#allocation2_spill] sm:$0xff] %v9002_v11  ;;  %v9007_v17 = vadd.f32 %v4367_v33, %v8980_v19  ;;  %v9009_v6 = vpop.f32.mrb[155].mxu0 }
 0x986   : > { %v7161_v47 = vpop.eup %7160  ;;  %7180 = vrcp.f32 %v4905_v44  ;;  %v4906_v59 = vadd.f32 1.0, %v7159_v56  ;;  %9256 = vst [vmem:[#allocation4_spill] sm:$0xff] %v9009_v6 }
 0x987   : > { %v7163_v29 = vpop.eup %7162  ;;  %7182 = vrcp.f32 %v4907_v24  ;;  %v4908_v57 = vadd.f32 1.0, %v7161_v47  ;;  %9255 = vst [vmem:[#allocation3_spill] sm:$0xff] %v9007_v17  ;;  %v3762_v24 = vsub.s32 5, %v8683_v52 }
 0x988   : > { %v7165_v36 = vpop.eup %7164  ;;  %7184 = vrcp.f32 %v4906_v59  ;;  %v4912_v63 = vadd.f32 1.0, %v7163_v29 }
 0x989   : > { %v7167_v35 = vpop.eup %7166  ;;  %7186 = vrcp.f32 %v4908_v57  ;;  %v4914_v37 = vadd.f32 1.0, %v7165_v36  ;;  %v5877_v36 = vmul.f32 -1.442695, %v8845_v14  ;;  %v5878_v14 = vmul.f32 -1.442695, %v8851_v39 }
 0x98a   : > { %v7169_v44 = vpop.eup %7168  ;;  %7188 = vrcp.f32 %v4912_v63  ;;  %v4913_v56 = vadd.f32 1.0, %v7167_v35  ;;  %v4373_v17 = vpop.f32.mrb[156].mxu0  ;;  %v5884_v39 = vmul.f32 -1.442695, %v8866_v51  ;;  %v5891_v51 = vmul.f32 -1.442695, %v8883_v53 }
 0x98b   : > { %v7171_v12 = vpop.eup %7170  ;;  %7190 = vrcp.f32 %v4914_v37  ;;  %v4915_v11 = vadd.f32 1.0, %v7169_v44  ;;  %v9014_v63 = vadd.f32 %v4373_v17, %v8980_v19  ;;  %v9016_v35 = vpop.f32.mrb[157].mxu0  ;;  %v5892_v53 = vmul.f32 -1.442695, %v8895_v58 }
 0x98c   : > { %v7173_v47 = vpop.eup %7172  ;;  %7192 = vrcp.f32 %v4913_v56  ;;  %v4919_v59 = vadd.f32 1.0, %v7171_v12  ;;  %v9020_v56 = vrot.slane %v8691_v60, %v3762_v24  ;;  %v4377_v12 = vpop.f32.mrb[158].mxu0 }
 0x98d   : > { %v7175_v29 = vpop.eup %7174  ;;  %7194 = vrcp.f32 %v4915_v11  ;;  %v4921_v33 = vadd.f32 1.0, %v7173_v47  ;;  %v5879_v11 = vmul.f32 -1.442695, %v8848_v40  ;;  %v9025_v17 = vadd.f32 %v4377_v12, %v8980_v19 }
 0x98e   : > { %v7177_v6 = vpop.eup %7176  ;;  %7196 = vrcp.f32 %v4919_v59  ;;  %v4920_v57 = vadd.f32 1.0, %v7175_v29  ;;  %v4379_v59 = vpop.f32.mrb[159].mxu0  ;;  %v5880_v40 = vmul.f32 -1.442695, %v8857_v21  ;;  %v5885_v21 = vmul.f32 -1.442695, %v8874_v16 }
 0x98f   : > { %v7179_v37 = vpop.eup %7178  ;;  %7198 = vrcp.f32 %v4921_v33  ;;  %v4922_v44 = vadd.f32 1.0, %v7177_v6  ;;  %v9030_v6 = vadd.f32 %v4379_v59, %v9020_v56  ;;  %v5887_v12 = vmul.f32 -1.442695, %v8877_v61 }
 0x990   : > { %v7181_v47 = vpop.eup %7180  ;;  %5237 = vst [vmem:[%s8737_s30 + $0x210] sm:$0xff] %v7179_v37  ;;  %7200 = vrcp.f32 %v4920_v57  ;;  %v5886_v57 = vmul.f32 -1.442695, %v8869_v2  ;;  %v4324_v2 = vadd.f32 %v8903_v49, %v8980_v19  ;;  %v5893_v61 = vmul.f32 -1.442695, %v8889_v41 }
 0x991   : > { %v7183_v29 = vpop.eup %7182  ;;  %5241 = vst [vmem:[%s8737_s30 + $0x230] sm:$0xff] %v7181_v47  ;;  %7202 = vrcp.f32 %v4922_v44  ;;  %v5894_v41 = vmul.f32 -1.442695, %v8898_v5 }
 0x992   : > { %v7185_v24 = vpop.eup %7184  ;;  %5243 = vst [vmem:[%s8737_s30 + $0x240] sm:$0xff] %v7183_v29  ;;  %7204 = vpow2.f32 %v5877_v36  ;;  %v4383_v36 = vpop.f32.mrb[160].mxu0 }
 0x993   : > { %v7187_v33 = vpop.eup %7186  ;;  %5242 = vst [vmem:[%s8737_s30 + $0x238] sm:$0xff] %v7185_v24  ;;  %7206 = vpow2.f32 %v5879_v11  ;;  %v9045_v11 = vadd.f32 %v4383_v36, %v8980_v19  ;;  %v4385_v16 = vpop.f32.mrb[161].mxu0 }
 0x994   : > { %v7189_v37 = vpop.eup %7188  ;;  %5244 = vst [vmem:[%s8737_s30 + $0x248] sm:$0xff] %v7187_v33  ;;  %7208 = vpow2.f32 %v5878_v14  ;;  %v9050_v59 = vadd.f32 %v4385_v16, %v9020_v56  ;;  %v4387_v29 = vpop.f32.mrb[162].mxu0 }
 0x995   : > { %v7191_v44 = vpop.eup %7190  ;;  %5248 = vst [vmem:[%s8737_s30 + $0x268] sm:$0xff] %v7189_v37  ;;  %7210 = vpow2.f32 %v5880_v40  ;;  %v9055_v49 = vadd.f32 %v4387_v29, %v8980_v19  ;;  %v4389_v24 = vpop.f32.mrb[163].mxu0  ;;  %v5790_v37 = vmul.f32 -1.442695, %v4324_v2 }
 0x996   : > { %v7193_v47 = vpop.eup %7192  ;;  %5250 = vst [vmem:[%s8737_s30 + $0x278] sm:$0xff] %v7191_v44  ;;  %7212 = vpow2.f32 %v5884_v39  ;;  %v9060_v33 = vadd.f32 %v4389_v24, %v9020_v56  ;;  %v3766_v44 = vsub.s32 6, %v8683_v52 }
 0x997   : > { %v7195_v14 = vpop.eup %7194  ;;  %5249 = vst [vmem:[%s8737_s30 + $0x270] sm:$0xff] %v7193_v47  ;;  %7214 = vpow2.f32 %v5886_v57 }
 0x998   : > { %v7197_v40 = vpop.eup %7196  ;;  %5251 = vst [vmem:[%s8737_s30 + $0x280] sm:$0xff] %v7195_v14  ;;  %7216 = vpow2.f32 %v5885_v21  ;;  %v9073_v24 = vrot.slane %v8691_v60, %v3766_v44 }
 0x999   : > { %v7199_v39 = vpop.eup %7198  ;;  %5255 = vst [vmem:[%s8737_s30 + $0x2a0] sm:$0xff] %v7197_v40  ;;  %7218 = vpow2.f32 %v5887_v12 }
 0x99a   : > { %v7201_v57 = vpop.eup %7200  ;;  %5257 = vst [vmem:[%s8737_s30 + $0x2b0] sm:$0xff] %v7199_v39  ;;  %7220 = vpow2.f32 %v5891_v51  ;;  %v4393_v12 = vpop.f32.mrb[164].mxu0  ;;  %v4445_v44 = vadd.f32 %v8905_v45, %v9073_v24 }
 0x99b   : > { %v7203_v21 = vpop.eup %7202  ;;  %5256 = vst [vmem:[%s8737_s30 + $0x2a8] sm:$0xff] %v7201_v57  ;;  %7222 = vpow2.f32 %v5893_v61  ;;  %v9067_v14 = vadd.f32 %v4393_v12, %v8980_v19  ;;  %v4395_v51 = vpop.f32.mrb[165].mxu0 }
 0x99c   : > { %v7205_v58 = vpop.eup %7204  ;;  %5258 = vst [vmem:[%s8737_s30 + $0x2b8] sm:$0xff] %v7203_v21  ;;  %7224 = vpow2.f32 %v5892_v53  ;;  %v9070_v61 = vadd.f32 %v4395_v51, %v9020_v56  ;;  %v4397_v40 = vpop.f32.mrb[166].mxu0 }
 0x99d   : > { %v7207_v36 = vpop.eup %7206  ;;  %v4926_v47 = vadd.f32 1.0, %v7205_v58  ;;  %7226 = vpow2.f32 %v5894_v41  ;;  %v9076_v39 = vadd.f32 %v4397_v40, %v8980_v19  ;;  %v4399_v41 = vpop.f32.mrb[167].mxu0 }
 0x99e   : > { %v7209_v5 = vpop.eup %7208  ;;  %v4928_v16 = vadd.f32 1.0, %v7207_v36  ;;  %7228 = vpow2.f32 %v5790_v37  ;;  %v9079_v21 = vadd.f32 %v4399_v41, %v9020_v56 }
 0x99f   : > { %v7211_v2 = vpop.eup %7210  ;;  %7230 = vrcp.f32 %v4926_v47  ;;  %v4927_v29 = vadd.f32 1.0, %v7209_v5 }
 0x9a0   : > { %v7213_v53 = vpop.eup %7212  ;;  %7232 = vrcp.f32 %v4928_v16  ;;  %v4929_v52 = vadd.f32 1.0, %v7211_v2  ;;  %v4326_v2 = vadd.f32 %v8908_v1, %v9020_v56  ;;  %v4448_v1 = vadd.f32 %v8915_v48, %v9073_v24 }
 0x9a1   : > { %v7215_v57 = vpop.eup %7214  ;;  %7234 = vrcp.f32 %v4927_v29  ;;  %v4933_v37 = vadd.f32 1.0, %v7213_v53  ;;  %v4437_v53 = vadd.f32 %v8910_v55, %v9073_v24 }
 0x9a2   : > { %v7217_v58 = vpop.eup %7216  ;;  %7236 = vrcp.f32 %v4929_v52  ;;  %v4935_v36 = vadd.f32 1.0, %v7215_v57  ;;  %v4328_v57 = vadd.f32 %v8913_v30, %v8980_v19  ;;  %v5791_v55 = vmul.f32 -1.442695, %v4326_v2 }
 0x9a3   : > { %v7219_v47 = vpop.eup %7218  ;;  %7238 = vrcp.f32 %v4933_v37  ;;  %v4934_v12 = vadd.f32 1.0, %v7217_v58  ;;  %v5806_v58 = vmul.f32 -1.442695, %v4445_v44  ;;  %v5792_v30 = vmul.f32 -1.442695, %v4437_v53 }
 0x9a4   : > { %v7221_v5 = vpop.eup %7220  ;;  %7240 = vrcp.f32 %v4935_v36  ;;  %v4936_v60 = vadd.f32 1.0, %v7219_v47  ;;  %v5797_v48 = vmul.f32 -1.442695, %v4328_v57  ;;  %v4461_v2 = vadd.f32 %v8924_v13, %v9073_v24 }
 0x9a5   : > { %v7223_v16 = vpop.eup %7222  ;;  %7242 = vrcp.f32 %v4934_v12  ;;  %v4940_v51 = vadd.f32 1.0, %v7221_v5  ;;  %v4330_v12 = vadd.f32 %v8918_v3, %v9020_v56  ;;  %v5813_v3 = vmul.f32 -1.442695, %v4448_v1 }
 0x9a6   : > { %v7225_v29 = vpop.eup %7224  ;;  %7244 = vrcp.f32 %v4936_v60  ;;  %v4942_v40 = vadd.f32 1.0, %v7223_v16  ;;  %v4440_v60 = vadd.f32 %v8920_v4, %v9073_v24  ;;  %v4334_v16 = vadd.f32 %v8922_v25, %v8980_v19 }
 0x9a7   : > { %v7227_v52 = vpop.eup %7226  ;;  %7246 = vrcp.f32 %v4940_v51  ;;  %v4941_v41 = vadd.f32 1.0, %v7225_v29  ;;  %v5798_v4 = vmul.f32 -1.442695, %v4330_v12  ;;  %v4338_v57 = vadd.f32 %v8930_v31, %v8980_v19 }
 0x9a8   : > { %v7229_v45 = vpop.eup %7228  ;;  %7248 = vrcp.f32 %v4942_v40  ;;  %v4943_v37 = vadd.f32 1.0, %v7227_v52  ;;  %v4336_v40 = vadd.f32 %v8926_v32, %v9020_v56  ;;  %v5799_v25 = vmul.f32 -1.442695, %v4440_v60 }
 0x9a9   : > { %v7231_v36 = vpop.eup %7230  ;;  %7250 = vrcp.f32 %v4941_v41  ;;  %v4839_v47 = vadd.f32 1.0, %v7229_v45  ;;  %v4453_v52 = vadd.f32 %v8928_v43, %v9073_v24  ;;  %v5804_v13 = vmul.f32 -1.442695, %v4334_v16 }
 0x9aa   : > { %v7233_v5 = vpop.eup %7232  ;;  %5262 = vst [vmem:[%s8737_s30 + $0x2d8] sm:$0xff] %v7231_v36  ;;  %7252 = vrcp.f32 %v4943_v37  ;;  %v5834_v32 = vmul.f32 -1.442695, %v4461_v2  ;;  %v4464_v37 = vadd.f32 %v8932_v26, %v9073_v24  ;;  %v5805_v43 = vmul.f32 -1.442695, %v4336_v40 }
 0x9ab   : > { %v7235_v44 = vpop.eup %7234  ;;  %5264 = vst [vmem:[%s8737_s30 + $0x2e8] sm:$0xff] %v7233_v5  ;;  %7254 = vrcp.f32 %v4839_v47  ;;  %v5820_v36 = vmul.f32 -1.442695, %v4453_v52  ;;  %v5811_v31 = vmul.f32 -1.442695, %v4338_v57  ;;  %v4340_v57 = vadd.f32 %v8934_v28, %v9020_v56 }
 0x9ac   : > { %v7237_v51 = vpop.eup %7236  ;;  %5263 = vst [vmem:[%s8737_s30 + $0x2e0] sm:$0xff] %v7235_v44  ;;  %7256 = vpow2.f32 %v5806_v58  ;;  %v5841_v12 = vmul.f32 -1.442695, %v4464_v37  ;;  %v4456_v37 = vadd.f32 %v8936_v0, %v9073_v24  ;;  %v4346_v0 = vadd.f32 %v8946_v8, %v9020_v56 }
 0x9ad   : > { %v7239_v29 = vpop.eup %7238  ;;  %5265 = vst [vmem:[%s8737_s30 + $0x2f0] sm:$0xff] %v7237_v51  ;;  %7258 = vpow2.f32 %v5791_v55 }
 0x9ae   : > { %v7241_v53 = vpop.eup %7240  ;;  %5269 = vst [vmem:[%s8737_s30 + $0x310] sm:$0xff] %v7239_v29  ;;  %7260 = vpow2.f32 %v5792_v30 }
 0x9af   : > { %v7243_v41 = vpop.eup %7242  ;;  %5271 = vst [vmem:[%s8737_s30 + $0x320] sm:$0xff] %v7241_v53  ;;  %7262 = vpow2.f32 %v5797_v48 }
 0x9b0   : > { %v7245_v45 = vpop.eup %7244  ;;  %5270 = vst [vmem:[%s8737_s30 + $0x318] sm:$0xff] %v7243_v41  ;;  %7264 = vpow2.f32 %v5813_v3 }
 0x9b1   : > { %v7247_v58 = vpop.eup %7246  ;;  %5272 = vst [vmem:[%s8737_s30 + $0x328] sm:$0xff] %v7245_v45  ;;  %7266 = vpow2.f32 %v5798_v4 }
 0x9b2   : > { %v7249_v1 = vpop.eup %7248  ;;  %5276 = vst [vmem:[%s8737_s30 + $0x348] sm:$0xff] %v7247_v58  ;;  %7268 = vpow2.f32 %v5799_v25 }
 0x9b3   : > { %v7251_v47 = vpop.eup %7250  ;;  %5278 = vst [vmem:[%s8737_s30 + $0x358] sm:$0xff] %v7249_v1  ;;  %7270 = vpow2.f32 %v5804_v13  ;;  %v4344_v1 = vadd.f32 %v8940_v10, %v8980_v19  ;;  %v5827_v10 = vmul.f32 -1.442695, %v4456_v37 }
 0x9b4   : > { %v7253_v55 = vpop.eup %7252  ;;  %5277 = vst [vmem:[%s8737_s30 + $0x350] sm:$0xff] %v7251_v47  ;;  %7272 = vpow2.f32 %v5834_v32 }
 0x9b5   : > { %v7255_v5 = vpop.eup %7254  ;;  %5279 = vst [vmem:[%s8737_s30 + $0x360] sm:$0xff] %v7253_v55  ;;  %7274 = vpow2.f32 %v5805_v43 }
 0x9b6   : > { %v7257_v26 = vpop.eup %7256  ;;  %5175 = vst [vmem:[%s8737_s30 + $0x20] sm:$0xff] %v7255_v5  ;;  %7276 = vpow2.f32 %v5820_v36 }
 0x9b7   : > { %v7259_v30 = vpop.eup %7258  ;;  %v4855_v60 = vadd.f32 1.0, %v7257_v26  ;;  %7278 = vpow2.f32 %v5811_v31  ;;  %v4477_v31 = vadd.f32 %v8944_v15, %v9073_v24  ;;  %v5818_v15 = vmul.f32 -1.442695, %v4344_v1 }
 0x9b8   : > { %v7261_v44 = vpop.eup %7260  ;;  %v4840_v48 = vadd.f32 1.0, %v7259_v30  ;;  %7280 = vpow2.f32 %v5841_v12  ;;  %v5812_v12 = vmul.f32 -1.442695, %v4340_v57  ;;  %v4469_v30 = vadd.f32 %v8950_v27, %v9073_v24 }
 0x9b9   : > { %v7263_v16 = vpop.eup %7262  ;;  %7282 = vrcp.f32 %v4855_v60  ;;  %v4841_v51 = vadd.f32 1.0, %v7261_v44  ;;  %v4348_v44 = vadd.f32 %v8952_v54, %v8980_v19  ;;  %v5862_v8 = vmul.f32 -1.442695, %v4477_v31 }
 0x9ba   : > { %v7265_v3 = vpop.eup %7264  ;;  %7284 = vrcp.f32 %v4840_v48  ;;  %v4846_v2 = vadd.f32 1.0, %v7263_v16  ;;  %v4480_v16 = vadd.f32 %v8956_v50, %v9073_v24  ;;  %v5819_v27 = vmul.f32 -1.442695, %v4346_v0 }
 0x9bb   : > { %v7267_v29 = vpop.eup %7266  ;;  %7286 = vrcp.f32 %v4841_v51  ;;  %v4862_v4 = vadd.f32 1.0, %v7265_v3  ;;  %v4350_v3 = vadd.f32 %v8958_v34, %v9020_v56  ;;  %v5848_v54 = vmul.f32 -1.442695, %v4469_v30 }
 0x9bc   : > { %v7269_v40 = vpop.eup %7268  ;;  %7288 = vrcp.f32 %v4846_v2  ;;  %v4847_v53 = vadd.f32 1.0, %v7267_v29  ;;  %v4472_v29 = vadd.f32 %v8962_v46, %v9073_v24  ;;  %v5825_v50 = vmul.f32 -1.442695, %v4348_v44 }
 0x9bd   : > { %v7271_v25 = vpop.eup %7270  ;;  %7290 = vrcp.f32 %v4862_v4  ;;  %v4848_v52 = vadd.f32 1.0, %v7269_v40  ;;  %v4354_v40 = vadd.f32 %v8973_v42, %v8980_v19  ;;  %v5869_v34 = vmul.f32 -1.442695, %v4480_v16 }
 0x9be   : > { %v7273_v41 = vpop.eup %7272  ;;  %7292 = vrcp.f32 %v4847_v53  ;;  %v4853_v13 = vadd.f32 1.0, %v7271_v25  ;;  %v4493_v25 = vadd.f32 %v8975_v20, %v9073_v24  ;;  %v5826_v46 = vmul.f32 -1.442695, %v4350_v3 }
 0x9bf   : > { %v7275_v45 = vpop.eup %7274  ;;  %7294 = vrcp.f32 %v4848_v52  ;;  %v4883_v32 = vadd.f32 1.0, %v7273_v41  ;;  %v4356_v41 = vadd.f32 %v8982_v23, %v9020_v56  ;;  %v5855_v42 = vmul.f32 -1.442695, %v4472_v29 }
 0x9c0   : > { %v7277_v58 = vpop.eup %7276  ;;  %7296 = vrcp.f32 %v4853_v13  ;;  %v4854_v43 = vadd.f32 1.0, %v7275_v45  ;;  %v5832_v20 = vmul.f32 -1.442695, %v4354_v40  ;;  %v5890_v45 = vmul.f32 -1.442695, %v4493_v25 }
 0x9c1   : > { %v7279_v36 = vpop.eup %7278  ;;  %7298 = vrcp.f32 %v4883_v32  ;;  %v4869_v47 = vadd.f32 1.0, %v7277_v58  ;;  %v5833_v23 = vmul.f32 -1.442695, %v4356_v41  ;;  %v4496_v3 = vadd.f32 %v8988_v9, %v9073_v24 }
 0x9c2   : > { %v7281_v28 = vpop.eup %7280  ;;  %7300 = vrcp.f32 %v4854_v43  ;;  %v4860_v55 = vadd.f32 1.0, %v7279_v36  ;;  %v4360_v29 = vadd.f32 %v8995_v62, %v9020_v56  ;;  %v4488_v40 = vadd.f32 %v8997_v18, %v9073_v24 }
 0x9c3   : > { %v7283_v5 = vpop.eup %7282  ;;  %7302 = vrcp.f32 %v4869_v47  ;;  %v4890_v26 = vadd.f32 1.0, %v7281_v28  ;;  %v5839_v9 = vmul.f32 -1.442695, %v8993_v7  ;;  %v4366_v62 = vadd.f32 %v9004_v22, %v9020_v56  ;;  %v9257_v7 = vld [vmem:[#allocation4_spill] sm:$0xff] }
 0x9c4   : > { %v7285_v60 = vpop.eup %7284  ;;  %5191 = vst.msk [vmem:[%s8737_s30 + $0xa0] sm:$0xff] %vm1223_vm0, %v7283_v5  ;;  %7304 = vrcp.f32 %v4860_v55  ;;  %v5840_v41 = vmul.f32 -1.442695, %v4360_v29 }
 0x9c5   : > { %v7287_v48 = vpop.eup %7286  ;;  %5176 = vst [vmem:[%s8737_s30 + $0x28] sm:$0xff] %v7285_v60  ;;  %7306 = vrcp.f32 %v4890_v26 }
 0x9c6   : > { %v7289_v51 = vpop.eup %7288  ;;  %5177 = vst.msk [vmem:[%s8737_s30 + $0x30] sm:$0xff] %vm1223_vm0, %v7287_v48  ;;  %7308 = vpow2.f32 %v5812_v12  ;;  %v4485_v48 = vadd.f32 %v8984_v38, %v9073_v24  ;;  %v5883_v24 = vmul.f32 -1.442695, %v4488_v40 }
 0x9c7   : > { %v7291_v2 = vpop.eup %7290  ;;  %5182 = vst [vmem:[%s8737_s30 + $0x58] sm:$0xff] %v7289_v51  ;;  %7310 = vpow2.f32 %v5827_v10 }
 0x9c8   : > { %v7293_v4 = vpop.eup %7292  ;;  %5198 = vst.msk [vmem:[%s8737_s30 + $0xd8] sm:$0xff] %vm1223_vm0, %v7291_v2  ;;  %7312 = vpow2.f32 %v5818_v15 }
 0x9c9   : > { %v7295_v53 = vpop.eup %7294  ;;  %5183 = vst [vmem:[%s8737_s30 + $0x60] sm:$0xff] %v7293_v4  ;;  %7314 = vpow2.f32 %v5862_v8 }
 0x9ca   : > { %v7297_v52 = vpop.eup %7296  ;;  %5184 = vst.msk [vmem:[%s8737_s30 + $0x68] sm:$0xff] %vm1223_vm0, %v7295_v53  ;;  %7316 = vpow2.f32 %v5819_v27 }
 0x9cb   : > { %v7299_v13 = vpop.eup %7298  ;;  %5189 = vst [vmem:[%s8737_s30 + $0x90] sm:$0xff] %v7297_v52  ;;  %7318 = vpow2.f32 %v5848_v54  ;;  %v5897_v52 = vmul.f32 -1.442695, %v4496_v3 }
 0x9cc   : > { %v7301_v19 = vpop.eup %7300  ;;  %5219 = vst.msk [vmem:[%s8737_s30 + $0x180] sm:$0xff] %vm1223_vm0, %v7299_v13  ;;  %7320 = vpow2.f32 %v5825_v50  ;;  %v5876_v50 = vmul.f32 -1.442695, %v4485_v48  ;;  %v4370_v13 = vadd.f32 %v9257_v7, %v9020_v56  ;;  %v5889_v7 = vmul.f32 -1.442695, %v9070_v61 }
 0x9cd   : > { %v7303_v57 = vpop.eup %7302  ;;  %5190 = vst [vmem:[%s8737_s30 + $0x98] sm:$0xff] %v7301_v19  ;;  %7322 = vpow2.f32 %v5869_v34  ;;  %v9258_v19 = vld [vmem:[#allocation2_spill] sm:$0xff] }
 0x9ce   : > { %v7305_v32 = vpop.eup %7304  ;;  %5205 = vst.msk [vmem:[%s8737_s30 + $0x110] sm:$0xff] %vm1223_vm0, %v7303_v57  ;;  %7324 = vpow2.f32 %v5826_v46  ;;  %v5846_v22 = vmul.f32 -1.442695, %v9258_v19  ;;  %v5847_v57 = vmul.f32 -1.442695, %v4366_v62 }
 0x9cf   : > { %v7307_v37 = vpop.eup %7306  ;;  %5196 = vst [vmem:[%s8737_s30 + $0xc8] sm:$0xff] %v7305_v32  ;;  %7326 = vpow2.f32 %v5855_v42 }
 0x9d0   : > { %v7309_v58 = vpop.eup %7308  ;;  %5226 = vst.msk [vmem:[%s8737_s30 + $0x1b8] sm:$0xff] %vm1223_vm0, %v7307_v37  ;;  %7328 = vpow2.f32 %v5832_v20 }
 0x9d1   : > { %v7311_v43 = vpop.eup %7310  ;;  %v4861_v1 = vadd.f32 1.0, %v7309_v58  ;;  %7330 = vpow2.f32 %v5890_v45  ;;  %v4376_v45 = vadd.f32 %v9016_v35, %v9020_v56 }
 0x9d2   : > { %v7313_v36 = vpop.eup %7312  ;;  %v4876_v47 = vadd.f32 1.0, %v7311_v43  ;;  %7332 = vpow2.f32 %v5833_v23  ;;  %v9259_v23 = vld [vmem:[#allocation3_spill] sm:$0xff]  ;;  %v5854_v43 = vmul.f32 -1.442695, %v4370_v13 }
 0x9d3   : > { %v7315_v31 = vpop.eup %7314  ;;  %7334 = vrcp.f32 %v4861_v1  ;;  %v4867_v28 = vadd.f32 1.0, %v7313_v36  ;;  %v5853_v37 = vmul.f32 -1.442695, %v9259_v23  ;;  %v5860_v36 = vmul.f32 -1.442695, %v9014_v63 }
 0x9d4   : > { %v7317_v55 = vpop.eup %7316  ;;  %7336 = vrcp.f32 %v4876_v47  ;;  %v4911_v12 = vadd.f32 1.0, %v7315_v31  ;;  %v5861_v56 = vmul.f32 -1.442695, %v4376_v45  ;;  %v5867_v31 = vmul.f32 -1.442695, %v9025_v17 }
 0x9d5   : > { %v7319_v0 = vpop.eup %7318  ;;  %7338 = vrcp.f32 %v4867_v28  ;;  %v4868_v5 = vadd.f32 1.0, %v7317_v55  ;;  %v5868_v55 = vmul.f32 -1.442695, %v9030_v6 }
 0x9d6   : > { %v7321_v26 = vpop.eup %7320  ;;  %7340 = vrcp.f32 %v4911_v12  ;;  %v4897_v10 = vadd.f32 1.0, %v7319_v0 }
 0x9d7   : > { %v7323_v30 = vpop.eup %7322  ;;  %7342 = vrcp.f32 %v4868_v5  ;;  %v4874_v60 = vadd.f32 1.0, %v7321_v26 }
 0x9d8   : > { %v7325_v15 = vpop.eup %7324  ;;  %7344 = vrcp.f32 %v4897_v10  ;;  %v4918_v44 = vadd.f32 1.0, %v7323_v30 }
 0x9d9   : > { %v7327_v8 = vpop.eup %7326  ;;  %7346 = vrcp.f32 %v4874_v60  ;;  %v4875_v16 = vadd.f32 1.0, %v7325_v15 }
 0x9da   : > { %v7329_v51 = vpop.eup %7328  ;;  %7348 = vrcp.f32 %v4918_v44  ;;  %v4904_v27 = vadd.f32 1.0, %v7327_v8 }
 0x9db   : > { %v7331_v2 = vpop.eup %7330  ;;  %7350 = vrcp.f32 %v4875_v16  ;;  %v4881_v54 = vadd.f32 1.0, %v7329_v51 }
 0x9dc   : > { %v7333_v4 = vpop.eup %7332  ;;  %7352 = vrcp.f32 %v4904_v27  ;;  %v4939_v38 = vadd.f32 1.0, %v7331_v2 }
 0x9dd   : > { %v7335_v53 = vpop.eup %7334  ;;  %7354 = vrcp.f32 %v4881_v54  ;;  %v4882_v34 = vadd.f32 1.0, %v7333_v4 }
 0x9de   : > { %v7337_v25 = vpop.eup %7336  ;;  %5197 = vst [vmem:[%s8737_s30 + $0xd0] sm:$0xff] %v7335_v53  ;;  %7356 = vrcp.f32 %v4939_v38 }
 0x9df   : > { %v7339_v46 = vpop.eup %7338  ;;  %5212 = vst.msk [vmem:[%s8737_s30 + $0x148] sm:$0xff] %vm1223_vm0, %v7337_v25  ;;  %7358 = vrcp.f32 %v4882_v34  ;;  %v5874_v34 = vmul.f32 -1.442695, %v9045_v11 }
 0x9e0   : > { %v7341_v18 = vpop.eup %7340  ;;  %5203 = vst [vmem:[%s8737_s30 + $0x100] sm:$0xff] %v7339_v46  ;;  %7360 = vpow2.f32 %v5876_v50  ;;  %v5881_v46 = vmul.f32 -1.442695, %v9055_v49 }
 0x9e1   : > { %v7343_v42 = vpop.eup %7342  ;;  %5247 = vst.msk [vmem:[%s8737_s30 + $0x260] sm:$0xff] %vm1223_vm0, %v7341_v18  ;;  %7362 = vpow2.f32 %v5839_v9  ;;  %v5882_v18 = vmul.f32 -1.442695, %v9060_v33  ;;  %v5895_v33 = vmul.f32 -1.442695, %v9076_v39 }
 0x9e2   : > { %v7345_v20 = vpop.eup %7344  ;;  %5204 = vst [vmem:[%s8737_s30 + $0x108] sm:$0xff] %v7343_v42  ;;  %7364 = vpow2.f32 %v5897_v52  ;;  %v5875_v52 = vmul.f32 -1.442695, %v9050_v59  ;;  %v5888_v59 = vmul.f32 -1.442695, %v9067_v14 }
 0x9e3   : > { %v7347_v32 = vpop.eup %7346  ;;  %5233 = vst.msk [vmem:[%s8737_s30 + $0x1f0] sm:$0xff] %vm1223_vm0, %v7345_v20  ;;  %7366 = vpow2.f32 %v5840_v41  ;;  %v5896_v14 = vmul.f32 -1.442695, %v9079_v21 }
 0x9e4   : > { %v7349_v58 = vpop.eup %7348  ;;  %5210 = vst [vmem:[%s8737_s30 + $0x138] sm:$0xff] %v7347_v32  ;;  %7368 = vpow2.f32 %v5883_v24 }
 0x9e5   : > { %v7351_v1 = vpop.eup %7350  ;;  %5254 = vst.msk [vmem:[%s8737_s30 + $0x298] sm:$0xff] %vm1223_vm0, %v7349_v58  ;;  %7370 = vpow2.f32 %v5846_v22 }
 0x9e6   : > { %v7353_v35 = vpop.eup %7352  ;;  %5211 = vst [vmem:[%s8737_s30 + $0x140] sm:$0xff] %v7351_v1  ;;  %7372 = vpow2.f32 %v5847_v57 }
 0x9e7   : > { %v7355_v47 = vpop.eup %7354  ;;  %5240 = vst.msk [vmem:[%s8737_s30 + $0x228] sm:$0xff] %vm1223_vm0, %v7353_v35  ;;  %7374 = vpow2.f32 %v5853_v37 }
 0x9e8   : > { %v7357_v28 = vpop.eup %7356  ;;  %5217 = vst [vmem:[%s8737_s30 + $0x170] sm:$0xff] %v7355_v47  ;;  %7376 = vpow2.f32 %v5854_v43 }
 0x9e9   : > { %v7359_v12 = vpop.eup %7358  ;;  %5275 = vst.msk [vmem:[%s8737_s30 + $0x340] sm:$0xff] %vm1223_vm0, %v7357_v28  ;;  %7378 = vpow2.f32 %v5860_v36 }
 0x9ea   : > { %v7361_v63 = vpop.eup %7360  ;;  %5218 = vst [vmem:[%s8737_s30 + $0x178] sm:$0xff] %v7359_v12  ;;  %7380 = vpow2.f32 %v5861_v56 }
 0x9eb   : > { %v7363_v0 = vpop.eup %7362  ;;  %v4925_v5 = vadd.f32 1.0, %v7361_v63  ;;  %7382 = vpow2.f32 %v5867_v31 }
 0x9ec   : > { %v7365_v26 = vpop.eup %7364  ;;  %v4888_v10 = vadd.f32 1.0, %v7363_v0  ;;  %7384 = vpow2.f32 %v5868_v55 }
 0x9ed   : > { %v7367_v30 = vpop.eup %7366  ;;  %7386 = vrcp.f32 %v4925_v5  ;;  %v4946_v17 = vadd.f32 1.0, %v7365_v26 }
 0x9ee   : > { %v7369_v60 = vpop.eup %7368  ;;  %7388 = vrcp.f32 %v4888_v10  ;;  %v4889_v15 = vadd.f32 1.0, %v7367_v30 }
 0x9ef   : > { %v7371_v6 = vpop.eup %7370  ;;  %7390 = vrcp.f32 %v4946_v17  ;;  %v4932_v44 = vadd.f32 1.0, %v7369_v60 }
 0x9f0   : > { %v7373_v48 = vpop.eup %7372  ;;  %7392 = vrcp.f32 %v4889_v15  ;;  %v4895_v8 = vadd.f32 1.0, %v7371_v6 }
 0x9f1   : > { %v7375_v16 = vpop.eup %7374  ;;  %7394 = vrcp.f32 %v4932_v44  ;;  %v4896_v51 = vadd.f32 1.0, %v7373_v48 }
 0x9f2   : > { %v7377_v27 = vpop.eup %7376  ;;  %7396 = vrcp.f32 %v4895_v8  ;;  %v4902_v3 = vadd.f32 1.0, %v7375_v16 }
 0x9f3   : > { %v7379_v2 = vpop.eup %7378  ;;  %7398 = vrcp.f32 %v4896_v51  ;;  %v4903_v54 = vadd.f32 1.0, %v7377_v27 }
 0x9f4   : > { %v7381_v29 = vpop.eup %7380  ;;  %7400 = vrcp.f32 %v4902_v3  ;;  %v4909_v4 = vadd.f32 1.0, %v7379_v2 }
 0x9f5   : > { %v7383_v38 = vpop.eup %7382  ;;  %7402 = vrcp.f32 %v4903_v54  ;;  %v4910_v50 = vadd.f32 1.0, %v7381_v29 }
 0x9f6   : > { %v7385_v40 = vpop.eup %7384  ;;  %7404 = vrcp.f32 %v4909_v4  ;;  %v4916_v53 = vadd.f32 1.0, %v7383_v38 }
 0x9f7   : > { %v7387_v9 = vpop.eup %7386  ;;  %7406 = vrcp.f32 %v4910_v50  ;;  %v4917_v25 = vadd.f32 1.0, %v7385_v40 }
 0x9f8   : > { %v7389_v62 = vpop.eup %7388  ;;  %5261 = vst.msk [vmem:[%s8737_s30 + $0x2d0] sm:$0xff] %vm1223_vm0, %v7387_v9  ;;  %7408 = vrcp.f32 %v4916_v53 }
 0x9f9   : > { %v7391_v41 = vpop.eup %7390  ;;  %5224 = vst [vmem:[%s8737_s30 + $0x1a8] sm:$0xff] %v7389_v62  ;;  %7410 = vrcp.f32 %v4917_v25 }
 0x9fa   : > { %v7393_v11 = vpop.eup %7392  ;;  %5282 = vst.msk [vmem:[%s8737_s30 + $0x378] sm:$0xff] %vm1223_vm0, %v7391_v41  ;;  %7412 = vpow2.f32 %v5874_v34 }
 0x9fb   : > { %v7395_v24 = vpop.eup %7394  ;;  %5225 = vst [vmem:[%s8737_s30 + $0x1b0] sm:$0xff] %v7393_v11  ;;  %7414 = vpow2.f32 %v5875_v52 }
 0x9fc   : > { %v7397_v49 = vpop.eup %7396  ;;  %5268 = vst.msk [vmem:[%s8737_s30 + $0x308] sm:$0xff] %vm1223_vm0, %v7395_v24  ;;  %7416 = vpow2.f32 %v5881_v46 }
 0x9fd   : > { %v7399_v13 = vpop.eup %7398  ;;  %5231 = vst [vmem:[%s8737_s30 + $0x1e0] sm:$0xff] %v7397_v49  ;;  %7418 = vpow2.f32 %v5882_v18 }
 0x9fe   : > { %v7401_v42 = vpop.eup %7400  ;;  %5232 = vst [vmem:[%s8737_s30 + $0x1e8] sm:$0xff] %v7399_v13  ;;  %7420 = vpow2.f32 %v5888_v59 }
 0x9ff   : > { %v7403_v61 = vpop.eup %7402  ;;  %5238 = vst [vmem:[%s8737_s30 + $0x218] sm:$0xff] %v7401_v42  ;;  %7422 = vpow2.f32 %v5889_v7 }
 0xa00   : > { %v7405_v19 = vpop.eup %7404  ;;  %5239 = vst [vmem:[%s8737_s30 + $0x220] sm:$0xff] %v7403_v61  ;;  %7424 = vpow2.f32 %v5895_v33 }
 0xa01   : > { %v7407_v22 = vpop.eup %7406  ;;  %5245 = vst [vmem:[%s8737_s30 + $0x250] sm:$0xff] %v7405_v19  ;;  %7426 = vpow2.f32 %v5896_v14 }
 0xa02   : > { %v7409_v39 = vpop.eup %7408  ;;  %5246 = vst [vmem:[%s8737_s30 + $0x258] sm:$0xff] %v7407_v22 }
 0xa03   : > { %v7411_v20 = vpop.eup %7410  ;;  %5252 = vst [vmem:[%s8737_s30 + $0x288] sm:$0xff] %v7409_v39 }
 0xa04   : > { %v7413_v57 = vpop.eup %7412  ;;  %5253 = vst [vmem:[%s8737_s30 + $0x290] sm:$0xff] %v7411_v20 }
 0xa05   : > { %v7415_v21 = vpop.eup %7414  ;;  %v4923_v45 = vadd.f32 1.0, %v7413_v57 }
 0xa06   : > { %v7417_v32 = vpop.eup %7416  ;;  %v4924_v23 = vadd.f32 1.0, %v7415_v21 }
 0xa07   : > { %v7419_v37 = vpop.eup %7418  ;;  %7428 = vrcp.f32 %v4923_v45  ;;  %v4930_v58 = vadd.f32 1.0, %v7417_v32 }
 0xa08   : > { %v7421_v43 = vpop.eup %7420  ;;  %7430 = vrcp.f32 %v4924_v23  ;;  %v4931_v1 = vadd.f32 1.0, %v7419_v37 }
 0xa09   : > { %v7423_v36 = vpop.eup %7422  ;;  %7432 = vrcp.f32 %v4930_v58  ;;  %v4937_v35 = vadd.f32 1.0, %v7421_v43 }
 0xa0a   : > { %v7425_v56 = vpop.eup %7424  ;;  %7434 = vrcp.f32 %v4931_v1  ;;  %v4938_v47 = vadd.f32 1.0, %v7423_v36 }
 0xa0b   : > { %v7427_v31 = vpop.eup %7426  ;;  %7436 = vrcp.f32 %v4937_v35  ;;  %v4944_v28 = vadd.f32 1.0, %v7425_v56 }
 0xa0c   : > { %7438 = vrcp.f32 %v4938_v47  ;;  %v4945_v55 = vadd.f32 1.0, %v7427_v31 }
 0xa0d   : > { %7440 = vrcp.f32 %v4944_v28 }
 0xa0e   : > { %7442 = vrcp.f32 %v4945_v55 }
 0xa11   : > { %v7429_v12 = vpop.eup %7428 }
 0xa12   : > { %v7431_v63 = vpop.eup %7430  ;;  %5259 = vst [vmem:[%s8737_s30 + $0x2c0] sm:$0xff] %v7429_v12 }
 0xa13   : > { %v7433_v0 = vpop.eup %7432  ;;  %5260 = vst [vmem:[%s8737_s30 + $0x2c8] sm:$0xff] %v7431_v63 }
 0xa14   : > { %v7435_v5 = vpop.eup %7434  ;;  %5266 = vst [vmem:[%s8737_s30 + $0x2f8] sm:$0xff] %v7433_v0 }
 0xa15   : > { %v7437_v26 = vpop.eup %7436  ;;  %5267 = vst [vmem:[%s8737_s30 + $0x300] sm:$0xff] %v7435_v5 }
 0xa16   : > { %v7439_v10 = vpop.eup %7438  ;;  %5273 = vst [vmem:[%s8737_s30 + $0x330] sm:$0xff] %v7437_v26 }
 0xa17   : > { %v7441_v30 = vpop.eup %7440  ;;  %5274 = vst [vmem:[%s8737_s30 + $0x338] sm:$0xff] %v7439_v10 }
 0xa18   : > { %v7443_v17 = vpop.eup %7442  ;;  %5280 = vst [vmem:[%s8737_s30 + $0x368] sm:$0xff] %v7441_v30 }
 0xa19   : > { %5281 = vst [vmem:[%s8737_s30 + $0x370] sm:$0xff] %v7443_v17 }
 0xa1a PF: > { %s24_s25 = sadd.s32 1, %s7450_s25  }
 0xa1b   : > { %p21_p4 = scmp.ge.s32.totalorder %s24_s25, 4  }
 0xa1d   :  { %23 = sbr.rel (!%p21_p4) target bundleno = 1 (0x1), region = 114 }

</bundles_post_ra>
